<compile_context>
chip_gen: v7x
topology: tpu7x:2x2x1
jax: 0.10.0
libtpu: 0.0.40
codegen_flags: <defaults>
</compile_context>

<pallas_src>
import jax
import jax.numpy as jnp
import numpy as np
from jax import lax
from jax.experimental import pallas as pl
from jax.experimental.pallas import tpu as pltpu

N_LAYERS = 3


def _round_up(n, m):
    return ((n + m - 1) // m) * m


def _reorder_gates_ifgo_to_ifog(w):
    """Reorder last-axis gate blocks from PyTorch [i,f,g,o] to [i,f,o,g]."""
    h = w.shape[-1] // 4
    return jnp.concatenate([w[..., :2 * h], w[..., 3 * h:], w[..., 2 * h:3 * h]],
                           axis=-1)


def _lstm_mlp_kernel(x_ref,
                     wih0, whh0, b0,
                     wih1, whh1, b1,
                     wih2, whh2, b2,
                     w_fc1, b_fc1, w_out, b_out,
                     out_ref, hn_ref, cn_ref,
                     seq_buf, gate_buf, h_st, c_st):
    TBP, H = seq_buf.shape
    BP = h_st.shape[0]
    T = TBP // BP

    def run_layer(layer_idx, layer_in, wih_ref, whh_ref, b_ref):
        # Whole-sequence input projection + bias: one MXU-shaped GEMM per layer.
        gate_buf[...] = (
            jnp.dot(layer_in.astype(jnp.bfloat16), wih_ref[...],
                    preferred_element_type=jnp.float32)
            + b_ref[...])                                   # (T*BP, 4H) f32

        h_st[...] = jnp.zeros_like(h_st)
        c_st[...] = jnp.zeros_like(c_st)
        whh = whh_ref[...]                                  # (H, 4H) bf16, hoisted

        def step(t, carry):
            row = pl.multiple_of(t * BP, BP)                # sublane-aligned offset
            gates = gate_buf[pl.ds(row, BP), :] + jnp.dot(
                h_st[...].astype(jnp.bfloat16), whh,
                preferred_element_type=jnp.float32)         # (BP, 4H) f32
            # gate columns were reordered in the wrapper to [i, f, o, g]:
            sig = jax.nn.sigmoid(gates[:, :3 * H])          # one EUP pass for i,f,o
            g_g = jnp.tanh(gates[:, 3 * H:])
            i_g = sig[:, 0:H]
            f_g = sig[:, H:2 * H]
            o_g = sig[:, 2 * H:3 * H]
            c_new = f_g * c_st[...] + i_g * g_g
            h_new = o_g * jnp.tanh(c_new)
            c_st[...] = c_new
            h_st[...] = h_new
            # safe in-place: this layer's input was fully consumed into gate_buf
            seq_buf[pl.ds(row, BP), :] = h_new
            return carry

        lax.fori_loop(0, T, step, 0, unroll=True)
        hn_ref[layer_idx] = h_st[...]
        cn_ref[layer_idx] = c_st[...]

    run_layer(0, x_ref[...], wih0, whh0, b0)
    run_layer(1, seq_buf[...], wih1, whh1, b1)
    run_layer(2, seq_buf[...], wih2, whh2, b2)

    # FC head directly on time-major rows (no in-kernel transpose); the wrapper
    # reorders to PyTorch's batch-major row order.
    h_all = seq_buf[...].astype(jnp.bfloat16)               # (T*BP, H)
    hid = jnp.maximum(
        jnp.dot(h_all, w_fc1[...], preferred_element_type=jnp.float32)
        + b_fc1[...], 0.0)
    out_ref[...] = (jnp.dot(hid.astype(jnp.bfloat16), w_out[...],
                            preferred_element_type=jnp.float32)
                    + b_out[...])                           # (T*BP, OP) lane-dense


def complex_generator_forward(x, params):
    """x: (B, T, in_channels) f32 -> (out (B*T, out_channels), (h_n, c_n))."""
    B, T, I = x.shape
    H = params["fc1_w"].shape[0]
    O = params["out_w"].shape[1]
    BP = _round_up(B, 8)          # pad batch to a full sublane group
    OP = _round_up(O, 128)        # lane-dense output / fc_out columns

    # time-major rows, padded batch: every kernel tile is (8, lanes)-aligned
    x_p = jnp.pad(x, ((0, BP - B), (0, 0), (0, 0)))               # (BP, T, I)
    x_tm = jnp.transpose(x_p, (1, 0, 2)).reshape(T * BP, I)       # (T*BP, I)

    flat = [x_tm]
    for l in range(N_LAYERS):
        flat += [
            _reorder_gates_ifgo_to_ifog(params[f"wih{l}"]).astype(jnp.bfloat16),
            _reorder_gates_ifgo_to_ifog(params[f"whh{l}"]).astype(jnp.bfloat16),
            _reorder_gates_ifgo_to_ifog(params[f"b{l}"]),          # bias stays f32
        ]
    w_out_pad = jnp.pad(params["out_w"], ((0, 0), (0, OP - O))).astype(jnp.bfloat16)
    b_out_pad = jnp.pad(params["out_b"], ((0, 0), (0, OP - O)))
    flat += [params["fc1_w"].astype(jnp.bfloat16), params["fc1_b"],
             w_out_pad, b_out_pad]

    # advisory cost estimate for XLA's scheduler
    TB = T * BP
    H4 = 4 * H
    flops = int(2 * TB * I * H4                 # layer-0 input projection
                + 2 * 2 * TB * H * H4           # layer-1/2 input projections
                + N_LAYERS * 2 * TB * H * H4    # recurrent Whh matmuls
                + 2 * TB * H * H                # fc_1
                + 2 * TB * H * OP)              # fc_out (padded)
    transcendentals = int(N_LAYERS * TB * 5 * H)
    bytes_accessed = int(sum(int(np.prod(a.shape)) * a.dtype.itemsize for a in flat)
                         + (TB * OP + 2 * N_LAYERS * BP * H) * 4)

    vmem = pl.BlockSpec(memory_space=pltpu.MemorySpace.VMEM)
    out_pad, h_n_p, c_n_p = pl.pallas_call(
        _lstm_mlp_kernel,
        out_shape=(
            jax.ShapeDtypeStruct((T * BP, OP), jnp.float32),
            jax.ShapeDtypeStruct((N_LAYERS, BP, H), jnp.float32),
            jax.ShapeDtypeStruct((N_LAYERS, BP, H), jnp.float32),
        ),
        in_specs=[vmem] * len(flat),
        out_specs=(vmem, vmem, vmem),
        scratch_shapes=[
            pltpu.VMEM((T * BP, H), jnp.float32),       # sequence buffer (in-place)
            pltpu.VMEM((T * BP, 4 * H), jnp.float32),   # precomputed input proj
            pltpu.VMEM((BP, H), jnp.float32),           # h state
            pltpu.VMEM((BP, H), jnp.float32),           # c state
        ],
        cost_estimate=pl.CostEstimate(flops=flops,
                                      transcendentals=transcendentals,
                                      bytes_accessed=bytes_accessed),
    )(*flat)

    # (T, BP, OP) -> slice pad -> (B, T, O) -> (B*T, O): PyTorch reshape(-1, H) order
    out = jnp.transpose(out_pad.reshape(T, BP, OP)[:, :B, :O], (1, 0, 2))
    out = out.reshape(B * T, O)
    return out, (h_n_p[:, :B, :], c_n_p[:, :B, :])


def init_params(key, in_channels, hidden_dim, out_channels, n_layers=N_LAYERS):
    """Deterministic synthetic parameters, PyTorch layout/init (gate order i,f,g,o)."""
    params = {}
    bound = 1.0 / np.sqrt(hidden_dim)
    keys = jax.random.split(key, 4 * n_layers + 4)
    idx = 0
    for l in range(n_layers):
        in_dim = in_channels if l == 0 else hidden_dim
        wih = jax.random.uniform(keys[idx], (4 * hidden_dim, in_dim),
                                 minval=-bound, maxval=bound); idx += 1
        whh = jax.random.uniform(keys[idx], (4 * hidden_dim, hidden_dim),
                                 minval=-bound, maxval=bound); idx += 1
        bih = jax.random.uniform(keys[idx], (4 * hidden_dim,),
                                 minval=-bound, maxval=bound); idx += 1
        bhh = jax.random.uniform(keys[idx], (4 * hidden_dim,),
                                 minval=-bound, maxval=bound); idx += 1
        params[f"wih{l}"] = jnp.asarray(wih.T, jnp.float32)        # (in_dim, 4H)
        params[f"whh{l}"] = jnp.asarray(whh.T, jnp.float32)        # (H, 4H)
        params[f"b{l}"] = jnp.asarray((bih + bhh)[None, :], jnp.float32)
    w1 = jax.random.uniform(keys[idx], (hidden_dim, hidden_dim),
                            minval=-bound, maxval=bound); idx += 1
    b1 = jax.random.uniform(keys[idx], (hidden_dim,),
                            minval=-bound, maxval=bound); idx += 1
    wo = jax.random.uniform(keys[idx], (out_channels, hidden_dim),
                            minval=-bound, maxval=bound); idx += 1
    bo = jax.random.uniform(keys[idx], (out_channels,),
                            minval=-bound, maxval=bound); idx += 1
    params["fc1_w"] = jnp.asarray(w1.T, jnp.float32)               # (H, H)
    params["fc1_b"] = jnp.asarray(b1[None, :], jnp.float32)        # (1, H)
    params["out_w"] = jnp.asarray(wo.T, jnp.float32)               # (H, O)
    params["out_b"] = jnp.asarray(bo[None, :], jnp.float32)        # (1, O)
    return params


def reference_forward(x, params):
    """Pure-JAX f32 reference of ComplexGenerator.forward (scale=False)."""
    B, T, _ = x.shape
    H = params["fc1_w"].shape[0]
    layer_in = x
    hs, cs = [], []
    for l in range(N_LAYERS):
        wih, whh, b = params[f"wih{l}"], params[f"whh{l}"], params[f"b{l}"]
        hl = jnp.zeros((B, H), jnp.float32)
        cl = jnp.zeros((B, H), jnp.float32)
        outs = []
        for t in range(T):
            gates = layer_in[:, t, :] @ wih + hl @ whh + b
            i_g = jax.nn.sigmoid(gates[:, :H])
            f_g = jax.nn.sigmoid(gates[:, H:2 * H])
            g_g = jnp.tanh(gates[:, 2 * H:3 * H])
            o_g = jax.nn.sigmoid(gates[:, 3 * H:])
            cl = f_g * cl + i_g * g_g
            hl = o_g * jnp.tanh(cl)
            outs.append(hl)
        layer_in = jnp.stack(outs, axis=1)
        hs.append(hl)
        cs.append(cl)
    flat = layer_in.reshape(-1, H)
    hid = jnp.maximum(flat @ params["fc1_w"] + params["fc1_b"], 0.0)
    out = hid @ params["out_w"] + params["out_b"]
    return out, (jnp.stack(hs), jnp.stack(cs))


if __name__ == "__main__":
    B, T = 2, 8
    in_channels, hidden_dim, out_channels = 16, 32, 4

    key = jax.random.PRNGKey(0)
    kx, kp = jax.random.split(key)
    x = jax.random.normal(kx, (B, T, in_channels), dtype=jnp.float32)
    params = init_params(kp, in_channels, hidden_dim, out_channels)

    out, (h_n, c_n) = complex_generator_forward(x, params)
    jax.block_until_ready((out, h_n, c_n))

    ref_out, (ref_h, ref_c) = reference_forward(x, params)
    # tolerance accounts for bf16 matmul operands (f32 accumulation) vs f32 ref
    np.testing.assert_allclose(np.asarray(out), np.asarray(ref_out),
                               rtol=2e-2, atol=2e-2)
    np.testing.assert_allclose(np.asarray(h_n), np.asarray(ref_h),
                               rtol=2e-2, atol=2e-2)
    np.testing.assert_allclose(np.asarray(c_n), np.asarray(ref_c),
                               rtol=2e-2, atol=2e-2)

    assert out.shape == (B * T, out_channels)
    assert h_n.shape == (N_LAYERS, B, hidden_dim)
    assert c_n.shape == (N_LAYERS, B, hidden_dim)
    print("KERNEL_OK")
</pallas_src>

<mosaic_0001>
module attributes {stable_mosaic.version = 11 : i64} {
  func.func @_lstm_mlp_kernel(%arg0: memref<64x16xf32, #tpu.memory_space<vmem>>, %arg1: memref<16x128xbf16, #tpu.memory_space<vmem>>, %arg2: memref<32x128xbf16, #tpu.memory_space<vmem>>, %arg3: memref<1x128xf32, #tpu.memory_space<vmem>>, %arg4: memref<32x128xbf16, #tpu.memory_space<vmem>>, %arg5: memref<32x128xbf16, #tpu.memory_space<vmem>>, %arg6: memref<1x128xf32, #tpu.memory_space<vmem>>, %arg7: memref<32x128xbf16, #tpu.memory_space<vmem>>, %arg8: memref<32x128xbf16, #tpu.memory_space<vmem>>, %arg9: memref<1x128xf32, #tpu.memory_space<vmem>>, %arg10: memref<32x32xbf16, #tpu.memory_space<vmem>>, %arg11: memref<1x32xf32, #tpu.memory_space<vmem>>, %arg12: memref<32x128xbf16, #tpu.memory_space<vmem>>, %arg13: memref<1x128xf32, #tpu.memory_space<vmem>>, %arg14: memref<64x128xf32, #tpu.memory_space<vmem>>, %arg15: memref<3x8x32xf32, #tpu.memory_space<vmem>>, %arg16: memref<3x8x32xf32, #tpu.memory_space<vmem>>, %arg17: memref<64x32xf32, #tpu.memory_space<vmem>>, %arg18: memref<64x128xf32, #tpu.memory_space<vmem>>, %arg19: memref<8x32xf32, #tpu.memory_space<vmem>>, %arg20: memref<8x32xf32, #tpu.memory_space<vmem>>) attributes {dimension_semantics = [], scalar_prefetch = 0 : i64, scratch_operands = 4 : i64, tpu.core_type = #tpu.core_type<tc>} {
    %c0 = arith.constant 0 : index
    %c0_0 = arith.constant 0 : index
    %0 = vector.load %arg0[%c0, %c0_0] : memref<64x16xf32, #tpu.memory_space<vmem>>, vector<64x16xf32>
    %1 = arith.truncf %0 : vector<64x16xf32> to vector<64x16xbf16>
    %c0_1 = arith.constant 0 : index
    %c0_2 = arith.constant 0 : index
    %2 = vector.load %arg1[%c0_1, %c0_2] : memref<16x128xbf16, #tpu.memory_space<vmem>>, vector<16x128xbf16>
    %cst = arith.constant dense<0.000000e+00> : vector<64x128xf32>
    %3 = tpu.matmul %1, %2, %cst {dimension_numbers = #tpu.dot_dimension_numbers<[1], [0], [0], [1], [0, 0, 1, 1], [], []>} : vector<64x16xbf16>, vector<16x128xbf16>, vector<64x128xf32> -> vector<64x128xf32>
    %c0_3 = arith.constant 0 : index
    %c0_4 = arith.constant 0 : index
    %4 = vector.load %arg3[%c0_3, %c0_4] : memref<1x128xf32, #tpu.memory_space<vmem>>, vector<1x128xf32>
    %5 = vector.broadcast %4 : vector<1x128xf32> to vector<64x128xf32>
    %6 = arith.addf %3, %5 : vector<64x128xf32>
    %c0_5 = arith.constant 0 : index
    %c0_6 = arith.constant 0 : index
    %7 = vector.load %arg18[%c0_5, %c0_6] : memref<64x128xf32, #tpu.memory_space<vmem>>, vector<64x128xf32>
    tpu.vector_store %arg18[%c0_5, %c0_6], %6 {strides = array<i32>} : memref<64x128xf32, #tpu.memory_space<vmem>>, vector<64x128xf32>,
    %cst_7 = arith.constant 0.000000e+00 : f32
    %8 = vector.broadcast %cst_7 : f32 to vector<8x32xf32>
    %c0_8 = arith.constant 0 : index
    %c0_9 = arith.constant 0 : index
    %9 = vector.load %arg19[%c0_8, %c0_9] : memref<8x32xf32, #tpu.memory_space<vmem>>, vector<8x32xf32>
    tpu.vector_store %arg19[%c0_8, %c0_9], %8 {strides = array<i32>} : memref<8x32xf32, #tpu.memory_space<vmem>>, vector<8x32xf32>,
    %cst_10 = arith.constant 0.000000e+00 : f32
    %10 = vector.broadcast %cst_10 : f32 to vector<8x32xf32>
    %c0_11 = arith.constant 0 : index
    %c0_12 = arith.constant 0 : index
    %11 = vector.load %arg20[%c0_11, %c0_12] : memref<8x32xf32, #tpu.memory_space<vmem>>, vector<8x32xf32>
    tpu.vector_store %arg20[%c0_11, %c0_12], %10 {strides = array<i32>} : memref<8x32xf32, #tpu.memory_space<vmem>>, vector<8x32xf32>,
    %c0_13 = arith.constant 0 : index
    %c0_14 = arith.constant 0 : index
    %12 = vector.load %arg2[%c0_13, %c0_14] : memref<32x128xbf16, #tpu.memory_space<vmem>>, vector<32x128xbf16>
    %c0_i32 = arith.constant 0 : i32
    %c8_i32 = arith.constant 8 : i32
    %13 = arith.muli %c0_i32, %c8_i32 : i32
    %14 = tpu.assume_multiple %13, 8 : i32
    %15 = arith.index_cast %14 : i32 to index
    %c0_15 = arith.constant 0 : index
    %16 = vector.load %arg18[%15, %c0_15] : memref<64x128xf32, #tpu.memory_space<vmem>>, vector<8x128xf32>
    %c0_16 = arith.constant 0 : index
    %c0_17 = arith.constant 0 : index
    %17 = vector.load %arg19[%c0_16, %c0_17] : memref<8x32xf32, #tpu.memory_space<vmem>>, vector<8x32xf32>
    %18 = arith.truncf %17 : vector<8x32xf32> to vector<8x32xbf16>
    %cst_18 = arith.constant dense<0.000000e+00> : vector<8x128xf32>
    %19 = tpu.matmul %18, %12, %cst_18 {dimension_numbers = #tpu.dot_dimension_numbers<[1], [0], [0], [1], [0, 0, 1, 1], [], []>} : vector<8x32xbf16>, vector<32x128xbf16>, vector<8x128xf32> -> vector<8x128xf32>
    %20 = arith.addf %16, %19 : vector<8x128xf32>
    %21 = vector.extract_strided_slice %20 {offsets = [0, 0], sizes = [8, 96], strides = [1, 1]} : vector<8x128xf32> to vector<8x96xf32>
    %22 = arith.negf %21 : vector<8x96xf32>
    %23 = math.exp %22 : vector<8x96xf32>
    %cst_19 = arith.constant 1.000000e+00 : f32
    %24 = vector.broadcast %cst_19 : f32 to vector<8x96xf32>
    %25 = arith.addf %24, %23 : vector<8x96xf32>
    %26 = arith.divf %24, %25 : vector<8x96xf32>
    %27 = vector.extract_strided_slice %20 {offsets = [0, 96], sizes = [8, 32], strides = [1, 1]} : vector<8x128xf32> to vector<8x32xf32>
    %28 = math.tanh %27 : vector<8x32xf32>
    %29 = vector.extract_strided_slice %26 {offsets = [0, 0], sizes = [8, 32], strides = [1, 1]} : vector<8x96xf32> to vector<8x32xf32>
    %30 = vector.extract_strided_slice %26 {offsets = [0, 32], sizes = [8, 32], strides = [1, 1]} : vector<8x96xf32> to vector<8x32xf32>
    %31 = vector.extract_strided_slice %26 {offsets = [0, 64], sizes = [8, 32], strides = [1, 1]} : vector<8x96xf32> to vector<8x32xf32>
    %c0_20 = arith.constant 0 : index
    %c0_21 = arith.constant 0 : index
    %32 = vector.load %arg20[%c0_20, %c0_21] : memref<8x32xf32, #tpu.memory_space<vmem>>, vector<8x32xf32>
    %33 = arith.mulf %30, %32 : vector<8x32xf32>
    %34 = arith.mulf %29, %28 : vector<8x32xf32>
    %35 = arith.addf %33, %34 : vector<8x32xf32>
    %36 = math.tanh %35 : vector<8x32xf32>
    %37 = arith.mulf %31, %36 : vector<8x32xf32>
    %c0_22 = arith.constant 0 : index
    %c0_23 = arith.constant 0 : index
    %38 = vector.load %arg20[%c0_22, %c0_23] : memref<8x32xf32, #tpu.memory_space<vmem>>, vector<8x32xf32>
    tpu.vector_store %arg20[%c0_22, %c0_23], %35 {strides = array<i32>} : memref<8x32xf32, #tpu.memory_space<vmem>>, vector<8x32xf32>,
    %c0_24 = arith.constant 0 : index
    %c0_25 = arith.constant 0 : index
    %39 = vector.load %arg19[%c0_24, %c0_25] : memref<8x32xf32, #tpu.memory_space<vmem>>, vector<8x32xf32>
    tpu.vector_store %arg19[%c0_24, %c0_25], %37 {strides = array<i32>} : memref<8x32xf32, #tpu.memory_space<vmem>>, vector<8x32xf32>,
    %40 = arith.index_cast %14 : i32 to index
    %c0_26 = arith.constant 0 : index
    %41 = vector.load %arg17[%40, %c0_26] : memref<64x32xf32, #tpu.memory_space<vmem>>, vector<8x32xf32>
    tpu.vector_store %arg17[%40, %c0_26], %37 {strides = array<i32>} : memref<64x32xf32, #tpu.memory_space<vmem>>, vector<8x32xf32>,
    %c1_i32 = arith.constant 1 : i32
    %c8_i32_27 = arith.constant 8 : i32
    %42 = arith.muli %c1_i32, %c8_i32_27 : i32
    %43 = tpu.assume_multiple %42, 8 : i32
    %44 = arith.index_cast %43 : i32 to index
    %c0_28 = arith.constant 0 : index
    %45 = vector.load %arg18[%44, %c0_28] : memref<64x128xf32, #tpu.memory_space<vmem>>, vector<8x128xf32>
    %c0_29 = arith.constant 0 : index
    %c0_30 = arith.constant 0 : index
    %46 = vector.load %arg19[%c0_29, %c0_30] : memref<8x32xf32, #tpu.memory_space<vmem>>, vector<8x32xf32>
    %47 = arith.truncf %46 : vector<8x32xf32> to vector<8x32xbf16>
    %cst_31 = arith.constant dense<0.000000e+00> : vector<8x128xf32>
    %48 = tpu.matmul %47, %12, %cst_31 {dimension_numbers = #tpu.dot_dimension_numbers<[1], [0], [0], [1], [0, 0, 1, 1], [], []>} : vector<8x32xbf16>, vector<32x128xbf16>, vector<8x128xf32> -> vector<8x128xf32>
    %49 = arith.addf %45, %48 : vector<8x128xf32>
    %50 = vector.extract_strided_slice %49 {offsets = [0, 0], sizes = [8, 96], strides = [1, 1]} : vector<8x128xf32> to vector<8x96xf32>
    %51 = arith.negf %50 : vector<8x96xf32>
    %52 = math.exp %51 : vector<8x96xf32>
    %cst_32 = arith.constant 1.000000e+00 : f32
    %53 = vector.broadcast %cst_32 : f32 to vector<8x96xf32>
    %54 = arith.addf %53, %52 : vector<8x96xf32>
    %55 = arith.divf %53, %54 : vector<8x96xf32>
    %56 = vector.extract_strided_slice %49 {offsets = [0, 96], sizes = [8, 32], strides = [1, 1]} : vector<8x128xf32> to vector<8x32xf32>
    %57 = math.tanh %56 : vector<8x32xf32>
    %58 = vector.extract_strided_slice %55 {offsets = [0, 0], sizes = [8, 32], strides = [1, 1]} : vector<8x96xf32> to vector<8x32xf32>
    %59 = vector.extract_strided_slice %55 {offsets = [0, 32], sizes = [8, 32], strides = [1, 1]} : vector<8x96xf32> to vector<8x32xf32>
    %60 = vector.extract_strided_slice %55 {offsets = [0, 64], sizes = [8, 32], strides = [1, 1]} : vector<8x96xf32> to vector<8x32xf32>
    %c0_33 = arith.constant 0 : index
    %c0_34 = arith.constant 0 : index
    %61 = vector.load %arg20[%c0_33, %c0_34] : memref<8x32xf32, #tpu.memory_space<vmem>>, vector<8x32xf32>
    %62 = arith.mulf %59, %61 : vector<8x32xf32>
    %63 = arith.mulf %58, %57 : vector<8x32xf32>
    %64 = arith.addf %62, %63 : vector<8x32xf32>
    %65 = math.tanh %64 : vector<8x32xf32>
    %66 = arith.mulf %60, %65 : vector<8x32xf32>
    %c0_35 = arith.constant 0 : index
    %c0_36 = arith.constant 0 : index
    %67 = vector.load %arg20[%c0_35, %c0_36] : memref<8x32xf32, #tpu.memory_space<vmem>>, vector<8x32xf32>
    tpu.vector_store %arg20[%c0_35, %c0_36], %64 {strides = array<i32>} : memref<8x32xf32, #tpu.memory_space<vmem>>, vector<8x32xf32>,
    %c0_37 = arith.constant 0 : index
    %c0_38 = arith.constant 0 : index
    %68 = vector.load %arg19[%c0_37, %c0_38] : memref<8x32xf32, #tpu.memory_space<vmem>>, vector<8x32xf32>
    tpu.vector_store %arg19[%c0_37, %c0_38], %66 {strides = array<i32>} : memref<8x32xf32, #tpu.memory_space<vmem>>, vector<8x32xf32>,
    %69 = arith.index_cast %43 : i32 to index
    %c0_39 = arith.constant 0 : index
    %70 = vector.load %arg17[%69, %c0_39] : memref<64x32xf32, #tpu.memory_space<vmem>>, vector<8x32xf32>
    tpu.vector_store %arg17[%69, %c0_39], %66 {strides = array<i32>} : memref<64x32xf32, #tpu.memory_space<vmem>>, vector<8x32xf32>,
    %c2_i32 = arith.constant 2 : i32
    %c8_i32_40 = arith.constant 8 : i32
    %71 = arith.muli %c2_i32, %c8_i32_40 : i32
    %72 = tpu.assume_multiple %71, 8 : i32
    %73 = arith.index_cast %72 : i32 to index
    %c0_41 = arith.constant 0 : index
    %74 = vector.load %arg18[%73, %c0_41] : memref<64x128xf32, #tpu.memory_space<vmem>>, vector<8x128xf32>
    %c0_42 = arith.constant 0 : index
    %c0_43 = arith.constant 0 : index
    %75 = vector.load %arg19[%c0_42, %c0_43] : memref<8x32xf32, #tpu.memory_space<vmem>>, vector<8x32xf32>
    %76 = arith.truncf %75 : vector<8x32xf32> to vector<8x32xbf16>
    %cst_44 = arith.constant dense<0.000000e+00> : vector<8x128xf32>
    %77 = tpu.matmul %76, %12, %cst_44 {dimension_numbers = #tpu.dot_dimension_numbers<[1], [0], [0], [1], [0, 0, 1, 1], [], []>} : vector<8x32xbf16>, vector<32x128xbf16>, vector<8x128xf32> -> vector<8x128xf32>
    %78 = arith.addf %74, %77 : vector<8x128xf32>
    %79 = vector.extract_strided_slice %78 {offsets = [0, 0], sizes = [8, 96], strides = [1, 1]} : vector<8x128xf32> to vector<8x96xf32>
    %80 = arith.negf %79 : vector<8x96xf32>
    %81 = math.exp %80 : vector<8x96xf32>
    %cst_45 = arith.constant 1.000000e+00 : f32
    %82 = vector.broadcast %cst_45 : f32 to vector<8x96xf32>
    %83 = arith.addf %82, %81 : vector<8x96xf32>
    %84 = arith.divf %82, %83 : vector<8x96xf32>
    %85 = vector.extract_strided_slice %78 {offsets = [0, 96], sizes = [8, 32], strides = [1, 1]} : vector<8x128xf32> to vector<8x32xf32>
    %86 = math.tanh %85 : vector<8x32xf32>
    %87 = vector.extract_strided_slice %84 {offsets = [0, 0], sizes = [8, 32], strides = [1, 1]} : vector<8x96xf32> to vector<8x32xf32>
    %88 = vector.extract_strided_slice %84 {offsets = [0, 32], sizes = [8, 32], strides = [1, 1]} : vector<8x96xf32> to vector<8x32xf32>
    %89 = vector.extract_strided_slice %84 {offsets = [0, 64], sizes = [8, 32], strides = [1, 1]} : vector<8x96xf32> to vector<8x32xf32>
    %c0_46 = arith.constant 0 : index
    %c0_47 = arith.constant 0 : index
    %90 = vector.load %arg20[%c0_46, %c0_47] : memref<8x32xf32, #tpu.memory_space<vmem>>, vector<8x32xf32>
    %91 = arith.mulf %88, %90 : vector<8x32xf32>
    %92 = arith.mulf %87, %86 : vector<8x32xf32>
    %93 = arith.addf %91, %92 : vector<8x32xf32>
    %94 = math.tanh %93 : vector<8x32xf32>
    %95 = arith.mulf %89, %94 : vector<8x32xf32>
    %c0_48 = arith.constant 0 : index
    %c0_49 = arith.constant 0 : index
    %96 = vector.load %arg20[%c0_48, %c0_49] : memref<8x32xf32, #tpu.memory_space<vmem>>, vector<8x32xf32>
    tpu.vector_store %arg20[%c0_48, %c0_49], %93 {strides = array<i32>} : memref<8x32xf32, #tpu.memory_space<vmem>>, vector<8x32xf32>,
    %c0_50 = arith.constant 0 : index
    %c0_51 = arith.constant 0 : index
    %97 = vector.load %arg19[%c0_50, %c0_51] : memref<8x32xf32, #tpu.memory_space<vmem>>, vector<8x32xf32>
    tpu.vector_store %arg19[%c0_50, %c0_51], %95 {strides = array<i32>} : memref<8x32xf32, #tpu.memory_space<vmem>>, vector<8x32xf32>,
    %98 = arith.index_cast %72 : i32 to index
    %c0_52 = arith.constant 0 : index
    %99 = vector.load %arg17[%98, %c0_52] : memref<64x32xf32, #tpu.memory_space<vmem>>, vector<8x32xf32>
    tpu.vector_store %arg17[%98, %c0_52], %95 {strides = array<i32>} : memref<64x32xf32, #tpu.memory_space<vmem>>, vector<8x32xf32>,
    %c3_i32 = arith.constant 3 : i32
    %c8_i32_53 = arith.constant 8 : i32
    %100 = arith.muli %c3_i32, %c8_i32_53 : i32
    %101 = tpu.assume_multiple %100, 8 : i32
    %102 = arith.index_cast %101 : i32 to index
    %c0_54 = arith.constant 0 : index
    %103 = vector.load %arg18[%102, %c0_54] : memref<64x128xf32, #tpu.memory_space<vmem>>, vector<8x128xf32>
    %c0_55 = arith.constant 0 : index
    %c0_56 = arith.constant 0 : index
    %104 = vector.load %arg19[%c0_55, %c0_56] : memref<8x32xf32, #tpu.memory_space<vmem>>, vector<8x32xf32>
    %105 = arith.truncf %104 : vector<8x32xf32> to vector<8x32xbf16>
    %cst_57 = arith.constant dense<0.000000e+00> : vector<8x128xf32>
    %106 = tpu.matmul %105, %12, %cst_57 {dimension_numbers = #tpu.dot_dimension_numbers<[1], [0], [0], [1], [0, 0, 1, 1], [], []>} : vector<8x32xbf16>, vector<32x128xbf16>, vector<8x128xf32> -> vector<8x128xf32>
    %107 = arith.addf %103, %106 : vector<8x128xf32>
    %108 = vector.extract_strided_slice %107 {offsets = [0, 0], sizes = [8, 96], strides = [1, 1]} : vector<8x128xf32> to vector<8x96xf32>
    %109 = arith.negf %108 : vector<8x96xf32>
    %110 = math.exp %109 : vector<8x96xf32>
    %cst_58 = arith.constant 1.000000e+00 : f32
    %111 = vector.broadcast %cst_58 : f32 to vector<8x96xf32>
    %112 = arith.addf %111, %110 : vector<8x96xf32>
    %113 = arith.divf %111, %112 : vector<8x96xf32>
    %114 = vector.extract_strided_slice %107 {offsets = [0, 96], sizes = [8, 32], strides = [1, 1]} : vector<8x128xf32> to vector<8x32xf32>
    %115 = math.tanh %114 : vector<8x32xf32>
    %116 = vector.extract_strided_slice %113 {offsets = [0, 0], sizes = [8, 32], strides = [1, 1]} : vector<8x96xf32> to vector<8x32xf32>
    %117 = vector.extract_strided_slice %113 {offsets = [0, 32], sizes = [8, 32], strides = [1, 1]} : vector<8x96xf32> to vector<8x32xf32>
    %118 = vector.extract_strided_slice %113 {offsets = [0, 64], sizes = [8, 32], strides = [1, 1]} : vector<8x96xf32> to vector<8x32xf32>
    %c0_59 = arith.constant 0 : index
    %c0_60 = arith.constant 0 : index
    %119 = vector.load %arg20[%c0_59, %c0_60] : memref<8x32xf32, #tpu.memory_space<vmem>>, vector<8x32xf32>
    %120 = arith.mulf %117, %119 : vector<8x32xf32>
    %121 = arith.mulf %116, %115 : vector<8x32xf32>
    %122 = arith.addf %120, %121 : vector<8x32xf32>
    %123 = math.tanh %122 : vector<8x32xf32>
    %124 = arith.mulf %118, %123 : vector<8x32xf32>
    %c0_61 = arith.constant 0 : index
    %c0_62 = arith.constant 0 : index
    %125 = vector.load %arg20[%c0_61, %c0_62] : memref<8x32xf32, #tpu.memory_space<vmem>>, vector<8x32xf32>
    tpu.vector_store %arg20[%c0_61, %c0_62], %122 {strides = array<i32>} : memref<8x32xf32, #tpu.memory_space<vmem>>, vector<8x32xf32>,
    %c0_63 = arith.constant 0 : index
    %c0_64 = arith.constant 0 : index
    %126 = vector.load %arg19[%c0_63, %c0_64] : memref<8x32xf32, #tpu.memory_space<vmem>>, vector<8x32xf32>
    tpu.vector_store %arg19[%c0_63, %c0_64], %124 {strides = array<i32>} : memref<8x32xf32, #tpu.memory_space<vmem>>, vector<8x32xf32>,
    %127 = arith.index_cast %101 : i32 to index
    %c0_65 = arith.constant 0 : index
    %128 = vector.load %arg17[%127, %c0_65] : memref<64x32xf32, #tpu.memory_space<vmem>>, vector<8x32xf32>
    tpu.vector_store %arg17[%127, %c0_65], %124 {strides = array<i32>} : memref<64x32xf32, #tpu.memory_space<vmem>>, vector<8x32xf32>,
    %c4_i32 = arith.constant 4 : i32
    %c8_i32_66 = arith.constant 8 : i32
    %129 = arith.muli %c4_i32, %c8_i32_66 : i32
    %130 = tpu.assume_multiple %129, 8 : i32
    %131 = arith.index_cast %130 : i32 to index
    %c0_67 = arith.constant 0 : index
    %132 = vector.load %arg18[%131, %c0_67] : memref<64x128xf32, #tpu.memory_space<vmem>>, vector<8x128xf32>
    %c0_68 = arith.constant 0 : index
    %c0_69 = arith.constant 0 : index
    %133 = vector.load %arg19[%c0_68, %c0_69] : memref<8x32xf32, #tpu.memory_space<vmem>>, vector<8x32xf32>
    %134 = arith.truncf %133 : vector<8x32xf32> to vector<8x32xbf16>
    %cst_70 = arith.constant dense<0.000000e+00> : vector<8x128xf32>
    %135 = tpu.matmul %134, %12, %cst_70 {dimension_numbers = #tpu.dot_dimension_numbers<[1], [0], [0], [1], [0, 0, 1, 1], [], []>} : vector<8x32xbf16>, vector<32x128xbf16>, vector<8x128xf32> -> vector<8x128xf32>
    %136 = arith.addf %132, %135 : vector<8x128xf32>
    %137 = vector.extract_strided_slice %136 {offsets = [0, 0], sizes = [8, 96], strides = [1, 1]} : vector<8x128xf32> to vector<8x96xf32>
    %138 = arith.negf %137 : vector<8x96xf32>
    %139 = math.exp %138 : vector<8x96xf32>
    %cst_71 = arith.constant 1.000000e+00 : f32
    %140 = vector.broadcast %cst_71 : f32 to vector<8x96xf32>
    %141 = arith.addf %140, %139 : vector<8x96xf32>
    %142 = arith.divf %140, %141 : vector<8x96xf32>
    %143 = vector.extract_strided_slice %136 {offsets = [0, 96], sizes = [8, 32], strides = [1, 1]} : vector<8x128xf32> to vector<8x32xf32>
    %144 = math.tanh %143 : vector<8x32xf32>
    %145 = vector.extract_strided_slice %142 {offsets = [0, 0], sizes = [8, 32], strides = [1, 1]} : vector<8x96xf32> to vector<8x32xf32>
    %146 = vector.extract_strided_slice %142 {offsets = [0, 32], sizes = [8, 32], strides = [1, 1]} : vector<8x96xf32> to vector<8x32xf32>
    %147 = vector.extract_strided_slice %142 {offsets = [0, 64], sizes = [8, 32], strides = [1, 1]} : vector<8x96xf32> to vector<8x32xf32>
    %c0_72 = arith.constant 0 : index
    %c0_73 = arith.constant 0 : index
    %148 = vector.load %arg20[%c0_72, %c0_73] : memref<8x32xf32, #tpu.memory_space<vmem>>, vector<8x32xf32>
    %149 = arith.mulf %146, %148 : vector<8x32xf32>
    %150 = arith.mulf %145, %144 : vector<8x32xf32>
    %151 = arith.addf %149, %150 : vector<8x32xf32>
    %152 = math.tanh %151 : vector<8x32xf32>
    %153 = arith.mulf %147, %152 : vector<8x32xf32>
    %c0_74 = arith.constant 0 : index
    %c0_75 = arith.constant 0 : index
    %154 = vector.load %arg20[%c0_74, %c0_75] : memref<8x32xf32, #tpu.memory_space<vmem>>, vector<8x32xf32>
    tpu.vector_store %arg20[%c0_74, %c0_75], %151 {strides = array<i32>} : memref<8x32xf32, #tpu.memory_space<vmem>>, vector<8x32xf32>,
    %c0_76 = arith.constant 0 : index
    %c0_77 = arith.constant 0 : index
    %155 = vector.load %arg19[%c0_76, %c0_77] : memref<8x32xf32, #tpu.memory_space<vmem>>, vector<8x32xf32>
    tpu.vector_store %arg19[%c0_76, %c0_77], %153 {strides = array<i32>} : memref<8x32xf32, #tpu.memory_space<vmem>>, vector<8x32xf32>,
    %156 = arith.index_cast %130 : i32 to index
    %c0_78 = arith.constant 0 : index
    %157 = vector.load %arg17[%156, %c0_78] : memref<64x32xf32, #tpu.memory_space<vmem>>, vector<8x32xf32>
    tpu.vector_store %arg17[%156, %c0_78], %153 {strides = array<i32>} : memref<64x32xf32, #tpu.memory_space<vmem>>, vector<8x32xf32>,
    %c5_i32 = arith.constant 5 : i32
    %c8_i32_79 = arith.constant 8 : i32
    %158 = arith.muli %c5_i32, %c8_i32_79 : i32
    %159 = tpu.assume_multiple %158, 8 : i32
    %160 = arith.index_cast %159 : i32 to index
    %c0_80 = arith.constant 0 : index
    %161 = vector.load %arg18[%160, %c0_80] : memref<64x128xf32, #tpu.memory_space<vmem>>, vector<8x128xf32>
    %c0_81 = arith.constant 0 : index
    %c0_82 = arith.constant 0 : index
    %162 = vector.load %arg19[%c0_81, %c0_82] : memref<8x32xf32, #tpu.memory_space<vmem>>, vector<8x32xf32>
    %163 = arith.truncf %162 : vector<8x32xf32> to vector<8x32xbf16>
    %cst_83 = arith.constant dense<0.000000e+00> : vector<8x128xf32>
    %164 = tpu.matmul %163, %12, %cst_83 {dimension_numbers = #tpu.dot_dimension_numbers<[1], [0], [0], [1], [0, 0, 1, 1], [], []>} : vector<8x32xbf16>, vector<32x128xbf16>, vector<8x128xf32> -> vector<8x128xf32>
    %165 = arith.addf %161, %164 : vector<8x128xf32>
    %166 = vector.extract_strided_slice %165 {offsets = [0, 0], sizes = [8, 96], strides = [1, 1]} : vector<8x128xf32> to vector<8x96xf32>
    %167 = arith.negf %166 : vector<8x96xf32>
    %168 = math.exp %167 : vector<8x96xf32>
    %cst_84 = arith.constant 1.000000e+00 : f32
    %169 = vector.broadcast %cst_84 : f32 to vector<8x96xf32>
    %170 = arith.addf %169, %168 : vector<8x96xf32>
    %171 = arith.divf %169, %170 : vector<8x96xf32>
    %172 = vector.extract_strided_slice %165 {offsets = [0, 96], sizes = [8, 32], strides = [1, 1]} : vector<8x128xf32> to vector<8x32xf32>
    %173 = math.tanh %172 : vector<8x32xf32>
    %174 = vector.extract_strided_slice %171 {offsets = [0, 0], sizes = [8, 32], strides = [1, 1]} : vector<8x96xf32> to vector<8x32xf32>
    %175 = vector.extract_strided_slice %171 {offsets = [0, 32], sizes = [8, 32], strides = [1, 1]} : vector<8x96xf32> to vector<8x32xf32>
    %176 = vector.extract_strided_slice %171 {offsets = [0, 64], sizes = [8, 32], strides = [1, 1]} : vector<8x96xf32> to vector<8x32xf32>
    %c0_85 = arith.constant 0 : index
    %c0_86 = arith.constant 0 : index
    %177 = vector.load %arg20[%c0_85, %c0_86] : memref<8x32xf32, #tpu.memory_space<vmem>>, vector<8x32xf32>
    %178 = arith.mulf %175, %177 : vector<8x32xf32>
    %179 = arith.mulf %174, %173 : vector<8x32xf32>
    %180 = arith.addf %178, %179 : vector<8x32xf32>
    %181 = math.tanh %180 : vector<8x32xf32>
    %182 = arith.mulf %176, %181 : vector<8x32xf32>
    %c0_87 = arith.constant 0 : index
    %c0_88 = arith.constant 0 : index
    %183 = vector.load %arg20[%c0_87, %c0_88] : memref<8x32xf32, #tpu.memory_space<vmem>>, vector<8x32xf32>
    tpu.vector_store %arg20[%c0_87, %c0_88], %180 {strides = array<i32>} : memref<8x32xf32, #tpu.memory_space<vmem>>, vector<8x32xf32>,
    %c0_89 = arith.constant 0 : index
    %c0_90 = arith.constant 0 : index
    %184 = vector.load %arg19[%c0_89, %c0_90] : memref<8x32xf32, #tpu.memory_space<vmem>>, vector<8x32xf32>
    tpu.vector_store %arg19[%c0_89, %c0_90], %182 {strides = array<i32>} : memref<8x32xf32, #tpu.memory_space<vmem>>, vector<8x32xf32>,
    %185 = arith.index_cast %159 : i32 to index
    %c0_91 = arith.constant 0 : index
    %186 = vector.load %arg17[%185, %c0_91] : memref<64x32xf32, #tpu.memory_space<vmem>>, vector<8x32xf32>
    tpu.vector_store %arg17[%185, %c0_91], %182 {strides = array<i32>} : memref<64x32xf32, #tpu.memory_space<vmem>>, vector<8x32xf32>,
    %c6_i32 = arith.constant 6 : i32
    %c8_i32_92 = arith.constant 8 : i32
    %187 = arith.muli %c6_i32, %c8_i32_92 : i32
    %188 = tpu.assume_multiple %187, 8 : i32
    %189 = arith.index_cast %188 : i32 to index
    %c0_93 = arith.constant 0 : index
    %190 = vector.load %arg18[%189, %c0_93] : memref<64x128xf32, #tpu.memory_space<vmem>>, vector<8x128xf32>
    %c0_94 = arith.constant 0 : index
    %c0_95 = arith.constant 0 : index
    %191 = vector.load %arg19[%c0_94, %c0_95] : memref<8x32xf32, #tpu.memory_space<vmem>>, vector<8x32xf32>
    %192 = arith.truncf %191 : vector<8x32xf32> to vector<8x32xbf16>
    %cst_96 = arith.constant dense<0.000000e+00> : vector<8x128xf32>
    %193 = tpu.matmul %192, %12, %cst_96 {dimension_numbers = #tpu.dot_dimension_numbers<[1], [0], [0], [1], [0, 0, 1, 1], [], []>} : vector<8x32xbf16>, vector<32x128xbf16>, vector<8x128xf32> -> vector<8x128xf32>
    %194 = arith.addf %190, %193 : vector<8x128xf32>
    %195 = vector.extract_strided_slice %194 {offsets = [0, 0], sizes = [8, 96], strides = [1, 1]} : vector<8x128xf32> to vector<8x96xf32>
    %196 = arith.negf %195 : vector<8x96xf32>
    %197 = math.exp %196 : vector<8x96xf32>
    %cst_97 = arith.constant 1.000000e+00 : f32
    %198 = vector.broadcast %cst_97 : f32 to vector<8x96xf32>
    %199 = arith.addf %198, %197 : vector<8x96xf32>
    %200 = arith.divf %198, %199 : vector<8x96xf32>
    %201 = vector.extract_strided_slice %194 {offsets = [0, 96], sizes = [8, 32], strides = [1, 1]} : vector<8x128xf32> to vector<8x32xf32>
    %202 = math.tanh %201 : vector<8x32xf32>
    %203 = vector.extract_strided_slice %200 {offsets = [0, 0], sizes = [8, 32], strides = [1, 1]} : vector<8x96xf32> to vector<8x32xf32>
    %204 = vector.extract_strided_slice %200 {offsets = [0, 32], sizes = [8, 32], strides = [1, 1]} : vector<8x96xf32> to vector<8x32xf32>
    %205 = vector.extract_strided_slice %200 {offsets = [0, 64], sizes = [8, 32], strides = [1, 1]} : vector<8x96xf32> to vector<8x32xf32>
    %c0_98 = arith.constant 0 : index
    %c0_99 = arith.constant 0 : index
    %206 = vector.load %arg20[%c0_98, %c0_99] : memref<8x32xf32, #tpu.memory_space<vmem>>, vector<8x32xf32>
    %207 = arith.mulf %204, %206 : vector<8x32xf32>
    %208 = arith.mulf %203, %202 : vector<8x32xf32>
    %209 = arith.addf %207, %208 : vector<8x32xf32>
    %210 = math.tanh %209 : vector<8x32xf32>
    %211 = arith.mulf %205, %210 : vector<8x32xf32>
    %c0_100 = arith.constant 0 : index
    %c0_101 = arith.constant 0 : index
    %212 = vector.load %arg20[%c0_100, %c0_101] : memref<8x32xf32, #tpu.memory_space<vmem>>, vector<8x32xf32>
    tpu.vector_store %arg20[%c0_100, %c0_101], %209 {strides = array<i32>} : memref<8x32xf32, #tpu.memory_space<vmem>>, vector<8x32xf32>,
    %c0_102 = arith.constant 0 : index
    %c0_103 = arith.constant 0 : index
    %213 = vector.load %arg19[%c0_102, %c0_103] : memref<8x32xf32, #tpu.memory_space<vmem>>, vector<8x32xf32>
    tpu.vector_store %arg19[%c0_102, %c0_103], %211 {strides = array<i32>} : memref<8x32xf32, #tpu.memory_space<vmem>>, vector<8x32xf32>,
    %214 = arith.index_cast %188 : i32 to index
    %c0_104 = arith.constant 0 : index
    %215 = vector.load %arg17[%214, %c0_104] : memref<64x32xf32, #tpu.memory_space<vmem>>, vector<8x32xf32>
    tpu.vector_store %arg17[%214, %c0_104], %211 {strides = array<i32>} : memref<64x32xf32, #tpu.memory_space<vmem>>, vector<8x32xf32>,
    %c7_i32 = arith.constant 7 : i32
    %c8_i32_105 = arith.constant 8 : i32
    %216 = arith.muli %c7_i32, %c8_i32_105 : i32
    %217 = tpu.assume_multiple %216, 8 : i32
    %218 = arith.index_cast %217 : i32 to index
    %c0_106 = arith.constant 0 : index
    %219 = vector.load %arg18[%218, %c0_106] : memref<64x128xf32, #tpu.memory_space<vmem>>, vector<8x128xf32>
    %c0_107 = arith.constant 0 : index
    %c0_108 = arith.constant 0 : index
    %220 = vector.load %arg19[%c0_107, %c0_108] : memref<8x32xf32, #tpu.memory_space<vmem>>, vector<8x32xf32>
    %221 = arith.truncf %220 : vector<8x32xf32> to vector<8x32xbf16>
    %cst_109 = arith.constant dense<0.000000e+00> : vector<8x128xf32>
    %222 = tpu.matmul %221, %12, %cst_109 {dimension_numbers = #tpu.dot_dimension_numbers<[1], [0], [0], [1], [0, 0, 1, 1], [], []>} : vector<8x32xbf16>, vector<32x128xbf16>, vector<8x128xf32> -> vector<8x128xf32>
    %223 = arith.addf %219, %222 : vector<8x128xf32>
    %224 = vector.extract_strided_slice %223 {offsets = [0, 0], sizes = [8, 96], strides = [1, 1]} : vector<8x128xf32> to vector<8x96xf32>
    %225 = arith.negf %224 : vector<8x96xf32>
    %226 = math.exp %225 : vector<8x96xf32>
    %cst_110 = arith.constant 1.000000e+00 : f32
    %227 = vector.broadcast %cst_110 : f32 to vector<8x96xf32>
    %228 = arith.addf %227, %226 : vector<8x96xf32>
    %229 = arith.divf %227, %228 : vector<8x96xf32>
    %230 = vector.extract_strided_slice %223 {offsets = [0, 96], sizes = [8, 32], strides = [1, 1]} : vector<8x128xf32> to vector<8x32xf32>
    %231 = math.tanh %230 : vector<8x32xf32>
    %232 = vector.extract_strided_slice %229 {offsets = [0, 0], sizes = [8, 32], strides = [1, 1]} : vector<8x96xf32> to vector<8x32xf32>
    %233 = vector.extract_strided_slice %229 {offsets = [0, 32], sizes = [8, 32], strides = [1, 1]} : vector<8x96xf32> to vector<8x32xf32>
    %234 = vector.extract_strided_slice %229 {offsets = [0, 64], sizes = [8, 32], strides = [1, 1]} : vector<8x96xf32> to vector<8x32xf32>
    %c0_111 = arith.constant 0 : index
    %c0_112 = arith.constant 0 : index
    %235 = vector.load %arg20[%c0_111, %c0_112] : memref<8x32xf32, #tpu.memory_space<vmem>>, vector<8x32xf32>
    %236 = arith.mulf %233, %235 : vector<8x32xf32>
    %237 = arith.mulf %232, %231 : vector<8x32xf32>
    %238 = arith.addf %236, %237 : vector<8x32xf32>
    %239 = math.tanh %238 : vector<8x32xf32>
    %240 = arith.mulf %234, %239 : vector<8x32xf32>
    %c0_113 = arith.constant 0 : index
    %c0_114 = arith.constant 0 : index
    %241 = vector.load %arg20[%c0_113, %c0_114] : memref<8x32xf32, #tpu.memory_space<vmem>>, vector<8x32xf32>
    tpu.vector_store %arg20[%c0_113, %c0_114], %238 {strides = array<i32>} : memref<8x32xf32, #tpu.memory_space<vmem>>, vector<8x32xf32>,
    %c0_115 = arith.constant 0 : index
    %c0_116 = arith.constant 0 : index
    %242 = vector.load %arg19[%c0_115, %c0_116] : memref<8x32xf32, #tpu.memory_space<vmem>>, vector<8x32xf32>
    tpu.vector_store %arg19[%c0_115, %c0_116], %240 {strides = array<i32>} : memref<8x32xf32, #tpu.memory_space<vmem>>, vector<8x32xf32>,
    %243 = arith.index_cast %217 : i32 to index
    %c0_117 = arith.constant 0 : index
    %244 = vector.load %arg17[%243, %c0_117] : memref<64x32xf32, #tpu.memory_space<vmem>>, vector<8x32xf32>
    tpu.vector_store %arg17[%243, %c0_117], %240 {strides = array<i32>} : memref<64x32xf32, #tpu.memory_space<vmem>>, vector<8x32xf32>,
    %c8_i32_118 = arith.constant 8 : i32
    %c0_119 = arith.constant 0 : index
    %c0_120 = arith.constant 0 : index
    %245 = vector.load %arg19[%c0_119, %c0_120] : memref<8x32xf32, #tpu.memory_space<vmem>>, vector<8x32xf32>
    %c0_121 = arith.constant 0 : index
    %c0_122 = arith.constant 0 : index
    %c0_123 = arith.constant 0 : index
    %246 = vector.load %arg15[%c0_121, %c0_122, %c0_123] : memref<3x8x32xf32, #tpu.memory_space<vmem>>, vector<1x8x32xf32>
    %247 = vector.shape_cast %246 : vector<1x8x32xf32> to vector<8x32xf32>
    %248 = vector.shape_cast %245 : vector<8x32xf32> to vector<1x8x32xf32>
    tpu.vector_store %arg15[%c0_121, %c0_122, %c0_123], %248 {strides = array<i32>} : memref<3x8x32xf32, #tpu.memory_space<vmem>>, vector<1x8x32xf32>,
    %c0_124 = arith.constant 0 : index
    %c0_125 = arith.constant 0 : index
    %249 = vector.load %arg20[%c0_124, %c0_125] : memref<8x32xf32, #tpu.memory_space<vmem>>, vector<8x32xf32>
    %c0_126 = arith.constant 0 : index
    %c0_127 = arith.constant 0 : index
    %c0_128 = arith.constant 0 : index
    %250 = vector.load %arg16[%c0_126, %c0_127, %c0_128] : memref<3x8x32xf32, #tpu.memory_space<vmem>>, vector<1x8x32xf32>
    %251 = vector.shape_cast %250 : vector<1x8x32xf32> to vector<8x32xf32>
    %252 = vector.shape_cast %249 : vector<8x32xf32> to vector<1x8x32xf32>
    tpu.vector_store %arg16[%c0_126, %c0_127, %c0_128], %252 {strides = array<i32>} : memref<3x8x32xf32, #tpu.memory_space<vmem>>, vector<1x8x32xf32>,
    %c0_129 = arith.constant 0 : index
    %c0_130 = arith.constant 0 : index
    %253 = vector.load %arg17[%c0_129, %c0_130] : memref<64x32xf32, #tpu.memory_space<vmem>>, vector<64x32xf32>
    %254 = arith.truncf %253 : vector<64x32xf32> to vector<64x32xbf16>
    %c0_131 = arith.constant 0 : index
    %c0_132 = arith.constant 0 : index
    %255 = vector.load %arg4[%c0_131, %c0_132] : memref<32x128xbf16, #tpu.memory_space<vmem>>, vector<32x128xbf16>
    %cst_133 = arith.constant dense<0.000000e+00> : vector<64x128xf32>
    %256 = tpu.matmul %254, %255, %cst_133 {dimension_numbers = #tpu.dot_dimension_numbers<[1], [0], [0], [1], [0, 0, 1, 1], [], []>} : vector<64x32xbf16>, vector<32x128xbf16>, vector<64x128xf32> -> vector<64x128xf32>
    %c0_134 = arith.constant 0 : index
    %c0_135 = arith.constant 0 : index
    %257 = vector.load %arg6[%c0_134, %c0_135] : memref<1x128xf32, #tpu.memory_space<vmem>>, vector<1x128xf32>
    %258 = vector.broadcast %257 : vector<1x128xf32> to vector<64x128xf32>
    %259 = arith.addf %256, %258 : vector<64x128xf32>
    %c0_136 = arith.constant 0 : index
    %c0_137 = arith.constant 0 : index
    %260 = vector.load %arg18[%c0_136, %c0_137] : memref<64x128xf32, #tpu.memory_space<vmem>>, vector<64x128xf32>
    tpu.vector_store %arg18[%c0_136, %c0_137], %259 {strides = array<i32>} : memref<64x128xf32, #tpu.memory_space<vmem>>, vector<64x128xf32>,
    %cst_138 = arith.constant 0.000000e+00 : f32
    %261 = vector.broadcast %cst_138 : f32 to vector<8x32xf32>
    %c0_139 = arith.constant 0 : index
    %c0_140 = arith.constant 0 : index
    %262 = vector.load %arg19[%c0_139, %c0_140] : memref<8x32xf32, #tpu.memory_space<vmem>>, vector<8x32xf32>
    tpu.vector_store %arg19[%c0_139, %c0_140], %261 {strides = array<i32>} : memref<8x32xf32, #tpu.memory_space<vmem>>, vector<8x32xf32>,
    %cst_141 = arith.constant 0.000000e+00 : f32
    %263 = vector.broadcast %cst_141 : f32 to vector<8x32xf32>
    %c0_142 = arith.constant 0 : index
    %c0_143 = arith.constant 0 : index
    %264 = vector.load %arg20[%c0_142, %c0_143] : memref<8x32xf32, #tpu.memory_space<vmem>>, vector<8x32xf32>
    tpu.vector_store %arg20[%c0_142, %c0_143], %263 {strides = array<i32>} : memref<8x32xf32, #tpu.memory_space<vmem>>, vector<8x32xf32>,
    %c0_144 = arith.constant 0 : index
    %c0_145 = arith.constant 0 : index
    %265 = vector.load %arg5[%c0_144, %c0_145] : memref<32x128xbf16, #tpu.memory_space<vmem>>, vector<32x128xbf16>
    %c0_i32_146 = arith.constant 0 : i32
    %c8_i32_147 = arith.constant 8 : i32
    %266 = arith.muli %c0_i32_146, %c8_i32_147 : i32
    %267 = tpu.assume_multiple %266, 8 : i32
    %268 = arith.index_cast %267 : i32 to index
    %c0_148 = arith.constant 0 : index
    %269 = vector.load %arg18[%268, %c0_148] : memref<64x128xf32, #tpu.memory_space<vmem>>, vector<8x128xf32>
    %c0_149 = arith.constant 0 : index
    %c0_150 = arith.constant 0 : index
    %270 = vector.load %arg19[%c0_149, %c0_150] : memref<8x32xf32, #tpu.memory_space<vmem>>, vector<8x32xf32>
    %271 = arith.truncf %270 : vector<8x32xf32> to vector<8x32xbf16>
    %cst_151 = arith.constant dense<0.000000e+00> : vector<8x128xf32>
    %272 = tpu.matmul %271, %265, %cst_151 {dimension_numbers = #tpu.dot_dimension_numbers<[1], [0], [0], [1], [0, 0, 1, 1], [], []>} : vector<8x32xbf16>, vector<32x128xbf16>, vector<8x128xf32> -> vector<8x128xf32>
    %273 = arith.addf %269, %272 : vector<8x128xf32>
    %274 = vector.extract_strided_slice %273 {offsets = [0, 0], sizes = [8, 96], strides = [1, 1]} : vector<8x128xf32> to vector<8x96xf32>
    %275 = arith.negf %274 : vector<8x96xf32>
    %276 = math.exp %275 : vector<8x96xf32>
    %cst_152 = arith.constant 1.000000e+00 : f32
    %277 = vector.broadcast %cst_152 : f32 to vector<8x96xf32>
    %278 = arith.addf %277, %276 : vector<8x96xf32>
    %279 = arith.divf %277, %278 : vector<8x96xf32>
    %280 = vector.extract_strided_slice %273 {offsets = [0, 96], sizes = [8, 32], strides = [1, 1]} : vector<8x128xf32> to vector<8x32xf32>
    %281 = math.tanh %280 : vector<8x32xf32>
    %282 = vector.extract_strided_slice %279 {offsets = [0, 0], sizes = [8, 32], strides = [1, 1]} : vector<8x96xf32> to vector<8x32xf32>
    %283 = vector.extract_strided_slice %279 {offsets = [0, 32], sizes = [8, 32], strides = [1, 1]} : vector<8x96xf32> to vector<8x32xf32>
    %284 = vector.extract_strided_slice %279 {offsets = [0, 64], sizes = [8, 32], strides = [1, 1]} : vector<8x96xf32> to vector<8x32xf32>
    %c0_153 = arith.constant 0 : index
    %c0_154 = arith.constant 0 : index
    %285 = vector.load %arg20[%c0_153, %c0_154] : memref<8x32xf32, #tpu.memory_space<vmem>>, vector<8x32xf32>
    %286 = arith.mulf %283, %285 : vector<8x32xf32>
    %287 = arith.mulf %282, %281 : vector<8x32xf32>
    %288 = arith.addf %286, %287 : vector<8x32xf32>
    %289 = math.tanh %288 : vector<8x32xf32>
    %290 = arith.mulf %284, %289 : vector<8x32xf32>
    %c0_155 = arith.constant 0 : index
    %c0_156 = arith.constant 0 : index
    %291 = vector.load %arg20[%c0_155, %c0_156] : memref<8x32xf32, #tpu.memory_space<vmem>>, vector<8x32xf32>
    tpu.vector_store %arg20[%c0_155, %c0_156], %288 {strides = array<i32>} : memref<8x32xf32, #tpu.memory_space<vmem>>, vector<8x32xf32>,
    %c0_157 = arith.constant 0 : index
    %c0_158 = arith.constant 0 : index
    %292 = vector.load %arg19[%c0_157, %c0_158] : memref<8x32xf32, #tpu.memory_space<vmem>>, vector<8x32xf32>
    tpu.vector_store %arg19[%c0_157, %c0_158], %290 {strides = array<i32>} : memref<8x32xf32, #tpu.memory_space<vmem>>, vector<8x32xf32>,
    %293 = arith.index_cast %267 : i32 to index
    %c0_159 = arith.constant 0 : index
    %294 = vector.load %arg17[%293, %c0_159] : memref<64x32xf32, #tpu.memory_space<vmem>>, vector<8x32xf32>
    tpu.vector_store %arg17[%293, %c0_159], %290 {strides = array<i32>} : memref<64x32xf32, #tpu.memory_space<vmem>>, vector<8x32xf32>,
    %c1_i32_160 = arith.constant 1 : i32
    %c8_i32_161 = arith.constant 8 : i32
    %295 = arith.muli %c1_i32_160, %c8_i32_161 : i32
    %296 = tpu.assume_multiple %295, 8 : i32
    %297 = arith.index_cast %296 : i32 to index
    %c0_162 = arith.constant 0 : index
    %298 = vector.load %arg18[%297, %c0_162] : memref<64x128xf32, #tpu.memory_space<vmem>>, vector<8x128xf32>
    %c0_163 = arith.constant 0 : index
    %c0_164 = arith.constant 0 : index
    %299 = vector.load %arg19[%c0_163, %c0_164] : memref<8x32xf32, #tpu.memory_space<vmem>>, vector<8x32xf32>
    %300 = arith.truncf %299 : vector<8x32xf32> to vector<8x32xbf16>
    %cst_165 = arith.constant dense<0.000000e+00> : vector<8x128xf32>
    %301 = tpu.matmul %300, %265, %cst_165 {dimension_numbers = #tpu.dot_dimension_numbers<[1], [0], [0], [1], [0, 0, 1, 1], [], []>} : vector<8x32xbf16>, vector<32x128xbf16>, vector<8x128xf32> -> vector<8x128xf32>
    %302 = arith.addf %298, %301 : vector<8x128xf32>
    %303 = vector.extract_strided_slice %302 {offsets = [0, 0], sizes = [8, 96], strides = [1, 1]} : vector<8x128xf32> to vector<8x96xf32>
    %304 = arith.negf %303 : vector<8x96xf32>
    %305 = math.exp %304 : vector<8x96xf32>
    %cst_166 = arith.constant 1.000000e+00 : f32
    %306 = vector.broadcast %cst_166 : f32 to vector<8x96xf32>
    %307 = arith.addf %306, %305 : vector<8x96xf32>
    %308 = arith.divf %306, %307 : vector<8x96xf32>
    %309 = vector.extract_strided_slice %302 {offsets = [0, 96], sizes = [8, 32], strides = [1, 1]} : vector<8x128xf32> to vector<8x32xf32>
    %310 = math.tanh %309 : vector<8x32xf32>
    %311 = vector.extract_strided_slice %308 {offsets = [0, 0], sizes = [8, 32], strides = [1, 1]} : vector<8x96xf32> to vector<8x32xf32>
    %312 = vector.extract_strided_slice %308 {offsets = [0, 32], sizes = [8, 32], strides = [1, 1]} : vector<8x96xf32> to vector<8x32xf32>
    %313 = vector.extract_strided_slice %308 {offsets = [0, 64], sizes = [8, 32], strides = [1, 1]} : vector<8x96xf32> to vector<8x32xf32>
    %c0_167 = arith.constant 0 : index
    %c0_168 = arith.constant 0 : index
    %314 = vector.load %arg20[%c0_167, %c0_168] : memref<8x32xf32, #tpu.memory_space<vmem>>, vector<8x32xf32>
    %315 = arith.mulf %312, %314 : vector<8x32xf32>
    %316 = arith.mulf %311, %310 : vector<8x32xf32>
    %317 = arith.addf %315, %316 : vector<8x32xf32>
    %318 = math.tanh %317 : vector<8x32xf32>
    %319 = arith.mulf %313, %318 : vector<8x32xf32>
    %c0_169 = arith.constant 0 : index
    %c0_170 = arith.constant 0 : index
    %320 = vector.load %arg20[%c0_169, %c0_170] : memref<8x32xf32, #tpu.memory_space<vmem>>, vector<8x32xf32>
    tpu.vector_store %arg20[%c0_169, %c0_170], %317 {strides = array<i32>} : memref<8x32xf32, #tpu.memory_space<vmem>>, vector<8x32xf32>,
    %c0_171 = arith.constant 0 : index
    %c0_172 = arith.constant 0 : index
    %321 = vector.load %arg19[%c0_171, %c0_172] : memref<8x32xf32, #tpu.memory_space<vmem>>, vector<8x32xf32>
    tpu.vector_store %arg19[%c0_171, %c0_172], %319 {strides = array<i32>} : memref<8x32xf32, #tpu.memory_space<vmem>>, vector<8x32xf32>,
    %322 = arith.index_cast %296 : i32 to index
    %c0_173 = arith.constant 0 : index
    %323 = vector.load %arg17[%322, %c0_173] : memref<64x32xf32, #tpu.memory_space<vmem>>, vector<8x32xf32>
    tpu.vector_store %arg17[%322, %c0_173], %319 {strides = array<i32>} : memref<64x32xf32, #tpu.memory_space<vmem>>, vector<8x32xf32>,
    %c2_i32_174 = arith.constant 2 : i32
    %c8_i32_175 = arith.constant 8 : i32
    %324 = arith.muli %c2_i32_174, %c8_i32_175 : i32
    %325 = tpu.assume_multiple %324, 8 : i32
    %326 = arith.index_cast %325 : i32 to index
    %c0_176 = arith.constant 0 : index
    %327 = vector.load %arg18[%326, %c0_176] : memref<64x128xf32, #tpu.memory_space<vmem>>, vector<8x128xf32>
    %c0_177 = arith.constant 0 : index
    %c0_178 = arith.constant 0 : index
    %328 = vector.load %arg19[%c0_177, %c0_178] : memref<8x32xf32, #tpu.memory_space<vmem>>, vector<8x32xf32>
    %329 = arith.truncf %328 : vector<8x32xf32> to vector<8x32xbf16>
    %cst_179 = arith.constant dense<0.000000e+00> : vector<8x128xf32>
    %330 = tpu.matmul %329, %265, %cst_179 {dimension_numbers = #tpu.dot_dimension_numbers<[1], [0], [0], [1], [0, 0, 1, 1], [], []>} : vector<8x32xbf16>, vector<32x128xbf16>, vector<8x128xf32> -> vector<8x128xf32>
    %331 = arith.addf %327, %330 : vector<8x128xf32>
    %332 = vector.extract_strided_slice %331 {offsets = [0, 0], sizes = [8, 96], strides = [1, 1]} : vector<8x128xf32> to vector<8x96xf32>
    %333 = arith.negf %332 : vector<8x96xf32>
    %334 = math.exp %333 : vector<8x96xf32>
    %cst_180 = arith.constant 1.000000e+00 : f32
    %335 = vector.broadcast %cst_180 : f32 to vector<8x96xf32>
    %336 = arith.addf %335, %334 : vector<8x96xf32>
    %337 = arith.divf %335, %336 : vector<8x96xf32>
    %338 = vector.extract_strided_slice %331 {offsets = [0, 96], sizes = [8, 32], strides = [1, 1]} : vector<8x128xf32> to vector<8x32xf32>
    %339 = math.tanh %338 : vector<8x32xf32>
    %340 = vector.extract_strided_slice %337 {offsets = [0, 0], sizes = [8, 32], strides = [1, 1]} : vector<8x96xf32> to vector<8x32xf32>
    %341 = vector.extract_strided_slice %337 {offsets = [0, 32], sizes = [8, 32], strides = [1, 1]} : vector<8x96xf32> to vector<8x32xf32>
    %342 = vector.extract_strided_slice %337 {offsets = [0, 64], sizes = [8, 32], strides = [1, 1]} : vector<8x96xf32> to vector<8x32xf32>
    %c0_181 = arith.constant 0 : index
    %c0_182 = arith.constant 0 : index
    %343 = vector.load %arg20[%c0_181, %c0_182] : memref<8x32xf32, #tpu.memory_space<vmem>>, vector<8x32xf32>
    %344 = arith.mulf %341, %343 : vector<8x32xf32>
    %345 = arith.mulf %340, %339 : vector<8x32xf32>
    %346 = arith.addf %344, %345 : vector<8x32xf32>
    %347 = math.tanh %346 : vector<8x32xf32>
    %348 = arith.mulf %342, %347 : vector<8x32xf32>
    %c0_183 = arith.constant 0 : index
    %c0_184 = arith.constant 0 : index
    %349 = vector.load %arg20[%c0_183, %c0_184] : memref<8x32xf32, #tpu.memory_space<vmem>>, vector<8x32xf32>
    tpu.vector_store %arg20[%c0_183, %c0_184], %346 {strides = array<i32>} : memref<8x32xf32, #tpu.memory_space<vmem>>, vector<8x32xf32>,
    %c0_185 = arith.constant 0 : index
    %c0_186 = arith.constant 0 : index
    %350 = vector.load %arg19[%c0_185, %c0_186] : memref<8x32xf32, #tpu.memory_space<vmem>>, vector<8x32xf32>
    tpu.vector_store %arg19[%c0_185, %c0_186], %348 {strides = array<i32>} : memref<8x32xf32, #tpu.memory_space<vmem>>, vector<8x32xf32>,
    %351 = arith.index_cast %325 : i32 to index
    %c0_187 = arith.constant 0 : index
    %352 = vector.load %arg17[%351, %c0_187] : memref<64x32xf32, #tpu.memory_space<vmem>>, vector<8x32xf32>
    tpu.vector_store %arg17[%351, %c0_187], %348 {strides = array<i32>} : memref<64x32xf32, #tpu.memory_space<vmem>>, vector<8x32xf32>,
    %c3_i32_188 = arith.constant 3 : i32
    %c8_i32_189 = arith.constant 8 : i32
    %353 = arith.muli %c3_i32_188, %c8_i32_189 : i32
    %354 = tpu.assume_multiple %353, 8 : i32
    %355 = arith.index_cast %354 : i32 to index
    %c0_190 = arith.constant 0 : index
    %356 = vector.load %arg18[%355, %c0_190] : memref<64x128xf32, #tpu.memory_space<vmem>>, vector<8x128xf32>
    %c0_191 = arith.constant 0 : index
    %c0_192 = arith.constant 0 : index
    %357 = vector.load %arg19[%c0_191, %c0_192] : memref<8x32xf32, #tpu.memory_space<vmem>>, vector<8x32xf32>
    %358 = arith.truncf %357 : vector<8x32xf32> to vector<8x32xbf16>
    %cst_193 = arith.constant dense<0.000000e+00> : vector<8x128xf32>
    %359 = tpu.matmul %358, %265, %cst_193 {dimension_numbers = #tpu.dot_dimension_numbers<[1], [0], [0], [1], [0, 0, 1, 1], [], []>} : vector<8x32xbf16>, vector<32x128xbf16>, vector<8x128xf32> -> vector<8x128xf32>
    %360 = arith.addf %356, %359 : vector<8x128xf32>
    %361 = vector.extract_strided_slice %360 {offsets = [0, 0], sizes = [8, 96], strides = [1, 1]} : vector<8x128xf32> to vector<8x96xf32>
    %362 = arith.negf %361 : vector<8x96xf32>
    %363 = math.exp %362 : vector<8x96xf32>
    %cst_194 = arith.constant 1.000000e+00 : f32
    %364 = vector.broadcast %cst_194 : f32 to vector<8x96xf32>
    %365 = arith.addf %364, %363 : vector<8x96xf32>
    %366 = arith.divf %364, %365 : vector<8x96xf32>
    %367 = vector.extract_strided_slice %360 {offsets = [0, 96], sizes = [8, 32], strides = [1, 1]} : vector<8x128xf32> to vector<8x32xf32>
    %368 = math.tanh %367 : vector<8x32xf32>
    %369 = vector.extract_strided_slice %366 {offsets = [0, 0], sizes = [8, 32], strides = [1, 1]} : vector<8x96xf32> to vector<8x32xf32>
    %370 = vector.extract_strided_slice %366 {offsets = [0, 32], sizes = [8, 32], strides = [1, 1]} : vector<8x96xf32> to vector<8x32xf32>
    %371 = vector.extract_strided_slice %366 {offsets = [0, 64], sizes = [8, 32], strides = [1, 1]} : vector<8x96xf32> to vector<8x32xf32>
    %c0_195 = arith.constant 0 : index
    %c0_196 = arith.constant 0 : index
    %372 = vector.load %arg20[%c0_195, %c0_196] : memref<8x32xf32, #tpu.memory_space<vmem>>, vector<8x32xf32>
    %373 = arith.mulf %370, %372 : vector<8x32xf32>
    %374 = arith.mulf %369, %368 : vector<8x32xf32>
    %375 = arith.addf %373, %374 : vector<8x32xf32>
    %376 = math.tanh %375 : vector<8x32xf32>
    %377 = arith.mulf %371, %376 : vector<8x32xf32>
    %c0_197 = arith.constant 0 : index
    %c0_198 = arith.constant 0 : index
    %378 = vector.load %arg20[%c0_197, %c0_198] : memref<8x32xf32, #tpu.memory_space<vmem>>, vector<8x32xf32>
    tpu.vector_store %arg20[%c0_197, %c0_198], %375 {strides = array<i32>} : memref<8x32xf32, #tpu.memory_space<vmem>>, vector<8x32xf32>,
    %c0_199 = arith.constant 0 : index
    %c0_200 = arith.constant 0 : index
    %379 = vector.load %arg19[%c0_199, %c0_200] : memref<8x32xf32, #tpu.memory_space<vmem>>, vector<8x32xf32>
    tpu.vector_store %arg19[%c0_199, %c0_200], %377 {strides = array<i32>} : memref<8x32xf32, #tpu.memory_space<vmem>>, vector<8x32xf32>,
    %380 = arith.index_cast %354 : i32 to index
    %c0_201 = arith.constant 0 : index
    %381 = vector.load %arg17[%380, %c0_201] : memref<64x32xf32, #tpu.memory_space<vmem>>, vector<8x32xf32>
    tpu.vector_store %arg17[%380, %c0_201], %377 {strides = array<i32>} : memref<64x32xf32, #tpu.memory_space<vmem>>, vector<8x32xf32>,
    %c4_i32_202 = arith.constant 4 : i32
    %c8_i32_203 = arith.constant 8 : i32
    %382 = arith.muli %c4_i32_202, %c8_i32_203 : i32
    %383 = tpu.assume_multiple %382, 8 : i32
    %384 = arith.index_cast %383 : i32 to index
    %c0_204 = arith.constant 0 : index
    %385 = vector.load %arg18[%384, %c0_204] : memref<64x128xf32, #tpu.memory_space<vmem>>, vector<8x128xf32>
    %c0_205 = arith.constant 0 : index
    %c0_206 = arith.constant 0 : index
    %386 = vector.load %arg19[%c0_205, %c0_206] : memref<8x32xf32, #tpu.memory_space<vmem>>, vector<8x32xf32>
    %387 = arith.truncf %386 : vector<8x32xf32> to vector<8x32xbf16>
    %cst_207 = arith.constant dense<0.000000e+00> : vector<8x128xf32>
    %388 = tpu.matmul %387, %265, %cst_207 {dimension_numbers = #tpu.dot_dimension_numbers<[1], [0], [0], [1], [0, 0, 1, 1], [], []>} : vector<8x32xbf16>, vector<32x128xbf16>, vector<8x128xf32> -> vector<8x128xf32>
    %389 = arith.addf %385, %388 : vector<8x128xf32>
    %390 = vector.extract_strided_slice %389 {offsets = [0, 0], sizes = [8, 96], strides = [1, 1]} : vector<8x128xf32> to vector<8x96xf32>
    %391 = arith.negf %390 : vector<8x96xf32>
    %392 = math.exp %391 : vector<8x96xf32>
    %cst_208 = arith.constant 1.000000e+00 : f32
    %393 = vector.broadcast %cst_208 : f32 to vector<8x96xf32>
    %394 = arith.addf %393, %392 : vector<8x96xf32>
    %395 = arith.divf %393, %394 : vector<8x96xf32>
    %396 = vector.extract_strided_slice %389 {offsets = [0, 96], sizes = [8, 32], strides = [1, 1]} : vector<8x128xf32> to vector<8x32xf32>
    %397 = math.tanh %396 : vector<8x32xf32>
    %398 = vector.extract_strided_slice %395 {offsets = [0, 0], sizes = [8, 32], strides = [1, 1]} : vector<8x96xf32> to vector<8x32xf32>
    %399 = vector.extract_strided_slice %395 {offsets = [0, 32], sizes = [8, 32], strides = [1, 1]} : vector<8x96xf32> to vector<8x32xf32>
    %400 = vector.extract_strided_slice %395 {offsets = [0, 64], sizes = [8, 32], strides = [1, 1]} : vector<8x96xf32> to vector<8x32xf32>
    %c0_209 = arith.constant 0 : index
    %c0_210 = arith.constant 0 : index
    %401 = vector.load %arg20[%c0_209, %c0_210] : memref<8x32xf32, #tpu.memory_space<vmem>>, vector<8x32xf32>
    %402 = arith.mulf %399, %401 : vector<8x32xf32>
    %403 = arith.mulf %398, %397 : vector<8x32xf32>
    %404 = arith.addf %402, %403 : vector<8x32xf32>
    %405 = math.tanh %404 : vector<8x32xf32>
    %406 = arith.mulf %400, %405 : vector<8x32xf32>
    %c0_211 = arith.constant 0 : index
    %c0_212 = arith.constant 0 : index
    %407 = vector.load %arg20[%c0_211, %c0_212] : memref<8x32xf32, #tpu.memory_space<vmem>>, vector<8x32xf32>
    tpu.vector_store %arg20[%c0_211, %c0_212], %404 {strides = array<i32>} : memref<8x32xf32, #tpu.memory_space<vmem>>, vector<8x32xf32>,
    %c0_213 = arith.constant 0 : index
    %c0_214 = arith.constant 0 : index
    %408 = vector.load %arg19[%c0_213, %c0_214] : memref<8x32xf32, #tpu.memory_space<vmem>>, vector<8x32xf32>
    tpu.vector_store %arg19[%c0_213, %c0_214], %406 {strides = array<i32>} : memref<8x32xf32, #tpu.memory_space<vmem>>, vector<8x32xf32>,
    %409 = arith.index_cast %383 : i32 to index
    %c0_215 = arith.constant 0 : index
    %410 = vector.load %arg17[%409, %c0_215] : memref<64x32xf32, #tpu.memory_space<vmem>>, vector<8x32xf32>
    tpu.vector_store %arg17[%409, %c0_215], %406 {strides = array<i32>} : memref<64x32xf32, #tpu.memory_space<vmem>>, vector<8x32xf32>,
    %c5_i32_216 = arith.constant 5 : i32
    %c8_i32_217 = arith.constant 8 : i32
    %411 = arith.muli %c5_i32_216, %c8_i32_217 : i32
    %412 = tpu.assume_multiple %411, 8 : i32
    %413 = arith.index_cast %412 : i32 to index
    %c0_218 = arith.constant 0 : index
    %414 = vector.load %arg18[%413, %c0_218] : memref<64x128xf32, #tpu.memory_space<vmem>>, vector<8x128xf32>
    %c0_219 = arith.constant 0 : index
    %c0_220 = arith.constant 0 : index
    %415 = vector.load %arg19[%c0_219, %c0_220] : memref<8x32xf32, #tpu.memory_space<vmem>>, vector<8x32xf32>
    %416 = arith.truncf %415 : vector<8x32xf32> to vector<8x32xbf16>
    %cst_221 = arith.constant dense<0.000000e+00> : vector<8x128xf32>
    %417 = tpu.matmul %416, %265, %cst_221 {dimension_numbers = #tpu.dot_dimension_numbers<[1], [0], [0], [1], [0, 0, 1, 1], [], []>} : vector<8x32xbf16>, vector<32x128xbf16>, vector<8x128xf32> -> vector<8x128xf32>
    %418 = arith.addf %414, %417 : vector<8x128xf32>
    %419 = vector.extract_strided_slice %418 {offsets = [0, 0], sizes = [8, 96], strides = [1, 1]} : vector<8x128xf32> to vector<8x96xf32>
    %420 = arith.negf %419 : vector<8x96xf32>
    %421 = math.exp %420 : vector<8x96xf32>
    %cst_222 = arith.constant 1.000000e+00 : f32
    %422 = vector.broadcast %cst_222 : f32 to vector<8x96xf32>
    %423 = arith.addf %422, %421 : vector<8x96xf32>
    %424 = arith.divf %422, %423 : vector<8x96xf32>
    %425 = vector.extract_strided_slice %418 {offsets = [0, 96], sizes = [8, 32], strides = [1, 1]} : vector<8x128xf32> to vector<8x32xf32>
    %426 = math.tanh %425 : vector<8x32xf32>
    %427 = vector.extract_strided_slice %424 {offsets = [0, 0], sizes = [8, 32], strides = [1, 1]} : vector<8x96xf32> to vector<8x32xf32>
    %428 = vector.extract_strided_slice %424 {offsets = [0, 32], sizes = [8, 32], strides = [1, 1]} : vector<8x96xf32> to vector<8x32xf32>
    %429 = vector.extract_strided_slice %424 {offsets = [0, 64], sizes = [8, 32], strides = [1, 1]} : vector<8x96xf32> to vector<8x32xf32>
    %c0_223 = arith.constant 0 : index
    %c0_224 = arith.constant 0 : index
    %430 = vector.load %arg20[%c0_223, %c0_224] : memref<8x32xf32, #tpu.memory_space<vmem>>, vector<8x32xf32>
    %431 = arith.mulf %428, %430 : vector<8x32xf32>
    %432 = arith.mulf %427, %426 : vector<8x32xf32>
    %433 = arith.addf %431, %432 : vector<8x32xf32>
    %434 = math.tanh %433 : vector<8x32xf32>
    %435 = arith.mulf %429, %434 : vector<8x32xf32>
    %c0_225 = arith.constant 0 : index
    %c0_226 = arith.constant 0 : index
    %436 = vector.load %arg20[%c0_225, %c0_226] : memref<8x32xf32, #tpu.memory_space<vmem>>, vector<8x32xf32>
    tpu.vector_store %arg20[%c0_225, %c0_226], %433 {strides = array<i32>} : memref<8x32xf32, #tpu.memory_space<vmem>>, vector<8x32xf32>,
    %c0_227 = arith.constant 0 : index
    %c0_228 = arith.constant 0 : index
    %437 = vector.load %arg19[%c0_227, %c0_228] : memref<8x32xf32, #tpu.memory_space<vmem>>, vector<8x32xf32>
    tpu.vector_store %arg19[%c0_227, %c0_228], %435 {strides = array<i32>} : memref<8x32xf32, #tpu.memory_space<vmem>>, vector<8x32xf32>,
    %438 = arith.index_cast %412 : i32 to index
    %c0_229 = arith.constant 0 : index
    %439 = vector.load %arg17[%438, %c0_229] : memref<64x32xf32, #tpu.memory_space<vmem>>, vector<8x32xf32>
    tpu.vector_store %arg17[%438, %c0_229], %435 {strides = array<i32>} : memref<64x32xf32, #tpu.memory_space<vmem>>, vector<8x32xf32>,
    %c6_i32_230 = arith.constant 6 : i32
    %c8_i32_231 = arith.constant 8 : i32
    %440 = arith.muli %c6_i32_230, %c8_i32_231 : i32
    %441 = tpu.assume_multiple %440, 8 : i32
    %442 = arith.index_cast %441 : i32 to index
    %c0_232 = arith.constant 0 : index
    %443 = vector.load %arg18[%442, %c0_232] : memref<64x128xf32, #tpu.memory_space<vmem>>, vector<8x128xf32>
    %c0_233 = arith.constant 0 : index
    %c0_234 = arith.constant 0 : index
    %444 = vector.load %arg19[%c0_233, %c0_234] : memref<8x32xf32, #tpu.memory_space<vmem>>, vector<8x32xf32>
    %445 = arith.truncf %444 : vector<8x32xf32> to vector<8x32xbf16>
    %cst_235 = arith.constant dense<0.000000e+00> : vector<8x128xf32>
    %446 = tpu.matmul %445, %265, %cst_235 {dimension_numbers = #tpu.dot_dimension_numbers<[1], [0], [0], [1], [0, 0, 1, 1], [], []>} : vector<8x32xbf16>, vector<32x128xbf16>, vector<8x128xf32> -> vector<8x128xf32>
    %447 = arith.addf %443, %446 : vector<8x128xf32>
    %448 = vector.extract_strided_slice %447 {offsets = [0, 0], sizes = [8, 96], strides = [1, 1]} : vector<8x128xf32> to vector<8x96xf32>
    %449 = arith.negf %448 : vector<8x96xf32>
    %450 = math.exp %449 : vector<8x96xf32>
    %cst_236 = arith.constant 1.000000e+00 : f32
    %451 = vector.broadcast %cst_236 : f32 to vector<8x96xf32>
    %452 = arith.addf %451, %450 : vector<8x96xf32>
    %453 = arith.divf %451, %452 : vector<8x96xf32>
    %454 = vector.extract_strided_slice %447 {offsets = [0, 96], sizes = [8, 32], strides = [1, 1]} : vector<8x128xf32> to vector<8x32xf32>
    %455 = math.tanh %454 : vector<8x32xf32>
    %456 = vector.extract_strided_slice %453 {offsets = [0, 0], sizes = [8, 32], strides = [1, 1]} : vector<8x96xf32> to vector<8x32xf32>
    %457 = vector.extract_strided_slice %453 {offsets = [0, 32], sizes = [8, 32], strides = [1, 1]} : vector<8x96xf32> to vector<8x32xf32>
    %458 = vector.extract_strided_slice %453 {offsets = [0, 64], sizes = [8, 32], strides = [1, 1]} : vector<8x96xf32> to vector<8x32xf32>
    %c0_237 = arith.constant 0 : index
    %c0_238 = arith.constant 0 : index
    %459 = vector.load %arg20[%c0_237, %c0_238] : memref<8x32xf32, #tpu.memory_space<vmem>>, vector<8x32xf32>
    %460 = arith.mulf %457, %459 : vector<8x32xf32>
    %461 = arith.mulf %456, %455 : vector<8x32xf32>
    %462 = arith.addf %460, %461 : vector<8x32xf32>
    %463 = math.tanh %462 : vector<8x32xf32>
    %464 = arith.mulf %458, %463 : vector<8x32xf32>
    %c0_239 = arith.constant 0 : index
    %c0_240 = arith.constant 0 : index
    %465 = vector.load %arg20[%c0_239, %c0_240] : memref<8x32xf32, #tpu.memory_space<vmem>>, vector<8x32xf32>
    tpu.vector_store %arg20[%c0_239, %c0_240], %462 {strides = array<i32>} : memref<8x32xf32, #tpu.memory_space<vmem>>, vector<8x32xf32>,
    %c0_241 = arith.constant 0 : index
    %c0_242 = arith.constant 0 : index
    %466 = vector.load %arg19[%c0_241, %c0_242] : memref<8x32xf32, #tpu.memory_space<vmem>>, vector<8x32xf32>
    tpu.vector_store %arg19[%c0_241, %c0_242], %464 {strides = array<i32>} : memref<8x32xf32, #tpu.memory_space<vmem>>, vector<8x32xf32>,
    %467 = arith.index_cast %441 : i32 to index
    %c0_243 = arith.constant 0 : index
    %468 = vector.load %arg17[%467, %c0_243] : memref<64x32xf32, #tpu.memory_space<vmem>>, vector<8x32xf32>
    tpu.vector_store %arg17[%467, %c0_243], %464 {strides = array<i32>} : memref<64x32xf32, #tpu.memory_space<vmem>>, vector<8x32xf32>,
    %c7_i32_244 = arith.constant 7 : i32
    %c8_i32_245 = arith.constant 8 : i32
    %469 = arith.muli %c7_i32_244, %c8_i32_245 : i32
    %470 = tpu.assume_multiple %469, 8 : i32
    %471 = arith.index_cast %470 : i32 to index
    %c0_246 = arith.constant 0 : index
    %472 = vector.load %arg18[%471, %c0_246] : memref<64x128xf32, #tpu.memory_space<vmem>>, vector<8x128xf32>
    %c0_247 = arith.constant 0 : index
    %c0_248 = arith.constant 0 : index
    %473 = vector.load %arg19[%c0_247, %c0_248] : memref<8x32xf32, #tpu.memory_space<vmem>>, vector<8x32xf32>
    %474 = arith.truncf %473 : vector<8x32xf32> to vector<8x32xbf16>
    %cst_249 = arith.constant dense<0.000000e+00> : vector<8x128xf32>
    %475 = tpu.matmul %474, %265, %cst_249 {dimension_numbers = #tpu.dot_dimension_numbers<[1], [0], [0], [1], [0, 0, 1, 1], [], []>} : vector<8x32xbf16>, vector<32x128xbf16>, vector<8x128xf32> -> vector<8x128xf32>
    %476 = arith.addf %472, %475 : vector<8x128xf32>
    %477 = vector.extract_strided_slice %476 {offsets = [0, 0], sizes = [8, 96], strides = [1, 1]} : vector<8x128xf32> to vector<8x96xf32>
    %478 = arith.negf %477 : vector<8x96xf32>
    %479 = math.exp %478 : vector<8x96xf32>
    %cst_250 = arith.constant 1.000000e+00 : f32
    %480 = vector.broadcast %cst_250 : f32 to vector<8x96xf32>
    %481 = arith.addf %480, %479 : vector<8x96xf32>
    %482 = arith.divf %480, %481 : vector<8x96xf32>
    %483 = vector.extract_strided_slice %476 {offsets = [0, 96], sizes = [8, 32], strides = [1, 1]} : vector<8x128xf32> to vector<8x32xf32>
    %484 = math.tanh %483 : vector<8x32xf32>
    %485 = vector.extract_strided_slice %482 {offsets = [0, 0], sizes = [8, 32], strides = [1, 1]} : vector<8x96xf32> to vector<8x32xf32>
    %486 = vector.extract_strided_slice %482 {offsets = [0, 32], sizes = [8, 32], strides = [1, 1]} : vector<8x96xf32> to vector<8x32xf32>
    %487 = vector.extract_strided_slice %482 {offsets = [0, 64], sizes = [8, 32], strides = [1, 1]} : vector<8x96xf32> to vector<8x32xf32>
    %c0_251 = arith.constant 0 : index
    %c0_252 = arith.constant 0 : index
    %488 = vector.load %arg20[%c0_251, %c0_252] : memref<8x32xf32, #tpu.memory_space<vmem>>, vector<8x32xf32>
    %489 = arith.mulf %486, %488 : vector<8x32xf32>
    %490 = arith.mulf %485, %484 : vector<8x32xf32>
    %491 = arith.addf %489, %490 : vector<8x32xf32>
    %492 = math.tanh %491 : vector<8x32xf32>
    %493 = arith.mulf %487, %492 : vector<8x32xf32>
    %c0_253 = arith.constant 0 : index
    %c0_254 = arith.constant 0 : index
    %494 = vector.load %arg20[%c0_253, %c0_254] : memref<8x32xf32, #tpu.memory_space<vmem>>, vector<8x32xf32>
    tpu.vector_store %arg20[%c0_253, %c0_254], %491 {strides = array<i32>} : memref<8x32xf32, #tpu.memory_space<vmem>>, vector<8x32xf32>,
    %c0_255 = arith.constant 0 : index
    %c0_256 = arith.constant 0 : index
    %495 = vector.load %arg19[%c0_255, %c0_256] : memref<8x32xf32, #tpu.memory_space<vmem>>, vector<8x32xf32>
    tpu.vector_store %arg19[%c0_255, %c0_256], %493 {strides = array<i32>} : memref<8x32xf32, #tpu.memory_space<vmem>>, vector<8x32xf32>,
    %496 = arith.index_cast %470 : i32 to index
    %c0_257 = arith.constant 0 : index
    %497 = vector.load %arg17[%496, %c0_257] : memref<64x32xf32, #tpu.memory_space<vmem>>, vector<8x32xf32>
    tpu.vector_store %arg17[%496, %c0_257], %493 {strides = array<i32>} : memref<64x32xf32, #tpu.memory_space<vmem>>, vector<8x32xf32>,
    %c8_i32_258 = arith.constant 8 : i32
    %c0_259 = arith.constant 0 : index
    %c0_260 = arith.constant 0 : index
    %498 = vector.load %arg19[%c0_259, %c0_260] : memref<8x32xf32, #tpu.memory_space<vmem>>, vector<8x32xf32>
    %c1 = arith.constant 1 : index
    %c0_261 = arith.constant 0 : index
    %c0_262 = arith.constant 0 : index
    %499 = vector.load %arg15[%c1, %c0_261, %c0_262] : memref<3x8x32xf32, #tpu.memory_space<vmem>>, vector<1x8x32xf32>
    %500 = vector.shape_cast %499 : vector<1x8x32xf32> to vector<8x32xf32>
    %501 = vector.shape_cast %498 : vector<8x32xf32> to vector<1x8x32xf32>
    tpu.vector_store %arg15[%c1, %c0_261, %c0_262], %501 {strides = array<i32>} : memref<3x8x32xf32, #tpu.memory_space<vmem>>, vector<1x8x32xf32>,
    %c0_263 = arith.constant 0 : index
    %c0_264 = arith.constant 0 : index
    %502 = vector.load %arg20[%c0_263, %c0_264] : memref<8x32xf32, #tpu.memory_space<vmem>>, vector<8x32xf32>
    %c1_265 = arith.constant 1 : index
    %c0_266 = arith.constant 0 : index
    %c0_267 = arith.constant 0 : index
    %503 = vector.load %arg16[%c1_265, %c0_266, %c0_267] : memref<3x8x32xf32, #tpu.memory_space<vmem>>, vector<1x8x32xf32>
    %504 = vector.shape_cast %503 : vector<1x8x32xf32> to vector<8x32xf32>
    %505 = vector.shape_cast %502 : vector<8x32xf32> to vector<1x8x32xf32>
    tpu.vector_store %arg16[%c1_265, %c0_266, %c0_267], %505 {strides = array<i32>} : memref<3x8x32xf32, #tpu.memory_space<vmem>>, vector<1x8x32xf32>,
    %c0_268 = arith.constant 0 : index
    %c0_269 = arith.constant 0 : index
    %506 = vector.load %arg17[%c0_268, %c0_269] : memref<64x32xf32, #tpu.memory_space<vmem>>, vector<64x32xf32>
    %507 = arith.truncf %506 : vector<64x32xf32> to vector<64x32xbf16>
    %c0_270 = arith.constant 0 : index
    %c0_271 = arith.constant 0 : index
    %508 = vector.load %arg7[%c0_270, %c0_271] : memref<32x128xbf16, #tpu.memory_space<vmem>>, vector<32x128xbf16>
    %cst_272 = arith.constant dense<0.000000e+00> : vector<64x128xf32>
    %509 = tpu.matmul %507, %508, %cst_272 {dimension_numbers = #tpu.dot_dimension_numbers<[1], [0], [0], [1], [0, 0, 1, 1], [], []>} : vector<64x32xbf16>, vector<32x128xbf16>, vector<64x128xf32> -> vector<64x128xf32>
    %c0_273 = arith.constant 0 : index
    %c0_274 = arith.constant 0 : index
    %510 = vector.load %arg9[%c0_273, %c0_274] : memref<1x128xf32, #tpu.memory_space<vmem>>, vector<1x128xf32>
    %511 = vector.broadcast %510 : vector<1x128xf32> to vector<64x128xf32>
    %512 = arith.addf %509, %511 : vector<64x128xf32>
    %c0_275 = arith.constant 0 : index
    %c0_276 = arith.constant 0 : index
    %513 = vector.load %arg18[%c0_275, %c0_276] : memref<64x128xf32, #tpu.memory_space<vmem>>, vector<64x128xf32>
    tpu.vector_store %arg18[%c0_275, %c0_276], %512 {strides = array<i32>} : memref<64x128xf32, #tpu.memory_space<vmem>>, vector<64x128xf32>,
    %cst_277 = arith.constant 0.000000e+00 : f32
    %514 = vector.broadcast %cst_277 : f32 to vector<8x32xf32>
    %c0_278 = arith.constant 0 : index
    %c0_279 = arith.constant 0 : index
    %515 = vector.load %arg19[%c0_278, %c0_279] : memref<8x32xf32, #tpu.memory_space<vmem>>, vector<8x32xf32>
    tpu.vector_store %arg19[%c0_278, %c0_279], %514 {strides = array<i32>} : memref<8x32xf32, #tpu.memory_space<vmem>>, vector<8x32xf32>,
    %cst_280 = arith.constant 0.000000e+00 : f32
    %516 = vector.broadcast %cst_280 : f32 to vector<8x32xf32>
    %c0_281 = arith.constant 0 : index
    %c0_282 = arith.constant 0 : index
    %517 = vector.load %arg20[%c0_281, %c0_282] : memref<8x32xf32, #tpu.memory_space<vmem>>, vector<8x32xf32>
    tpu.vector_store %arg20[%c0_281, %c0_282], %516 {strides = array<i32>} : memref<8x32xf32, #tpu.memory_space<vmem>>, vector<8x32xf32>,
    %c0_283 = arith.constant 0 : index
    %c0_284 = arith.constant 0 : index
    %518 = vector.load %arg8[%c0_283, %c0_284] : memref<32x128xbf16, #tpu.memory_space<vmem>>, vector<32x128xbf16>
    %c0_i32_285 = arith.constant 0 : i32
    %c8_i32_286 = arith.constant 8 : i32
    %519 = arith.muli %c0_i32_285, %c8_i32_286 : i32
    %520 = tpu.assume_multiple %519, 8 : i32
    %521 = arith.index_cast %520 : i32 to index
    %c0_287 = arith.constant 0 : index
    %522 = vector.load %arg18[%521, %c0_287] : memref<64x128xf32, #tpu.memory_space<vmem>>, vector<8x128xf32>
    %c0_288 = arith.constant 0 : index
    %c0_289 = arith.constant 0 : index
    %523 = vector.load %arg19[%c0_288, %c0_289] : memref<8x32xf32, #tpu.memory_space<vmem>>, vector<8x32xf32>
    %524 = arith.truncf %523 : vector<8x32xf32> to vector<8x32xbf16>
    %cst_290 = arith.constant dense<0.000000e+00> : vector<8x128xf32>
    %525 = tpu.matmul %524, %518, %cst_290 {dimension_numbers = #tpu.dot_dimension_numbers<[1], [0], [0], [1], [0, 0, 1, 1], [], []>} : vector<8x32xbf16>, vector<32x128xbf16>, vector<8x128xf32> -> vector<8x128xf32>
    %526 = arith.addf %522, %525 : vector<8x128xf32>
    %527 = vector.extract_strided_slice %526 {offsets = [0, 0], sizes = [8, 96], strides = [1, 1]} : vector<8x128xf32> to vector<8x96xf32>
    %528 = arith.negf %527 : vector<8x96xf32>
    %529 = math.exp %528 : vector<8x96xf32>
    %cst_291 = arith.constant 1.000000e+00 : f32
    %530 = vector.broadcast %cst_291 : f32 to vector<8x96xf32>
    %531 = arith.addf %530, %529 : vector<8x96xf32>
    %532 = arith.divf %530, %531 : vector<8x96xf32>
    %533 = vector.extract_strided_slice %526 {offsets = [0, 96], sizes = [8, 32], strides = [1, 1]} : vector<8x128xf32> to vector<8x32xf32>
    %534 = math.tanh %533 : vector<8x32xf32>
    %535 = vector.extract_strided_slice %532 {offsets = [0, 0], sizes = [8, 32], strides = [1, 1]} : vector<8x96xf32> to vector<8x32xf32>
    %536 = vector.extract_strided_slice %532 {offsets = [0, 32], sizes = [8, 32], strides = [1, 1]} : vector<8x96xf32> to vector<8x32xf32>
    %537 = vector.extract_strided_slice %532 {offsets = [0, 64], sizes = [8, 32], strides = [1, 1]} : vector<8x96xf32> to vector<8x32xf32>
    %c0_292 = arith.constant 0 : index
    %c0_293 = arith.constant 0 : index
    %538 = vector.load %arg20[%c0_292, %c0_293] : memref<8x32xf32, #tpu.memory_space<vmem>>, vector<8x32xf32>
    %539 = arith.mulf %536, %538 : vector<8x32xf32>
    %540 = arith.mulf %535, %534 : vector<8x32xf32>
    %541 = arith.addf %539, %540 : vector<8x32xf32>
    %542 = math.tanh %541 : vector<8x32xf32>
    %543 = arith.mulf %537, %542 : vector<8x32xf32>
    %c0_294 = arith.constant 0 : index
    %c0_295 = arith.constant 0 : index
    %544 = vector.load %arg20[%c0_294, %c0_295] : memref<8x32xf32, #tpu.memory_space<vmem>>, vector<8x32xf32>
    tpu.vector_store %arg20[%c0_294, %c0_295], %541 {strides = array<i32>} : memref<8x32xf32, #tpu.memory_space<vmem>>, vector<8x32xf32>,
    %c0_296 = arith.constant 0 : index
    %c0_297 = arith.constant 0 : index
    %545 = vector.load %arg19[%c0_296, %c0_297] : memref<8x32xf32, #tpu.memory_space<vmem>>, vector<8x32xf32>
    tpu.vector_store %arg19[%c0_296, %c0_297], %543 {strides = array<i32>} : memref<8x32xf32, #tpu.memory_space<vmem>>, vector<8x32xf32>,
    %546 = arith.index_cast %520 : i32 to index
    %c0_298 = arith.constant 0 : index
    %547 = vector.load %arg17[%546, %c0_298] : memref<64x32xf32, #tpu.memory_space<vmem>>, vector<8x32xf32>
    tpu.vector_store %arg17[%546, %c0_298], %543 {strides = array<i32>} : memref<64x32xf32, #tpu.memory_space<vmem>>, vector<8x32xf32>,
    %c1_i32_299 = arith.constant 1 : i32
    %c8_i32_300 = arith.constant 8 : i32
    %548 = arith.muli %c1_i32_299, %c8_i32_300 : i32
    %549 = tpu.assume_multiple %548, 8 : i32
    %550 = arith.index_cast %549 : i32 to index
    %c0_301 = arith.constant 0 : index
    %551 = vector.load %arg18[%550, %c0_301] : memref<64x128xf32, #tpu.memory_space<vmem>>, vector<8x128xf32>
    %c0_302 = arith.constant 0 : index
    %c0_303 = arith.constant 0 : index
    %552 = vector.load %arg19[%c0_302, %c0_303] : memref<8x32xf32, #tpu.memory_space<vmem>>, vector<8x32xf32>
    %553 = arith.truncf %552 : vector<8x32xf32> to vector<8x32xbf16>
    %cst_304 = arith.constant dense<0.000000e+00> : vector<8x128xf32>
    %554 = tpu.matmul %553, %518, %cst_304 {dimension_numbers = #tpu.dot_dimension_numbers<[1], [0], [0], [1], [0, 0, 1, 1], [], []>} : vector<8x32xbf16>, vector<32x128xbf16>, vector<8x128xf32> -> vector<8x128xf32>
    %555 = arith.addf %551, %554 : vector<8x128xf32>
    %556 = vector.extract_strided_slice %555 {offsets = [0, 0], sizes = [8, 96], strides = [1, 1]} : vector<8x128xf32> to vector<8x96xf32>
    %557 = arith.negf %556 : vector<8x96xf32>
    %558 = math.exp %557 : vector<8x96xf32>
    %cst_305 = arith.constant 1.000000e+00 : f32
    %559 = vector.broadcast %cst_305 : f32 to vector<8x96xf32>
    %560 = arith.addf %559, %558 : vector<8x96xf32>
    %561 = arith.divf %559, %560 : vector<8x96xf32>
    %562 = vector.extract_strided_slice %555 {offsets = [0, 96], sizes = [8, 32], strides = [1, 1]} : vector<8x128xf32> to vector<8x32xf32>
    %563 = math.tanh %562 : vector<8x32xf32>
    %564 = vector.extract_strided_slice %561 {offsets = [0, 0], sizes = [8, 32], strides = [1, 1]} : vector<8x96xf32> to vector<8x32xf32>
    %565 = vector.extract_strided_slice %561 {offsets = [0, 32], sizes = [8, 32], strides = [1, 1]} : vector<8x96xf32> to vector<8x32xf32>
    %566 = vector.extract_strided_slice %561 {offsets = [0, 64], sizes = [8, 32], strides = [1, 1]} : vector<8x96xf32> to vector<8x32xf32>
    %c0_306 = arith.constant 0 : index
    %c0_307 = arith.constant 0 : index
    %567 = vector.load %arg20[%c0_306, %c0_307] : memref<8x32xf32, #tpu.memory_space<vmem>>, vector<8x32xf32>
    %568 = arith.mulf %565, %567 : vector<8x32xf32>
    %569 = arith.mulf %564, %563 : vector<8x32xf32>
    %570 = arith.addf %568, %569 : vector<8x32xf32>
    %571 = math.tanh %570 : vector<8x32xf32>
    %572 = arith.mulf %566, %571 : vector<8x32xf32>
    %c0_308 = arith.constant 0 : index
    %c0_309 = arith.constant 0 : index
    %573 = vector.load %arg20[%c0_308, %c0_309] : memref<8x32xf32, #tpu.memory_space<vmem>>, vector<8x32xf32>
    tpu.vector_store %arg20[%c0_308, %c0_309], %570 {strides = array<i32>} : memref<8x32xf32, #tpu.memory_space<vmem>>, vector<8x32xf32>,
    %c0_310 = arith.constant 0 : index
    %c0_311 = arith.constant 0 : index
    %574 = vector.load %arg19[%c0_310, %c0_311] : memref<8x32xf32, #tpu.memory_space<vmem>>, vector<8x32xf32>
    tpu.vector_store %arg19[%c0_310, %c0_311], %572 {strides = array<i32>} : memref<8x32xf32, #tpu.memory_space<vmem>>, vector<8x32xf32>,
    %575 = arith.index_cast %549 : i32 to index
    %c0_312 = arith.constant 0 : index
    %576 = vector.load %arg17[%575, %c0_312] : memref<64x32xf32, #tpu.memory_space<vmem>>, vector<8x32xf32>
    tpu.vector_store %arg17[%575, %c0_312], %572 {strides = array<i32>} : memref<64x32xf32, #tpu.memory_space<vmem>>, vector<8x32xf32>,
    %c2_i32_313 = arith.constant 2 : i32
    %c8_i32_314 = arith.constant 8 : i32
    %577 = arith.muli %c2_i32_313, %c8_i32_314 : i32
    %578 = tpu.assume_multiple %577, 8 : i32
    %579 = arith.index_cast %578 : i32 to index
    %c0_315 = arith.constant 0 : index
    %580 = vector.load %arg18[%579, %c0_315] : memref<64x128xf32, #tpu.memory_space<vmem>>, vector<8x128xf32>
    %c0_316 = arith.constant 0 : index
    %c0_317 = arith.constant 0 : index
    %581 = vector.load %arg19[%c0_316, %c0_317] : memref<8x32xf32, #tpu.memory_space<vmem>>, vector<8x32xf32>
    %582 = arith.truncf %581 : vector<8x32xf32> to vector<8x32xbf16>
    %cst_318 = arith.constant dense<0.000000e+00> : vector<8x128xf32>
    %583 = tpu.matmul %582, %518, %cst_318 {dimension_numbers = #tpu.dot_dimension_numbers<[1], [0], [0], [1], [0, 0, 1, 1], [], []>} : vector<8x32xbf16>, vector<32x128xbf16>, vector<8x128xf32> -> vector<8x128xf32>
    %584 = arith.addf %580, %583 : vector<8x128xf32>
    %585 = vector.extract_strided_slice %584 {offsets = [0, 0], sizes = [8, 96], strides = [1, 1]} : vector<8x128xf32> to vector<8x96xf32>
    %586 = arith.negf %585 : vector<8x96xf32>
    %587 = math.exp %586 : vector<8x96xf32>
    %cst_319 = arith.constant 1.000000e+00 : f32
    %588 = vector.broadcast %cst_319 : f32 to vector<8x96xf32>
    %589 = arith.addf %588, %587 : vector<8x96xf32>
    %590 = arith.divf %588, %589 : vector<8x96xf32>
    %591 = vector.extract_strided_slice %584 {offsets = [0, 96], sizes = [8, 32], strides = [1, 1]} : vector<8x128xf32> to vector<8x32xf32>
    %592 = math.tanh %591 : vector<8x32xf32>
    %593 = vector.extract_strided_slice %590 {offsets = [0, 0], sizes = [8, 32], strides = [1, 1]} : vector<8x96xf32> to vector<8x32xf32>
    %594 = vector.extract_strided_slice %590 {offsets = [0, 32], sizes = [8, 32], strides = [1, 1]} : vector<8x96xf32> to vector<8x32xf32>
    %595 = vector.extract_strided_slice %590 {offsets = [0, 64], sizes = [8, 32], strides = [1, 1]} : vector<8x96xf32> to vector<8x32xf32>
    %c0_320 = arith.constant 0 : index
    %c0_321 = arith.constant 0 : index
    %596 = vector.load %arg20[%c0_320, %c0_321] : memref<8x32xf32, #tpu.memory_space<vmem>>, vector<8x32xf32>
    %597 = arith.mulf %594, %596 : vector<8x32xf32>
    %598 = arith.mulf %593, %592 : vector<8x32xf32>
    %599 = arith.addf %597, %598 : vector<8x32xf32>
    %600 = math.tanh %599 : vector<8x32xf32>
    %601 = arith.mulf %595, %600 : vector<8x32xf32>
    %c0_322 = arith.constant 0 : index
    %c0_323 = arith.constant 0 : index
    %602 = vector.load %arg20[%c0_322, %c0_323] : memref<8x32xf32, #tpu.memory_space<vmem>>, vector<8x32xf32>
    tpu.vector_store %arg20[%c0_322, %c0_323], %599 {strides = array<i32>} : memref<8x32xf32, #tpu.memory_space<vmem>>, vector<8x32xf32>,
    %c0_324 = arith.constant 0 : index
    %c0_325 = arith.constant 0 : index
    %603 = vector.load %arg19[%c0_324, %c0_325] : memref<8x32xf32, #tpu.memory_space<vmem>>, vector<8x32xf32>
    tpu.vector_store %arg19[%c0_324, %c0_325], %601 {strides = array<i32>} : memref<8x32xf32, #tpu.memory_space<vmem>>, vector<8x32xf32>,
    %604 = arith.index_cast %578 : i32 to index
    %c0_326 = arith.constant 0 : index
    %605 = vector.load %arg17[%604, %c0_326] : memref<64x32xf32, #tpu.memory_space<vmem>>, vector<8x32xf32>
    tpu.vector_store %arg17[%604, %c0_326], %601 {strides = array<i32>} : memref<64x32xf32, #tpu.memory_space<vmem>>, vector<8x32xf32>,
    %c3_i32_327 = arith.constant 3 : i32
    %c8_i32_328 = arith.constant 8 : i32
    %606 = arith.muli %c3_i32_327, %c8_i32_328 : i32
    %607 = tpu.assume_multiple %606, 8 : i32
    %608 = arith.index_cast %607 : i32 to index
    %c0_329 = arith.constant 0 : index
    %609 = vector.load %arg18[%608, %c0_329] : memref<64x128xf32, #tpu.memory_space<vmem>>, vector<8x128xf32>
    %c0_330 = arith.constant 0 : index
    %c0_331 = arith.constant 0 : index
    %610 = vector.load %arg19[%c0_330, %c0_331] : memref<8x32xf32, #tpu.memory_space<vmem>>, vector<8x32xf32>
    %611 = arith.truncf %610 : vector<8x32xf32> to vector<8x32xbf16>
    %cst_332 = arith.constant dense<0.000000e+00> : vector<8x128xf32>
    %612 = tpu.matmul %611, %518, %cst_332 {dimension_numbers = #tpu.dot_dimension_numbers<[1], [0], [0], [1], [0, 0, 1, 1], [], []>} : vector<8x32xbf16>, vector<32x128xbf16>, vector<8x128xf32> -> vector<8x128xf32>
    %613 = arith.addf %609, %612 : vector<8x128xf32>
    %614 = vector.extract_strided_slice %613 {offsets = [0, 0], sizes = [8, 96], strides = [1, 1]} : vector<8x128xf32> to vector<8x96xf32>
    %615 = arith.negf %614 : vector<8x96xf32>
    %616 = math.exp %615 : vector<8x96xf32>
    %cst_333 = arith.constant 1.000000e+00 : f32
    %617 = vector.broadcast %cst_333 : f32 to vector<8x96xf32>
    %618 = arith.addf %617, %616 : vector<8x96xf32>
    %619 = arith.divf %617, %618 : vector<8x96xf32>
    %620 = vector.extract_strided_slice %613 {offsets = [0, 96], sizes = [8, 32], strides = [1, 1]} : vector<8x128xf32> to vector<8x32xf32>
    %621 = math.tanh %620 : vector<8x32xf32>
    %622 = vector.extract_strided_slice %619 {offsets = [0, 0], sizes = [8, 32], strides = [1, 1]} : vector<8x96xf32> to vector<8x32xf32>
    %623 = vector.extract_strided_slice %619 {offsets = [0, 32], sizes = [8, 32], strides = [1, 1]} : vector<8x96xf32> to vector<8x32xf32>
    %624 = vector.extract_strided_slice %619 {offsets = [0, 64], sizes = [8, 32], strides = [1, 1]} : vector<8x96xf32> to vector<8x32xf32>
    %c0_334 = arith.constant 0 : index
    %c0_335 = arith.constant 0 : index
    %625 = vector.load %arg20[%c0_334, %c0_335] : memref<8x32xf32, #tpu.memory_space<vmem>>, vector<8x32xf32>
    %626 = arith.mulf %623, %625 : vector<8x32xf32>
    %627 = arith.mulf %622, %621 : vector<8x32xf32>
    %628 = arith.addf %626, %627 : vector<8x32xf32>
    %629 = math.tanh %628 : vector<8x32xf32>
    %630 = arith.mulf %624, %629 : vector<8x32xf32>
    %c0_336 = arith.constant 0 : index
    %c0_337 = arith.constant 0 : index
    %631 = vector.load %arg20[%c0_336, %c0_337] : memref<8x32xf32, #tpu.memory_space<vmem>>, vector<8x32xf32>
    tpu.vector_store %arg20[%c0_336, %c0_337], %628 {strides = array<i32>} : memref<8x32xf32, #tpu.memory_space<vmem>>, vector<8x32xf32>,
    %c0_338 = arith.constant 0 : index
    %c0_339 = arith.constant 0 : index
    %632 = vector.load %arg19[%c0_338, %c0_339] : memref<8x32xf32, #tpu.memory_space<vmem>>, vector<8x32xf32>
    tpu.vector_store %arg19[%c0_338, %c0_339], %630 {strides = array<i32>} : memref<8x32xf32, #tpu.memory_space<vmem>>, vector<8x32xf32>,
    %633 = arith.index_cast %607 : i32 to index
    %c0_340 = arith.constant 0 : index
    %634 = vector.load %arg17[%633, %c0_340] : memref<64x32xf32, #tpu.memory_space<vmem>>, vector<8x32xf32>
    tpu.vector_store %arg17[%633, %c0_340], %630 {strides = array<i32>} : memref<64x32xf32, #tpu.memory_space<vmem>>, vector<8x32xf32>,
    %c4_i32_341 = arith.constant 4 : i32
    %c8_i32_342 = arith.constant 8 : i32
    %635 = arith.muli %c4_i32_341, %c8_i32_342 : i32
    %636 = tpu.assume_multiple %635, 8 : i32
    %637 = arith.index_cast %636 : i32 to index
    %c0_343 = arith.constant 0 : index
    %638 = vector.load %arg18[%637, %c0_343] : memref<64x128xf32, #tpu.memory_space<vmem>>, vector<8x128xf32>
    %c0_344 = arith.constant 0 : index
    %c0_345 = arith.constant 0 : index
    %639 = vector.load %arg19[%c0_344, %c0_345] : memref<8x32xf32, #tpu.memory_space<vmem>>, vector<8x32xf32>
    %640 = arith.truncf %639 : vector<8x32xf32> to vector<8x32xbf16>
    %cst_346 = arith.constant dense<0.000000e+00> : vector<8x128xf32>
    %641 = tpu.matmul %640, %518, %cst_346 {dimension_numbers = #tpu.dot_dimension_numbers<[1], [0], [0], [1], [0, 0, 1, 1], [], []>} : vector<8x32xbf16>, vector<32x128xbf16>, vector<8x128xf32> -> vector<8x128xf32>
    %642 = arith.addf %638, %641 : vector<8x128xf32>
    %643 = vector.extract_strided_slice %642 {offsets = [0, 0], sizes = [8, 96], strides = [1, 1]} : vector<8x128xf32> to vector<8x96xf32>
    %644 = arith.negf %643 : vector<8x96xf32>
    %645 = math.exp %644 : vector<8x96xf32>
    %cst_347 = arith.constant 1.000000e+00 : f32
    %646 = vector.broadcast %cst_347 : f32 to vector<8x96xf32>
    %647 = arith.addf %646, %645 : vector<8x96xf32>
    %648 = arith.divf %646, %647 : vector<8x96xf32>
    %649 = vector.extract_strided_slice %642 {offsets = [0, 96], sizes = [8, 32], strides = [1, 1]} : vector<8x128xf32> to vector<8x32xf32>
    %650 = math.tanh %649 : vector<8x32xf32>
    %651 = vector.extract_strided_slice %648 {offsets = [0, 0], sizes = [8, 32], strides = [1, 1]} : vector<8x96xf32> to vector<8x32xf32>
    %652 = vector.extract_strided_slice %648 {offsets = [0, 32], sizes = [8, 32], strides = [1, 1]} : vector<8x96xf32> to vector<8x32xf32>
    %653 = vector.extract_strided_slice %648 {offsets = [0, 64], sizes = [8, 32], strides = [1, 1]} : vector<8x96xf32> to vector<8x32xf32>
    %c0_348 = arith.constant 0 : index
    %c0_349 = arith.constant 0 : index
    %654 = vector.load %arg20[%c0_348, %c0_349] : memref<8x32xf32, #tpu.memory_space<vmem>>, vector<8x32xf32>
    %655 = arith.mulf %652, %654 : vector<8x32xf32>
    %656 = arith.mulf %651, %650 : vector<8x32xf32>
    %657 = arith.addf %655, %656 : vector<8x32xf32>
    %658 = math.tanh %657 : vector<8x32xf32>
    %659 = arith.mulf %653, %658 : vector<8x32xf32>
    %c0_350 = arith.constant 0 : index
    %c0_351 = arith.constant 0 : index
    %660 = vector.load %arg20[%c0_350, %c0_351] : memref<8x32xf32, #tpu.memory_space<vmem>>, vector<8x32xf32>
    tpu.vector_store %arg20[%c0_350, %c0_351], %657 {strides = array<i32>} : memref<8x32xf32, #tpu.memory_space<vmem>>, vector<8x32xf32>,
    %c0_352 = arith.constant 0 : index
    %c0_353 = arith.constant 0 : index
    %661 = vector.load %arg19[%c0_352, %c0_353] : memref<8x32xf32, #tpu.memory_space<vmem>>, vector<8x32xf32>
    tpu.vector_store %arg19[%c0_352, %c0_353], %659 {strides = array<i32>} : memref<8x32xf32, #tpu.memory_space<vmem>>, vector<8x32xf32>,
    %662 = arith.index_cast %636 : i32 to index
    %c0_354 = arith.constant 0 : index
    %663 = vector.load %arg17[%662, %c0_354] : memref<64x32xf32, #tpu.memory_space<vmem>>, vector<8x32xf32>
    tpu.vector_store %arg17[%662, %c0_354], %659 {strides = array<i32>} : memref<64x32xf32, #tpu.memory_space<vmem>>, vector<8x32xf32>,
    %c5_i32_355 = arith.constant 5 : i32
    %c8_i32_356 = arith.constant 8 : i32
    %664 = arith.muli %c5_i32_355, %c8_i32_356 : i32
    %665 = tpu.assume_multiple %664, 8 : i32
    %666 = arith.index_cast %665 : i32 to index
    %c0_357 = arith.constant 0 : index
    %667 = vector.load %arg18[%666, %c0_357] : memref<64x128xf32, #tpu.memory_space<vmem>>, vector<8x128xf32>
    %c0_358 = arith.constant 0 : index
    %c0_359 = arith.constant 0 : index
    %668 = vector.load %arg19[%c0_358, %c0_359] : memref<8x32xf32, #tpu.memory_space<vmem>>, vector<8x32xf32>
    %669 = arith.truncf %668 : vector<8x32xf32> to vector<8x32xbf16>
    %cst_360 = arith.constant dense<0.000000e+00> : vector<8x128xf32>
    %670 = tpu.matmul %669, %518, %cst_360 {dimension_numbers = #tpu.dot_dimension_numbers<[1], [0], [0], [1], [0, 0, 1, 1], [], []>} : vector<8x32xbf16>, vector<32x128xbf16>, vector<8x128xf32> -> vector<8x128xf32>
    %671 = arith.addf %667, %670 : vector<8x128xf32>
    %672 = vector.extract_strided_slice %671 {offsets = [0, 0], sizes = [8, 96], strides = [1, 1]} : vector<8x128xf32> to vector<8x96xf32>
    %673 = arith.negf %672 : vector<8x96xf32>
    %674 = math.exp %673 : vector<8x96xf32>
    %cst_361 = arith.constant 1.000000e+00 : f32
    %675 = vector.broadcast %cst_361 : f32 to vector<8x96xf32>
    %676 = arith.addf %675, %674 : vector<8x96xf32>
    %677 = arith.divf %675, %676 : vector<8x96xf32>
    %678 = vector.extract_strided_slice %671 {offsets = [0, 96], sizes = [8, 32], strides = [1, 1]} : vector<8x128xf32> to vector<8x32xf32>
    %679 = math.tanh %678 : vector<8x32xf32>
    %680 = vector.extract_strided_slice %677 {offsets = [0, 0], sizes = [8, 32], strides = [1, 1]} : vector<8x96xf32> to vector<8x32xf32>
    %681 = vector.extract_strided_slice %677 {offsets = [0, 32], sizes = [8, 32], strides = [1, 1]} : vector<8x96xf32> to vector<8x32xf32>
    %682 = vector.extract_strided_slice %677 {offsets = [0, 64], sizes = [8, 32], strides = [1, 1]} : vector<8x96xf32> to vector<8x32xf32>
    %c0_362 = arith.constant 0 : index
    %c0_363 = arith.constant 0 : index
    %683 = vector.load %arg20[%c0_362, %c0_363] : memref<8x32xf32, #tpu.memory_space<vmem>>, vector<8x32xf32>
    %684 = arith.mulf %681, %683 : vector<8x32xf32>
    %685 = arith.mulf %680, %679 : vector<8x32xf32>
    %686 = arith.addf %684, %685 : vector<8x32xf32>
    %687 = math.tanh %686 : vector<8x32xf32>
    %688 = arith.mulf %682, %687 : vector<8x32xf32>
    %c0_364 = arith.constant 0 : index
    %c0_365 = arith.constant 0 : index
    %689 = vector.load %arg20[%c0_364, %c0_365] : memref<8x32xf32, #tpu.memory_space<vmem>>, vector<8x32xf32>
    tpu.vector_store %arg20[%c0_364, %c0_365], %686 {strides = array<i32>} : memref<8x32xf32, #tpu.memory_space<vmem>>, vector<8x32xf32>,
    %c0_366 = arith.constant 0 : index
    %c0_367 = arith.constant 0 : index
    %690 = vector.load %arg19[%c0_366, %c0_367] : memref<8x32xf32, #tpu.memory_space<vmem>>, vector<8x32xf32>
    tpu.vector_store %arg19[%c0_366, %c0_367], %688 {strides = array<i32>} : memref<8x32xf32, #tpu.memory_space<vmem>>, vector<8x32xf32>,
    %691 = arith.index_cast %665 : i32 to index
    %c0_368 = arith.constant 0 : index
    %692 = vector.load %arg17[%691, %c0_368] : memref<64x32xf32, #tpu.memory_space<vmem>>, vector<8x32xf32>
    tpu.vector_store %arg17[%691, %c0_368], %688 {strides = array<i32>} : memref<64x32xf32, #tpu.memory_space<vmem>>, vector<8x32xf32>,
    %c6_i32_369 = arith.constant 6 : i32
    %c8_i32_370 = arith.constant 8 : i32
    %693 = arith.muli %c6_i32_369, %c8_i32_370 : i32
    %694 = tpu.assume_multiple %693, 8 : i32
    %695 = arith.index_cast %694 : i32 to index
    %c0_371 = arith.constant 0 : index
    %696 = vector.load %arg18[%695, %c0_371] : memref<64x128xf32, #tpu.memory_space<vmem>>, vector<8x128xf32>
    %c0_372 = arith.constant 0 : index
    %c0_373 = arith.constant 0 : index
    %697 = vector.load %arg19[%c0_372, %c0_373] : memref<8x32xf32, #tpu.memory_space<vmem>>, vector<8x32xf32>
    %698 = arith.truncf %697 : vector<8x32xf32> to vector<8x32xbf16>
    %cst_374 = arith.constant dense<0.000000e+00> : vector<8x128xf32>
    %699 = tpu.matmul %698, %518, %cst_374 {dimension_numbers = #tpu.dot_dimension_numbers<[1], [0], [0], [1], [0, 0, 1, 1], [], []>} : vector<8x32xbf16>, vector<32x128xbf16>, vector<8x128xf32> -> vector<8x128xf32>
    %700 = arith.addf %696, %699 : vector<8x128xf32>
    %701 = vector.extract_strided_slice %700 {offsets = [0, 0], sizes = [8, 96], strides = [1, 1]} : vector<8x128xf32> to vector<8x96xf32>
    %702 = arith.negf %701 : vector<8x96xf32>
    %703 = math.exp %702 : vector<8x96xf32>
    %cst_375 = arith.constant 1.000000e+00 : f32
    %704 = vector.broadcast %cst_375 : f32 to vector<8x96xf32>
    %705 = arith.addf %704, %703 : vector<8x96xf32>
    %706 = arith.divf %704, %705 : vector<8x96xf32>
    %707 = vector.extract_strided_slice %700 {offsets = [0, 96], sizes = [8, 32], strides = [1, 1]} : vector<8x128xf32> to vector<8x32xf32>
    %708 = math.tanh %707 : vector<8x32xf32>
    %709 = vector.extract_strided_slice %706 {offsets = [0, 0], sizes = [8, 32], strides = [1, 1]} : vector<8x96xf32> to vector<8x32xf32>
    %710 = vector.extract_strided_slice %706 {offsets = [0, 32], sizes = [8, 32], strides = [1, 1]} : vector<8x96xf32> to vector<8x32xf32>
    %711 = vector.extract_strided_slice %706 {offsets = [0, 64], sizes = [8, 32], strides = [1, 1]} : vector<8x96xf32> to vector<8x32xf32>
    %c0_376 = arith.constant 0 : index
    %c0_377 = arith.constant 0 : index
    %712 = vector.load %arg20[%c0_376, %c0_377] : memref<8x32xf32, #tpu.memory_space<vmem>>, vector<8x32xf32>
    %713 = arith.mulf %710, %712 : vector<8x32xf32>
    %714 = arith.mulf %709, %708 : vector<8x32xf32>
    %715 = arith.addf %713, %714 : vector<8x32xf32>
    %716 = math.tanh %715 : vector<8x32xf32>
    %717 = arith.mulf %711, %716 : vector<8x32xf32>
    %c0_378 = arith.constant 0 : index
    %c0_379 = arith.constant 0 : index
    %718 = vector.load %arg20[%c0_378, %c0_379] : memref<8x32xf32, #tpu.memory_space<vmem>>, vector<8x32xf32>
    tpu.vector_store %arg20[%c0_378, %c0_379], %715 {strides = array<i32>} : memref<8x32xf32, #tpu.memory_space<vmem>>, vector<8x32xf32>,
    %c0_380 = arith.constant 0 : index
    %c0_381 = arith.constant 0 : index
    %719 = vector.load %arg19[%c0_380, %c0_381] : memref<8x32xf32, #tpu.memory_space<vmem>>, vector<8x32xf32>
    tpu.vector_store %arg19[%c0_380, %c0_381], %717 {strides = array<i32>} : memref<8x32xf32, #tpu.memory_space<vmem>>, vector<8x32xf32>,
    %720 = arith.index_cast %694 : i32 to index
    %c0_382 = arith.constant 0 : index
    %721 = vector.load %arg17[%720, %c0_382] : memref<64x32xf32, #tpu.memory_space<vmem>>, vector<8x32xf32>
    tpu.vector_store %arg17[%720, %c0_382], %717 {strides = array<i32>} : memref<64x32xf32, #tpu.memory_space<vmem>>, vector<8x32xf32>,
    %c7_i32_383 = arith.constant 7 : i32
    %c8_i32_384 = arith.constant 8 : i32
    %722 = arith.muli %c7_i32_383, %c8_i32_384 : i32
    %723 = tpu.assume_multiple %722, 8 : i32
    %724 = arith.index_cast %723 : i32 to index
    %c0_385 = arith.constant 0 : index
    %725 = vector.load %arg18[%724, %c0_385] : memref<64x128xf32, #tpu.memory_space<vmem>>, vector<8x128xf32>
    %c0_386 = arith.constant 0 : index
    %c0_387 = arith.constant 0 : index
    %726 = vector.load %arg19[%c0_386, %c0_387] : memref<8x32xf32, #tpu.memory_space<vmem>>, vector<8x32xf32>
    %727 = arith.truncf %726 : vector<8x32xf32> to vector<8x32xbf16>
    %cst_388 = arith.constant dense<0.000000e+00> : vector<8x128xf32>
    %728 = tpu.matmul %727, %518, %cst_388 {dimension_numbers = #tpu.dot_dimension_numbers<[1], [0], [0], [1], [0, 0, 1, 1], [], []>} : vector<8x32xbf16>, vector<32x128xbf16>, vector<8x128xf32> -> vector<8x128xf32>
    %729 = arith.addf %725, %728 : vector<8x128xf32>
    %730 = vector.extract_strided_slice %729 {offsets = [0, 0], sizes = [8, 96], strides = [1, 1]} : vector<8x128xf32> to vector<8x96xf32>
    %731 = arith.negf %730 : vector<8x96xf32>
    %732 = math.exp %731 : vector<8x96xf32>
    %cst_389 = arith.constant 1.000000e+00 : f32
    %733 = vector.broadcast %cst_389 : f32 to vector<8x96xf32>
    %734 = arith.addf %733, %732 : vector<8x96xf32>
    %735 = arith.divf %733, %734 : vector<8x96xf32>
    %736 = vector.extract_strided_slice %729 {offsets = [0, 96], sizes = [8, 32], strides = [1, 1]} : vector<8x128xf32> to vector<8x32xf32>
    %737 = math.tanh %736 : vector<8x32xf32>
    %738 = vector.extract_strided_slice %735 {offsets = [0, 0], sizes = [8, 32], strides = [1, 1]} : vector<8x96xf32> to vector<8x32xf32>
    %739 = vector.extract_strided_slice %735 {offsets = [0, 32], sizes = [8, 32], strides = [1, 1]} : vector<8x96xf32> to vector<8x32xf32>
    %740 = vector.extract_strided_slice %735 {offsets = [0, 64], sizes = [8, 32], strides = [1, 1]} : vector<8x96xf32> to vector<8x32xf32>
    %c0_390 = arith.constant 0 : index
    %c0_391 = arith.constant 0 : index
    %741 = vector.load %arg20[%c0_390, %c0_391] : memref<8x32xf32, #tpu.memory_space<vmem>>, vector<8x32xf32>
    %742 = arith.mulf %739, %741 : vector<8x32xf32>
    %743 = arith.mulf %738, %737 : vector<8x32xf32>
    %744 = arith.addf %742, %743 : vector<8x32xf32>
    %745 = math.tanh %744 : vector<8x32xf32>
    %746 = arith.mulf %740, %745 : vector<8x32xf32>
    %c0_392 = arith.constant 0 : index
    %c0_393 = arith.constant 0 : index
    %747 = vector.load %arg20[%c0_392, %c0_393] : memref<8x32xf32, #tpu.memory_space<vmem>>, vector<8x32xf32>
    tpu.vector_store %arg20[%c0_392, %c0_393], %744 {strides = array<i32>} : memref<8x32xf32, #tpu.memory_space<vmem>>, vector<8x32xf32>,
    %c0_394 = arith.constant 0 : index
    %c0_395 = arith.constant 0 : index
    %748 = vector.load %arg19[%c0_394, %c0_395] : memref<8x32xf32, #tpu.memory_space<vmem>>, vector<8x32xf32>
    tpu.vector_store %arg19[%c0_394, %c0_395], %746 {strides = array<i32>} : memref<8x32xf32, #tpu.memory_space<vmem>>, vector<8x32xf32>,
    %749 = arith.index_cast %723 : i32 to index
    %c0_396 = arith.constant 0 : index
    %750 = vector.load %arg17[%749, %c0_396] : memref<64x32xf32, #tpu.memory_space<vmem>>, vector<8x32xf32>
    tpu.vector_store %arg17[%749, %c0_396], %746 {strides = array<i32>} : memref<64x32xf32, #tpu.memory_space<vmem>>, vector<8x32xf32>,
    %c8_i32_397 = arith.constant 8 : i32
    %c0_398 = arith.constant 0 : index
    %c0_399 = arith.constant 0 : index
    %751 = vector.load %arg19[%c0_398, %c0_399] : memref<8x32xf32, #tpu.memory_space<vmem>>, vector<8x32xf32>
    %c2 = arith.constant 2 : index
    %c0_400 = arith.constant 0 : index
    %c0_401 = arith.constant 0 : index
    %752 = vector.load %arg15[%c2, %c0_400, %c0_401] : memref<3x8x32xf32, #tpu.memory_space<vmem>>, vector<1x8x32xf32>
    %753 = vector.shape_cast %752 : vector<1x8x32xf32> to vector<8x32xf32>
    %754 = vector.shape_cast %751 : vector<8x32xf32> to vector<1x8x32xf32>
    tpu.vector_store %arg15[%c2, %c0_400, %c0_401], %754 {strides = array<i32>} : memref<3x8x32xf32, #tpu.memory_space<vmem>>, vector<1x8x32xf32>,
    %c0_402 = arith.constant 0 : index
    %c0_403 = arith.constant 0 : index
    %755 = vector.load %arg20[%c0_402, %c0_403] : memref<8x32xf32, #tpu.memory_space<vmem>>, vector<8x32xf32>
    %c2_404 = arith.constant 2 : index
    %c0_405 = arith.constant 0 : index
    %c0_406 = arith.constant 0 : index
    %756 = vector.load %arg16[%c2_404, %c0_405, %c0_406] : memref<3x8x32xf32, #tpu.memory_space<vmem>>, vector<1x8x32xf32>
    %757 = vector.shape_cast %756 : vector<1x8x32xf32> to vector<8x32xf32>
    %758 = vector.shape_cast %755 : vector<8x32xf32> to vector<1x8x32xf32>
    tpu.vector_store %arg16[%c2_404, %c0_405, %c0_406], %758 {strides = array<i32>} : memref<3x8x32xf32, #tpu.memory_space<vmem>>, vector<1x8x32xf32>,
    %c0_407 = arith.constant 0 : index
    %c0_408 = arith.constant 0 : index
    %759 = vector.load %arg17[%c0_407, %c0_408] : memref<64x32xf32, #tpu.memory_space<vmem>>, vector<64x32xf32>
    %760 = arith.truncf %759 : vector<64x32xf32> to vector<64x32xbf16>
    %c0_409 = arith.constant 0 : index
    %c0_410 = arith.constant 0 : index
    %761 = vector.load %arg10[%c0_409, %c0_410] : memref<32x32xbf16, #tpu.memory_space<vmem>>, vector<32x32xbf16>
    %cst_411 = arith.constant dense<0.000000e+00> : vector<64x32xf32>
    %762 = tpu.matmul %760, %761, %cst_411 {dimension_numbers = #tpu.dot_dimension_numbers<[1], [0], [0], [1], [0, 0, 1, 1], [], []>} : vector<64x32xbf16>, vector<32x32xbf16>, vector<64x32xf32> -> vector<64x32xf32>
    %c0_412 = arith.constant 0 : index
    %c0_413 = arith.constant 0 : index
    %763 = vector.load %arg11[%c0_412, %c0_413] : memref<1x32xf32, #tpu.memory_space<vmem>>, vector<1x32xf32>
    %764 = vector.broadcast %763 : vector<1x32xf32> to vector<64x32xf32>
    %765 = arith.addf %762, %764 : vector<64x32xf32>
    %cst_414 = arith.constant 0.000000e+00 : f32
    %766 = vector.broadcast %cst_414 : f32 to vector<64x32xf32>
    %767 = arith.maximumf %765, %766 : vector<64x32xf32>
    %768 = arith.truncf %767 : vector<64x32xf32> to vector<64x32xbf16>
    %c0_415 = arith.constant 0 : index
    %c0_416 = arith.constant 0 : index
    %769 = vector.load %arg12[%c0_415, %c0_416] : memref<32x128xbf16, #tpu.memory_space<vmem>>, vector<32x128xbf16>
    %cst_417 = arith.constant dense<0.000000e+00> : vector<64x128xf32>
    %770 = tpu.matmul %768, %769, %cst_417 {dimension_numbers = #tpu.dot_dimension_numbers<[1], [0], [0], [1], [0, 0, 1, 1], [], []>} : vector<64x32xbf16>, vector<32x128xbf16>, vector<64x128xf32> -> vector<64x128xf32>
    %c0_418 = arith.constant 0 : index
    %c0_419 = arith.constant 0 : index
    %771 = vector.load %arg13[%c0_418, %c0_419] : memref<1x128xf32, #tpu.memory_space<vmem>>, vector<1x128xf32>
    %772 = vector.broadcast %771 : vector<1x128xf32> to vector<64x128xf32>
    %773 = arith.addf %770, %772 : vector<64x128xf32>
    %c0_420 = arith.constant 0 : index
    %c0_421 = arith.constant 0 : index
    %774 = vector.load %arg14[%c0_420, %c0_421] : memref<64x128xf32, #tpu.memory_space<vmem>>, vector<64x128xf32>
    tpu.vector_store %arg14[%c0_420, %c0_421], %773 {strides = array<i32>} : memref<64x128xf32, #tpu.memory_space<vmem>>, vector<64x128xf32>,
    return
  }
}

</mosaic_0001>

<bundles_post_ra>
// kernel: tpu_custom_call.1
= control target key start
LH: loop header
LB: loop body
LE: loop exit
PB: predicated region body
PF: predicated region fallthrough
CT: control target
= control target key end

     0   :  { %s4460_s0 = inlined_call_operand.vmem [shape: f32[64,16], index: 0, kind: input, shape index: {}]   ;;  %s4461_s1 = inlined_call_operand.hbm [shape: bf16[16,128], index: 1, kind: input, shape index: {}]   ;;  %s4462_s2 = inlined_call_operand.vmem [shape: bf16[32,128], index: 2, kind: input, shape index: {}]   ;;  %s4463_s3 = inlined_call_operand.vmem [shape: f32[1,128], index: 3, kind: input, shape index: {}]   ;;  %s4464_s4 = inlined_call_operand.vmem [shape: bf16[32,128], index: 4, kind: input, shape index: {}]   ;;  %s4465_s5 = inlined_call_operand.vmem [shape: bf16[32,128], index: 5, kind: input, shape index: {}]   ;;  %s4466_s6 = inlined_call_operand.vmem [shape: f32[1,128], index: 6, kind: input, shape index: {}]   ;;  %s4467_s7 = inlined_call_operand.vmem [shape: bf16[32,128], index: 7, kind: input, shape index: {}]   ;;  %s4468_s8 = inlined_call_operand.vmem [shape: bf16[32,128], index: 8, kind: input, shape index: {}]   ;;  %s4469_s9 = inlined_call_operand.hbm [shape: f32[1,128], index: 9, kind: input, shape index: {}]   ;;  %s4470_s10 = inlined_call_operand.vmem [shape: bf16[32,32], index: 10, kind: input, shape index: {}]   ;;  %s4471_s11 = inlined_call_operand.vmem [shape: f32[1,32], index: 11, kind: input, shape index: {}]   ;;  %s4472_s12 = inlined_call_operand.vmem [shape: bf16[32,128], index: 12, kind: input, shape index: {}]   ;;  %s4473_s13 = inlined_call_operand.vmem [shape: f32[1,128], index: 13, kind: input, shape index: {}]   ;;  %s4474_s14 = inlined_call_operand.hbm [shape: f32[64,128], index: 14, kind: output, shape index: {0}]   ;;  %s4475_s15 = inlined_call_operand.hbm [shape: f32[3,8,32], index: 15, kind: output, shape index: {1}]   ;;  %s4476_s16 = inlined_call_operand.hbm [shape: f32[3,8,32], index: 16, kind: output, shape index: {2}]  }
   0x1   :  { %4478 = sst [smem:[#allocation19_spill]] %s4460_s0 }
   0x2   :  { %22 = vsyncpa [#allocation7], 0 }
   0x3   :  { %23 = vsyncpa [#allocation10], 0 }
   0x4   :  { %24 = vsyncpa [#allocation8], 0 }
   0x5   :  { %25 = vsyncpa [#allocation13], 0  ;;  %s3663_s21 = smov [#allocation6]   ;;  %s3545_s25 = scalar_lea.hbm %s4461_s1, 128 }
   0x6   :  { %s33_s22 = sshll.u32 %s3663_s21, 4  ;;  %p3546_p0 = scmp.ne.s32.totalorder %s4461_s1, %s3545_s25  ;;  %s34_s22 = int_to_ptr.vmem [resolvable:$true] %s33_s22 }
   0x7   :  { %p3549_p1 = scmp.lt.u32.totalorder %s3545_s25, %s4461_s1 }
   0x9   :  { %p3551_p2 = pnand %p3549_p1, %p3546_p0 }
   0xb   :  { %3554 = shalt.err (!%p3551_p2)
}
   0xc   :  { %s3555_s30 = scalar_lea.vmem %s34_s22, 128  ;;  %p3560_p4 = scmp.lt.s32.totalorder %s34_s22, %s34_s22 }
   0xd   :  { %p3556_p3 = scmp.ne.s32.totalorder %s34_s22, %s3555_s30  ;;  %p3561_p5 = scmp.lt.s32.totalorder %s3555_s30, %s3555_s30 }
   0xf   :  { %p3562_p6 = por %p3561_p5, %p3560_p4 }
  0x11   :  { %p3563_p7 = pnand %p3562_p6, %p3556_p3 }
  0x13   :  { %3566 = shalt.err (!%p3563_p7)
}
  0x14   :  { %s3664_s0 = smov 64   ;;  %s3665_s17 = smov 4  }
  0x15   :  { %39 = dma.hbm_to_vmem [thread:$0]  %s4461_s1, 128, %s34_s22, [#allocation7], %s3664_s0, %s3664_s0, %s3665_s17  }
  0x16   :  { %s3666_s20 = smov [#allocation9]   ;;  %s3567_s25 = scalar_lea.hbm %s4469_s9, 16 }
  0x17   :  { %s60_s21 = sshll.u32 %s3666_s20, 4  ;;  %p3568_p8 = scmp.ne.s32.totalorder %s4469_s9, %s3567_s25  ;;  %s61_s21 = int_to_ptr.vmem [resolvable:$true] %s60_s21 }
  0x18   :  { %p3571_p9 = scmp.lt.u32.totalorder %s3567_s25, %s4469_s9 }
  0x1a   :  { %p3573_p10 = pnand %p3571_p9, %p3568_p8 }
  0x1c   :  { %3576 = shalt.err (!%p3573_p10)
}
  0x1d   :  { %s3577_s30 = scalar_lea.vmem %s61_s21, 16  ;;  %s3581_s1 = scalar_lea.vmem %s61_s21, 32 }
  0x1e   :  { %p3578_p11 = scmp.ne.s32.totalorder %s61_s21, %s3577_s30  ;;  %p3582_p12 = scmp.lt.s32.totalorder %s61_s21, %s61_s21 }
  0x1f   :  { %p3583_p13 = scmp.lt.s32.totalorder %s3581_s1, %s3577_s30 }
  0x21   :  { %p3584_p0 = por %p3583_p13, %p3582_p12 }
  0x23   :  { %p3585_p1 = pnand %p3584_p0, %p3578_p11 }
  0x25   :  { %3588 = shalt.err (!%p3585_p1)
}
  0x26   :  { %63 = dma.hbm_to_vmem [thread:$0]  %s4469_s9, 16, %s61_s21, [#allocation10]  }
  0x27   :  { %3655 = dma.done.wait [#allocation7], 128  }
  0x28   :  { %3656 = vsyncadd [#allocation7], 4294967168 }
  0x29   :  { %3657 = dma.done.wait [#allocation10], 16  }
  0x2a   :  { %3658 = vsyncadd [#allocation10], 4294967280  ;;  %vm192_vm0 = vcmask 261120   ;;  %v3667_v0 = vmov 0.0   ;;  %vm3668_vm1 = vmmov 0   ;;  %v3338_v1 = vld [vmem:[#allocation6] sm:$0xff]  }
  0x2b   :  { %3085 = vmatprep.subr.bf16.mxu1 %v3667_v0  ;;  %3089 = vmatprep.mubr.msk.bf16.mxu1 %vm3668_vm1, %v3667_v0  ;;  %193 = vst.msk [vmem:[#allocation4] sm:$0xff] %vm192_vm0, %v3667_v0  ;;  %194 = vst.msk [vmem:[#allocation5] sm:$0xff] %vm192_vm0, %v3667_v0  ;;  %v3797_v2 = vld [vmem:[%s4462_s2] sm:$0xff]   ;;  %s4479_s21 = sld [smem:[#allocation19_spill]]  ;;  %vm106_vm2 = vcmask 130048   ;;  %v3816_v9 = vld [vmem:[%s4462_s2 + $0x8] sm:$0xff]  }
  0x2c   :  { %3075 = vmatprep.subr.bf16.mxu0 %v3338_v1  ;;  %3086 = vmatpush3.bf16.msra.mxu1 %v3797_v2  ;;  %v3837_v12 = vld [vmem:[%s4463_s3] ss:$0 sm:$0xff]  ;;  %s3669_s22 = smov 32   ;;  %s3670_s3 = smov 96  }
  0x2d   :  { %3076 = vmatpush3.bf16.msra.mxu0 %v3338_v1  ;;  %3087 = vmatprep.subr.bf16.mxu1 %v3667_v0 }
  0x2e   :  { %3101 = vmatprep.subr.bf16.mxu0 %v3667_v0 }
  0x30   :  { %3088 = vmatpush3.bf16.msra.mxu1 %v3816_v9 }
  0x31   :  { %v79_v3 = vld [vmem:[%s4479_s21] sm:$0xff]  ;;  %v80_v4 = vld [vmem:[%s4479_s21 + $0x8] sm:$0xff]  ;;  %v81_v5 = vld [vmem:[%s4479_s21 + $0x10] sm:$0xff]  ;;  %3093 = vmatprep.subr.bf16.mxu1 %v3667_v0 }
  0x32   :  { %v87_v6 = vpack.c.bf16 %v80_v4, %v79_v3  ;;  %v82_v7 = vld [vmem:[%s4479_s21 + $0x18] sm:$0xff]  ;;  %v200_v10 = vld [vmem:[#allocation4] sm:$0xff]  ;;  %v265_v24 = vld [vmem:[#allocation5] sm:$0xff] }
  0x33   :  { %v88_v8 = vpack.c.bf16 %v82_v7, %v81_v5  ;;  %v201_v11 = vpack.c.bf16 %v200_v10, %v200_v10  ;;  %v83_v61 = vld [vmem:[%s4479_s21 + $0x20] sm:$0xff]  ;;  %v84_v62 = vld [vmem:[%s4479_s21 + $0x28] sm:$0xff]  ;;  %v85_v63 = vld [vmem:[%s4479_s21 + $0x30] sm:$0xff] }
  0x34   :  { %3077 = vmatprep.mubr.msk.bf16.mxu0 %vm106_vm2, %v87_v6  ;;  %v89_v1 = vpack.c.bf16 %v84_v62, %v83_v61  ;;  %v86_v3 = vld [vmem:[%s4479_s21 + $0x38] sm:$0xff] }
  0x35   :  { %3078 = vmatmul.mubr.msk.bf16.vlgmr.msra.gmra.mrb[0].mxu0 %vm106_vm2, %v88_v8  ;;  %3090 = vmatmul.mubr.msk.bf16.vlgmr.msra.gmra.mrb[0].mxu1 %vm192_vm0, %v201_v11  ;;  %v90_v4 = vpack.c.bf16 %v86_v3, %v85_v63 }
  0x36   :  { %3102 = vmatpush3.bf16.msra.mxu0 %v3797_v2  ;;  %3094 = vmatpush3.bf16.msra.mxu1 %v3797_v2 }
  0x37   :  { %3103 = vmatprep.subr.bf16.mxu0 %v3667_v0  ;;  %3097 = vmatprep.mubr.msk.bf16.mxu1 %vm3668_vm1, %v3667_v0 }
  0x38   :  { %3095 = vmatprep.subr.bf16.mxu1 %v3667_v0  ;;  %3081 = vmatprep.mubr.msk.bf16.mxu0 %vm106_vm2, %v89_v1 }
  0x3a   :  { %3104 = vmatpush3.bf16.msra.mxu0 %v3816_v9  ;;  %3096 = vmatpush3.bf16.msra.mxu1 %v3816_v9 }
  0x3b   :  { %3117 = vmatprep.subr.bf16.mxu0 %v3667_v0  ;;  %3109 = vmatprep.subr.bf16.mxu1 %v3667_v0 }
  0x3d   :  { %3082 = vmatmul.mubr.msk.bf16.gmra.mrb[4].mxu0 %vm106_vm2, %v90_v4 }
  0x3e   :  { %3105 = vmatprep.mubr.msk.bf16.mxu0 %vm3668_vm1, %v3667_v0 }
 0x108   :  { %v3839_v13 = vpop.f32.mrb[0].mxu0  ;;  %v251_v18 = vpop.f32.mrb[0].mxu1 }
 0x109   :  { %v153_v14 = vpop.f32.mrb[1].mxu0  ;;  %v3091_v20 = vpop.f32.mrb[1].mxu1 }
 0x10a   :  { %v154_v15 = vadd.f32 %v3837_v12, %v153_v14  ;;  %v3842_v16 = vpop.f32.mrb[2].mxu0  ;;  %v254_v21 = vpop.f32.mrb[2].mxu1  ;;  %v162_v20 = vadd.f32 %v3839_v13, %v3837_v12 }
 0x10b   :  { %v156_v17 = vpop.f32.mrb[3].mxu0  ;;  %v3092_v22 = vpop.f32.mrb[3].mxu1 }
 0x10c   :  { %v257_v19 = vadd.f32 %v251_v18, %v154_v15  ;;  %v157_v43 = vadd.f32 %v3837_v12, %v156_v17 }
 0x10e   :  { %3353 = vtanh.f32 %v257_v19  ;;  %v2895_v25 = vmul.f32 -1.442695, %v257_v19 }
 0x110   :  { %3355 = vpow2.f32 %v2895_v25  ;;  %v3885_v10 = vpop.f32.mrb[4].mxu0 }
 0x111   :  { %v3887_v11 = vpop.f32.mrb[5].mxu0 }
 0x112   :  { %v3889_v14 = vpop.f32.mrb[6].mxu0 }
 0x113   :  { %v3891_v15 = vpop.f32.mrb[7].mxu0 }
 0x118   :  { %v3354_v23 = vpop.eup %3353 }
 0x119   :  { %272 = vrot.lane.b32.xlu0 %v3354_v23, %s3669_s22 }
 0x11a   :  { %v3356_v26 = vpop.eup %3355 }
 0x11b   :  { %v261_v27 = vadd.f32 1.0, %v3356_v26 }
 0x11d   :  { %267 = vrot.lane.b32.xlu0 %v265_v24, %s3669_s22  ;;  %3357 = vrcp.f32 %v261_v27 }
 0x127   :  { %v3358_v28 = vpop.eup %3357 }
 0x18b   :  { %v273_v29 = vpop.permute.xlu0 %272 }
 0x18c   :  { %v275_v30 = vmul.f32 %v3358_v28, %v273_v29 }
 0x18e   :  { %277 = vrot.lane.b32.xlu1 %v275_v30, %s3669_s22 }
 0x18f   :  { %v268_v31 = vpop.permute.xlu0 %267 }
 0x190   :  { %v270_v32 = vmul.f32 %v3358_v28, %v268_v31 }
 0x200   :  { %v278_v33 = vpop.permute.xlu1 %277 }
 0x201   :  { %v280_v34 = vadd.f32 %v278_v33, %v270_v32 }
 0x203   :  { %3359 = vtanh.f32 %v280_v34 }
 0x20d   :  { %v3360_v35 = vpop.eup %3359 }
 0x20e   :  { %283 = vrot.lane.b32.xlu1 %v3360_v35, %s3669_s22 }
 0x212   :  { %288 = vrot.lane.b32.xlu1 %v280_v34, %s3670_s3 }
 0x280   :  { %v284_v36 = vpop.permute.xlu1 %283 }
 0x281   :  { %v286_v37 = vmul.f32 %v3358_v28, %v284_v36 }
 0x283   :  { %293 = vrot.lane.b32.xlu0 %v286_v37, %s3664_s0 }
 0x284   :  { %v289_v38 = vpop.permute.xlu1 %288 }
 0x285   :  { %291 = vst.msk [vmem:[#allocation5] sm:$0xff] %vm192_vm0, %v289_v38 }
 0x28c   :  { %v353_v39 = vld [vmem:[#allocation5] sm:$0xff] }
 0x28d   :  { %355 = vrot.lane.b32.xlu1 %v353_v39, %s3669_s22 }
 0x2f5   :  { %v294_v40 = vpop.permute.xlu0 %293 }
 0x2f6   :  { %296 = vst.msk [vmem:[#allocation4] sm:$0xff] %vm192_vm0, %v294_v40  ;;  %297 = vst.msk [vmem:[#allocation2] sm:$0xff] %vm192_vm0, %v294_v40 }
 0x2fd   :  { %v300_v41 = vld [vmem:[#allocation4] sm:$0xff] }
 0x2fe   :  { %v301_v42 = vpack.c.bf16 %v300_v41, %v300_v41 }
 0x2ff   :  { %v356_v56 = vpop.permute.xlu1 %355 }
 0x300   :  { %3098 = vmatmul.mubr.msk.bf16.vlgmr.msra.gmra.mrb[4].mxu1 %vm192_vm0, %v301_v42 }
 0x301   :  { %3110 = vmatpush3.bf16.msra.mxu1 %v3797_v2  ;;  %3113 = vmatprep.mubr.msk.bf16.mxu1 %vm3668_vm1, %v3667_v0 }
 0x302   :  { %3111 = vmatprep.subr.bf16.mxu1 %v3667_v0 }
 0x305   :  { %3112 = vmatpush3.bf16.msra.mxu1 %v3816_v9 }
 0x306   :  { %3125 = vmatprep.subr.bf16.mxu1 %v3667_v0 }
 0x3d3   :  { %v339_v44 = vpop.f32.mrb[4].mxu1 }
 0x3d4   :  { %v345_v45 = vadd.f32 %v339_v44, %v157_v43  ;;  %v3099_v46 = vpop.f32.mrb[5].mxu1  ;;  %v165_v44 = vadd.f32 %v3842_v16, %v3837_v12 }
 0x3d5   :  { %v342_v47 = vpop.f32.mrb[6].mxu1 }
 0x3d6   :  { %3361 = vtanh.f32 %v345_v45  ;;  %v3100_v48 = vpop.f32.mrb[7].mxu1  ;;  %v2897_v50 = vmul.f32 -1.442695, %v345_v45 }
 0x3d8   :  { %3363 = vpow2.f32 %v2897_v50 }
 0x3e0   :  { %v3362_v49 = vpop.eup %3361 }
 0x3e1   :  { %360 = vrot.lane.b32.xlu0 %v3362_v49, %s3669_s22 }
 0x3e2   :  { %v3364_v51 = vpop.eup %3363 }
 0x3e3   :  { %v349_v52 = vadd.f32 1.0, %v3364_v51 }
 0x3e5   :  { %3365 = vrcp.f32 %v349_v52 }
 0x3ef   :  { %v3366_v53 = vpop.eup %3365 }
 0x3f0   :  { %v358_v57 = vmul.f32 %v3366_v53, %v356_v56 }
 0x453   :  { %v361_v54 = vpop.permute.xlu0 %360 }
 0x454   :  { %v363_v55 = vmul.f32 %v3366_v53, %v361_v54 }
 0x456   :  { %365 = vrot.lane.b32.xlu0 %v363_v55, %s3669_s22 }
 0x4c8   :  { %v366_v58 = vpop.permute.xlu0 %365 }
 0x4c9   :  { %v368_v59 = vadd.f32 %v366_v58, %v358_v57 }
 0x4cb   :  { %3367 = vtanh.f32 %v368_v59 }
 0x4d5   :  { %v3368_v60 = vpop.eup %3367 }
 0x4d6   :  { %371 = vrot.lane.b32.xlu1 %v3368_v60, %s3669_s22 }
 0x4da   :  { %376 = vrot.lane.b32.xlu1 %v368_v59, %s3670_s3 }
 0x548   :  { %v372_v5 = vpop.permute.xlu1 %371 }
 0x549   :  { %v374_v6 = vmul.f32 %v3366_v53, %v372_v5 }
 0x54b   :  { %381 = vrot.lane.b32.xlu0 %v374_v6, %s3664_s0  ;;  %v170_v6 = vadd.f32 %v3837_v12, %v3887_v11 }
 0x54c   :  { %v377_v7 = vpop.permute.xlu1 %376 }
 0x54d   :  { %379 = vst.msk [vmem:[#allocation5] sm:$0xff] %vm192_vm0, %v377_v7 }
 0x554   :  { %v442_v8 = vld [vmem:[#allocation5] sm:$0xff] }
 0x555   :  { %444 = vrot.lane.b32.xlu1 %v442_v8, %s3669_s22 }
 0x5bd   :  { %v382_v17 = vpop.permute.xlu0 %381 }
 0x5be   :  { %384 = vst.msk [vmem:[#allocation4] sm:$0xff] %vm192_vm0, %v382_v17  ;;  %386 = vst.msk [vmem:[#allocation2 + $0x8] sm:$0xff] %vm192_vm0, %v382_v17 }
 0x5c5   :  { %v389_v18 = vld [vmem:[#allocation4] sm:$0xff] }
 0x5c6   :  { %v390_v19 = vpack.c.bf16 %v389_v18, %v389_v18 }
 0x5c7   :  { %v445_v13 = vpop.permute.xlu1 %444 }
 0x5c8   :  { %3106 = vmatmul.mubr.msk.bf16.vlgmr.msra.gmra.mrb[8].mxu0 %vm192_vm0, %v390_v19 }
 0x5c9   :  { %3118 = vmatpush3.bf16.msra.mxu0 %v3797_v2  ;;  %3121 = vmatprep.mubr.msk.bf16.mxu0 %vm3668_vm1, %v3667_v0 }
 0x5ca   :  { %3119 = vmatprep.subr.bf16.mxu0 %v3667_v0 }
 0x5cd   :  { %3120 = vmatpush3.bf16.msra.mxu0 %v3816_v9 }
 0x5ce   :  { %3133 = vmatprep.subr.bf16.mxu0 %v3667_v0 }
 0x69b   :  { %v428_v21 = vpop.f32.mrb[8].mxu0 }
 0x69c   :  { %v434_v22 = vadd.f32 %v428_v21, %v162_v20  ;;  %v3107_v23 = vpop.f32.mrb[9].mxu0 }
 0x69d   :  { %v431_v24 = vpop.f32.mrb[10].mxu0 }
 0x69e   :  { %3369 = vtanh.f32 %v434_v22  ;;  %v3108_v25 = vpop.f32.mrb[11].mxu0  ;;  %v2899_v27 = vmul.f32 -1.442695, %v434_v22 }
 0x6a0   :  { %3371 = vpow2.f32 %v2899_v27 }
 0x6a8   :  { %v3370_v26 = vpop.eup %3369 }
 0x6a9   :  { %449 = vrot.lane.b32.xlu0 %v3370_v26, %s3669_s22 }
 0x6aa   :  { %v3372_v28 = vpop.eup %3371 }
 0x6ab   :  { %v438_v29 = vadd.f32 1.0, %v3372_v28 }
 0x6ad   :  { %3373 = vrcp.f32 %v438_v29 }
 0x6b7   :  { %v3374_v30 = vpop.eup %3373 }
 0x6b8   :  { %v447_v33 = vmul.f32 %v3374_v30, %v445_v13 }
 0x71b   :  { %v450_v31 = vpop.permute.xlu0 %449 }
 0x71c   :  { %v452_v32 = vmul.f32 %v3374_v30, %v450_v31 }
 0x71e   :  { %454 = vrot.lane.b32.xlu0 %v452_v32, %s3669_s22 }
 0x790   :  { %v455_v34 = vpop.permute.xlu0 %454 }
 0x791   :  { %v457_v35 = vadd.f32 %v455_v34, %v447_v33 }
 0x793   :  { %3375 = vtanh.f32 %v457_v35 }
 0x79d   :  { %v3376_v36 = vpop.eup %3375 }
 0x79e   :  { %460 = vrot.lane.b32.xlu1 %v3376_v36, %s3669_s22 }
 0x7a2   :  { %465 = vrot.lane.b32.xlu1 %v457_v35, %s3670_s3 }
 0x810   :  { %v461_v37 = vpop.permute.xlu1 %460 }
 0x811   :  { %v463_v38 = vmul.f32 %v3374_v30, %v461_v37  ;;  %v173_v37 = vadd.f32 %v3837_v12, %v3891_v15 }
 0x813   :  { %470 = vrot.lane.b32.xlu0 %v463_v38, %s3664_s0 }
 0x814   :  { %v466_v39 = vpop.permute.xlu1 %465 }
 0x815   :  { %468 = vst.msk [vmem:[#allocation5] sm:$0xff] %vm192_vm0, %v466_v39 }
 0x81c   :  { %v531_v40 = vld [vmem:[#allocation5] sm:$0xff] }
 0x81d   :  { %533 = vrot.lane.b32.xlu1 %v531_v40, %s3669_s22 }
 0x885   :  { %v471_v41 = vpop.permute.xlu0 %470 }
 0x886   :  { %473 = vst.msk [vmem:[#allocation4] sm:$0xff] %vm192_vm0, %v471_v41  ;;  %475 = vst.msk [vmem:[#allocation2 + $0x10] sm:$0xff] %vm192_vm0, %v471_v41 }
 0x88d   :  { %v478_v42 = vld [vmem:[#allocation4] sm:$0xff] }
 0x88e   :  { %v479_v43 = vpack.c.bf16 %v478_v42, %v478_v42 }
 0x88f   :  { %v534_v16 = vpop.permute.xlu1 %533 }
 0x890   :  { %3114 = vmatmul.mubr.msk.bf16.vlgmr.msra.gmra.mrb[8].mxu1 %vm192_vm0, %v479_v43 }
 0x891   :  { %3126 = vmatpush3.bf16.msra.mxu1 %v3797_v2  ;;  %3129 = vmatprep.mubr.msk.bf16.mxu1 %vm3668_vm1, %v3667_v0 }
 0x892   :  { %3127 = vmatprep.subr.bf16.mxu1 %v3667_v0 }
 0x895   :  { %3128 = vmatpush3.bf16.msra.mxu1 %v3816_v9 }
 0x896   :  { %3141 = vmatprep.subr.bf16.mxu1 %v3667_v0 }
 0x963   :  { %v517_v45 = vpop.f32.mrb[8].mxu1 }
 0x964   :  { %v523_v46 = vadd.f32 %v517_v45, %v165_v44  ;;  %v3115_v47 = vpop.f32.mrb[9].mxu1 }
 0x965   :  { %v520_v48 = vpop.f32.mrb[10].mxu1 }
 0x966   :  { %3377 = vtanh.f32 %v523_v46  ;;  %v3116_v49 = vpop.f32.mrb[11].mxu1  ;;  %v2901_v51 = vmul.f32 -1.442695, %v523_v46 }
 0x968   :  { %3379 = vpow2.f32 %v2901_v51 }
 0x970   :  { %v3378_v50 = vpop.eup %3377 }
 0x971   :  { %538 = vrot.lane.b32.xlu0 %v3378_v50, %s3669_s22 }
 0x972   :  { %v3380_v52 = vpop.eup %3379 }
 0x973   :  { %v527_v53 = vadd.f32 1.0, %v3380_v52  ;;  %v3341_v52 = vld [vmem:[%s4464_s4] sm:$0xff]  }
 0x975   :  { %3381 = vrcp.f32 %v527_v53 }
 0x97f   :  { %v3382_v54 = vpop.eup %3381 }
 0x980   :  { %v536_v57 = vmul.f32 %v3382_v54, %v534_v16 }
 0x9e3   :  { %v539_v55 = vpop.permute.xlu0 %538 }
 0x9e4   :  { %v541_v56 = vmul.f32 %v3382_v54, %v539_v55 }
 0x9e6   :  { %543 = vrot.lane.b32.xlu0 %v541_v56, %s3669_s22 }
 0xa58   :  { %v544_v58 = vpop.permute.xlu0 %543 }
 0xa59   :  { %v546_v59 = vadd.f32 %v544_v58, %v536_v57  ;;  %v926_v57 = vld [vmem:[#allocation2 + $0x8] sm:$0xff] }
 0xa5b   :  { %3383 = vtanh.f32 %v546_v59 }
 0xa65   :  { %v3384_v60 = vpop.eup %3383 }
 0xa66   :  { %549 = vrot.lane.b32.xlu1 %v3384_v60, %s3669_s22  ;;  %v925_v60 = vld [vmem:[#allocation2] sm:$0xff] }
 0xa6a   :  { %554 = vrot.lane.b32.xlu1 %v546_v59, %s3670_s3 }
 0xad8   :  { %v550_v61 = vpop.permute.xlu1 %549 }
 0xad9   :  { %v552_v62 = vmul.f32 %v3382_v54, %v550_v61  ;;  %v3342_v61 = vld [vmem:[%s4464_s4 + $0x8] sm:$0xff]  }
 0xadb   :  { %559 = vrot.lane.b32.xlu0 %v552_v62, %s3664_s0  ;;  %v933_v62 = vpack.c.bf16 %v926_v57, %v925_v60 }
 0xadc   :  { %v555_v63 = vpop.permute.xlu1 %554 }
 0xadd   :  { %557 = vst.msk [vmem:[#allocation5] sm:$0xff] %vm192_vm0, %v555_v63 }
 0xae4   :  { %v620_v1 = vld [vmem:[#allocation5] sm:$0xff] }
 0xae5   :  { %622 = vrot.lane.b32.xlu1 %v620_v1, %s3669_s22 }
 0xb4d   :  { %v560_v3 = vpop.permute.xlu0 %559 }
 0xb4e   :  { %562 = vst.msk [vmem:[#allocation4] sm:$0xff] %vm192_vm0, %v560_v3  ;;  %564 = vst.msk [vmem:[#allocation2 + $0x18] sm:$0xff] %vm192_vm0, %v560_v3  ;;  %v927_v3 = vld [vmem:[#allocation2 + $0x10] sm:$0xff] }
 0xb55   :  { %v567_v4 = vld [vmem:[#allocation4] sm:$0xff]  ;;  %v928_v63 = vld [vmem:[#allocation2 + $0x18] sm:$0xff] }
 0xb56   :  { %v568_v5 = vpack.c.bf16 %v567_v4, %v567_v4  ;;  %v934_v4 = vpack.c.bf16 %v928_v63, %v927_v3 }
 0xb57   :  { %v623_v11 = vpop.permute.xlu1 %622 }
 0xb58   :  { %3122 = vmatmul.mubr.msk.bf16.vlgmr.msra.gmra.mrb[12].mxu0 %vm192_vm0, %v568_v5 }
 0xb59   :  { %3134 = vmatpush3.bf16.msra.mxu0 %v3797_v2  ;;  %3137 = vmatprep.mubr.msk.bf16.mxu0 %vm3668_vm1, %v3667_v0 }
 0xb5a   :  { %3135 = vmatprep.subr.bf16.mxu0 %v3667_v0 }
 0xb5d   :  { %3136 = vmatpush3.bf16.msra.mxu0 %v3816_v9 }
 0xb5e   :  { %3149 = vmatprep.subr.bf16.mxu0 %v3341_v52 }
 0xc2b   :  { %v606_v7 = vpop.f32.mrb[12].mxu0 }
 0xc2c   :  { %v612_v8 = vadd.f32 %v606_v7, %v170_v6  ;;  %v3123_v17 = vpop.f32.mrb[13].mxu0  ;;  %v178_v7 = vadd.f32 %v3885_v10, %v3837_v12 }
 0xc2d   :  { %v609_v18 = vpop.f32.mrb[14].mxu0 }
 0xc2e   :  { %3385 = vtanh.f32 %v612_v8  ;;  %v3124_v19 = vpop.f32.mrb[15].mxu0  ;;  %v2903_v21 = vmul.f32 -1.442695, %v612_v8 }
 0xc30   :  { %3387 = vpow2.f32 %v2903_v21 }
 0xc38   :  { %v3386_v20 = vpop.eup %3385 }
 0xc39   :  { %627 = vrot.lane.b32.xlu0 %v3386_v20, %s3669_s22 }
 0xc3a   :  { %v3388_v22 = vpop.eup %3387 }
 0xc3b   :  { %v616_v23 = vadd.f32 1.0, %v3388_v22 }
 0xc3d   :  { %3389 = vrcp.f32 %v616_v23 }
 0xc47   :  { %v3390_v24 = vpop.eup %3389 }
 0xc48   :  { %v625_v27 = vmul.f32 %v3390_v24, %v623_v11 }
 0xcab   :  { %v628_v25 = vpop.permute.xlu0 %627 }
 0xcac   :  { %v630_v26 = vmul.f32 %v3390_v24, %v628_v25 }
 0xcae   :  { %632 = vrot.lane.b32.xlu0 %v630_v26, %s3669_s22 }
 0xd20   :  { %v633_v28 = vpop.permute.xlu0 %632 }
 0xd21   :  { %v635_v29 = vadd.f32 %v633_v28, %v625_v27 }
 0xd23   :  { %3391 = vtanh.f32 %v635_v29 }
 0xd2d   :  { %v3392_v30 = vpop.eup %3391 }
 0xd2e   :  { %638 = vrot.lane.b32.xlu1 %v3392_v30, %s3669_s22 }
 0xd32   :  { %643 = vrot.lane.b32.xlu1 %v635_v29, %s3670_s3 }
 0xda0   :  { %v639_v31 = vpop.permute.xlu1 %638 }
 0xda1   :  { %v641_v32 = vmul.f32 %v3390_v24, %v639_v31 }
 0xda3   :  { %648 = vrot.lane.b32.xlu0 %v641_v32, %s3664_s0 }
 0xda4   :  { %v644_v13 = vpop.permute.xlu1 %643 }
 0xda5   :  { %646 = vst.msk [vmem:[#allocation5] sm:$0xff] %vm192_vm0, %v644_v13 }
 0xdac   :  { %v709_v33 = vld [vmem:[#allocation5] sm:$0xff] }
 0xdad   :  { %711 = vrot.lane.b32.xlu1 %v709_v33, %s3669_s22 }
 0xe15   :  { %v649_v34 = vpop.permute.xlu0 %648 }
 0xe16   :  { %651 = vst.msk [vmem:[#allocation4] sm:$0xff] %vm192_vm0, %v649_v34  ;;  %653 = vst.msk [vmem:[#allocation2 + $0x20] sm:$0xff] %vm192_vm0, %v649_v34 }
 0xe1d   :  { %v656_v35 = vld [vmem:[#allocation4] sm:$0xff] }
 0xe1e   :  { %v657_v36 = vpack.c.bf16 %v656_v35, %v656_v35  ;;  %v929_v5 = vld [vmem:[#allocation2 + $0x20] sm:$0xff] }
 0xe1f   :  { %v712_v15 = vpop.permute.xlu1 %711 }
 0xe20   :  { %3130 = vmatmul.mubr.msk.bf16.vlgmr.msra.gmra.mrb[12].mxu1 %vm192_vm0, %v657_v36 }
 0xe21   :  { %3142 = vmatpush3.bf16.msra.mxu1 %v3797_v2  ;;  %3145 = vmatprep.mubr.msk.bf16.mxu1 %vm3668_vm1, %v3667_v0 }
 0xe22   :  { %3143 = vmatprep.subr.bf16.mxu1 %v3667_v0 }
 0xe25   :  { %3144 = vmatpush3.bf16.msra.mxu1 %v3816_v9 }
 0xe26   :  { %3161 = vmatprep.subr.bf16.mxu1 %v3667_v0 }
 0xef3   :  { %v695_v38 = vpop.f32.mrb[12].mxu1 }
 0xef4   :  { %v701_v39 = vadd.f32 %v695_v38, %v173_v37  ;;  %v3131_v40 = vpop.f32.mrb[13].mxu1 }
 0xef5   :  { %v698_v41 = vpop.f32.mrb[14].mxu1 }
 0xef6   :  { %3393 = vtanh.f32 %v701_v39  ;;  %v3132_v42 = vpop.f32.mrb[15].mxu1  ;;  %v2905_v2 = vmul.f32 -1.442695, %v701_v39  ;;  %v181_v41 = vadd.f32 %v3889_v14, %v3837_v12 }
 0xef8   :  { %3395 = vpow2.f32 %v2905_v2 }
 0xf00   :  { %v3394_v43 = vpop.eup %3393 }
 0xf01   :  { %716 = vrot.lane.b32.xlu0 %v3394_v43, %s3669_s22 }
 0xf02   :  { %v3396_v44 = vpop.eup %3395 }
 0xf03   :  { %v705_v45 = vadd.f32 1.0, %v3396_v44 }
 0xf05   :  { %3397 = vrcp.f32 %v705_v45 }
 0xf0f   :  { %v3398_v9 = vpop.eup %3397 }
 0xf10   :  { %v714_v48 = vmul.f32 %v3398_v9, %v712_v15 }
 0xf73   :  { %v717_v46 = vpop.permute.xlu0 %716 }
 0xf74   :  { %v719_v47 = vmul.f32 %v3398_v9, %v717_v46 }
 0xf76   :  { %721 = vrot.lane.b32.xlu0 %v719_v47, %s3669_s22 }
 0xfe8   :  { %v722_v49 = vpop.permute.xlu0 %721 }
 0xfe9   :  { %v724_v50 = vadd.f32 %v722_v49, %v714_v48 }
 0xfeb   :  { %3399 = vtanh.f32 %v724_v50 }
 0xff5   :  { %v3400_v51 = vpop.eup %3399 }
 0xff6   :  { %727 = vrot.lane.b32.xlu1 %v3400_v51, %s3669_s22 }
 0xffa   :  { %732 = vrot.lane.b32.xlu1 %v724_v50, %s3670_s3 }
0x1068   :  { %v728_v53 = vpop.permute.xlu1 %727 }
0x1069   :  { %v730_v54 = vmul.f32 %v3398_v9, %v728_v53 }
0x106b   :  { %737 = vrot.lane.b32.xlu0 %v730_v54, %s3664_s0  ;;  %v4008_v54 = vld [vmem:[%s4465_s5] sm:$0xff]  }
0x106c   :  { %v733_v55 = vpop.permute.xlu1 %732 }
0x106d   :  { %735 = vst.msk [vmem:[#allocation5] sm:$0xff] %vm192_vm0, %v733_v55 }
0x1074   :  { %v798_v56 = vld [vmem:[#allocation5] sm:$0xff] }
0x1075   :  { %800 = vrot.lane.b32.xlu1 %v798_v56, %s3669_s22 }
0x10dd   :  { %v738_v16 = vpop.permute.xlu0 %737 }
0x10de   :  { %740 = vst.msk [vmem:[#allocation4] sm:$0xff] %vm192_vm0, %v738_v16  ;;  %742 = vst.msk [vmem:[#allocation2 + $0x28] sm:$0xff] %vm192_vm0, %v738_v16  ;;  %v4014_v16 = vld [vmem:[%s4465_s5 + $0x8] sm:$0xff]  }
0x10e5   :  { %v745_v58 = vld [vmem:[#allocation4] sm:$0xff]  ;;  %v930_v1 = vld [vmem:[#allocation2 + $0x28] sm:$0xff] }
0x10e6   :  { %v746_v59 = vpack.c.bf16 %v745_v58, %v745_v58  ;;  %v935_v6 = vpack.c.bf16 %v930_v1, %v929_v5 }
0x10e7   :  { %v801_v30 = vpop.permute.xlu1 %800 }
0x10e8   :  { %3138 = vmatmul.mubr.msk.bf16.vlgmr.msra.gmra.mrb[16].mxu0 %vm192_vm0, %v746_v59 }
0x10e9   :  { %3150 = vmatpush3.bf16.msra.mxu0 %v3341_v52  ;;  %3153 = vmatprep.mubr.msk.bf16.mxu0 %vm192_vm0, %v933_v62 }
0x10ea   :  { %3151 = vmatprep.subr.bf16.mxu0 %v3342_v61 }
0x10ed   :  { %3152 = vmatpush3.bf16.msra.mxu0 %v3342_v61 }
0x10ee   :  { %3177 = vmatprep.subr.bf16.mxu0 %v3667_v0 }
0x10f0   :  { %3154 = vmatmul.mubr.msk.bf16.vlgmr.msra.gmra.mrb[20].mxu0 %vm192_vm0, %v934_v4 }
0x10f1   :  { %3157 = vmatprep.mubr.msk.bf16.mxu0 %vm192_vm0, %v935_v6  ;;  %3178 = vmatpush3.bf16.msra.mxu0 %v4008_v54 }
0x10f2   :  { %3179 = vmatprep.subr.bf16.mxu0 %v3667_v0 }
0x10f5   :  { %3180 = vmatpush3.bf16.msra.mxu0 %v4014_v16 }
0x10f6   :  { %3193 = vmatprep.subr.bf16.mxu0 %v3667_v0 }
0x11bb   :  { %v784_v8 = vpop.f32.mrb[16].mxu0 }
0x11bc   :  { %v790_v17 = vadd.f32 %v784_v8, %v178_v7  ;;  %v3139_v18 = vpop.f32.mrb[17].mxu0 }
0x11bd   :  { %v787_v19 = vpop.f32.mrb[18].mxu0 }
0x11be   :  { %3401 = vtanh.f32 %v790_v17  ;;  %v3140_v20 = vpop.f32.mrb[19].mxu0  ;;  %v2907_v26 = vmul.f32 -1.442695, %v790_v17  ;;  %v4055_v17 = vld [vmem:[%s4466_s6] ss:$0 sm:$0xff] }
0x11c0   :  { %3403 = vpow2.f32 %v2907_v26 }
0x11c3   :  { %v3979_v21 = vpop.f32.mrb[20].mxu0 }
0x11c4   :  { %v3981_v22 = vpop.f32.mrb[21].mxu0 }
0x11c5   :  { %v3983_v23 = vpop.f32.mrb[22].mxu0  ;;  %v1007_v18 = vadd.f32 %v4055_v17, %v3981_v22 }
0x11c6   :  { %v3985_v24 = vpop.f32.mrb[23].mxu0 }
0x11c8   :  { %v3402_v25 = vpop.eup %3401 }
0x11c9   :  { %805 = vrot.lane.b32.xlu0 %v3402_v25, %s3669_s22 }
0x11ca   :  { %v3404_v10 = vpop.eup %3403 }
0x11cb   :  { %v794_v11 = vadd.f32 1.0, %v3404_v10 }
0x11cd   :  { %3405 = vrcp.f32 %v794_v11 }
0x11d7   :  { %v3406_v27 = vpop.eup %3405 }
0x11d8   :  { %v803_v31 = vmul.f32 %v3406_v27, %v801_v30 }
0x123b   :  { %v806_v28 = vpop.permute.xlu0 %805 }
0x123c   :  { %v808_v29 = vmul.f32 %v3406_v27, %v806_v28 }
0x123e   :  { %810 = vrot.lane.b32.xlu0 %v808_v29, %s3669_s22 }
0x12b0   :  { %v811_v32 = vpop.permute.xlu0 %810 }
0x12b1   :  { %v813_v13 = vadd.f32 %v811_v32, %v803_v31 }
0x12b3   :  { %3407 = vtanh.f32 %v813_v13 }
0x12bd   :  { %v3408_v33 = vpop.eup %3407 }
0x12be   :  { %816 = vrot.lane.b32.xlu1 %v3408_v33, %s3669_s22 }
0x12c2   :  { %821 = vrot.lane.b32.xlu1 %v813_v13, %s3670_s3 }
0x1330   :  { %v817_v34 = vpop.permute.xlu1 %816 }
0x1331   :  { %v819_v35 = vmul.f32 %v3406_v27, %v817_v34 }
0x1333   :  { %826 = vrot.lane.b32.xlu0 %v819_v35, %s3664_s0 }
0x1334   :  { %v822_v36 = vpop.permute.xlu1 %821 }
0x1335   :  { %824 = vst.msk [vmem:[#allocation5] sm:$0xff] %vm192_vm0, %v822_v36 }
0x133c   :  { %v887_v37 = vld [vmem:[#allocation5] sm:$0xff] }
0x133d   :  { %889 = vrot.lane.b32.xlu1 %v887_v37, %s3669_s22 }
0x13a5   :  { %v827_v38 = vpop.permute.xlu0 %826 }
0x13a6   :  { %829 = vst.msk [vmem:[#allocation4] sm:$0xff] %vm192_vm0, %v827_v38  ;;  %831 = vst.msk [vmem:[#allocation2 + $0x30] sm:$0xff] %vm192_vm0, %v827_v38 }
0x13ad   :  { %v834_v39 = vld [vmem:[#allocation4] sm:$0xff]  ;;  %v931_v62 = vld [vmem:[#allocation2 + $0x30] sm:$0xff] }
0x13ae   :  { %v835_v40 = vpack.c.bf16 %v834_v39, %v834_v39 }
0x13af   :  { %v890_v12 = vpop.permute.xlu1 %889 }
0x13b0   :  { %3146 = vmatmul.mubr.msk.bf16.vlgmr.msra.gmra.mrb[16].mxu1 %vm192_vm0, %v835_v40 }
0x13b1   :  { %3165 = vmatprep.mubr.msk.bf16.mxu1 %vm3668_vm1, %v3667_v0  ;;  %3162 = vmatpush3.bf16.msra.mxu1 %v4008_v54 }
0x13b2   :  { %3163 = vmatprep.subr.bf16.mxu1 %v3667_v0 }
0x13b5   :  { %3164 = vmatpush3.bf16.msra.mxu1 %v4014_v16 }
0x13b6   :  { %3169 = vmatprep.subr.bf16.mxu1 %v3667_v0 }
0x1483   :  { %v873_v42 = vpop.f32.mrb[16].mxu1 }
0x1484   :  { %v879_v43 = vadd.f32 %v873_v42, %v181_v41  ;;  %v3147_v2 = vpop.f32.mrb[17].mxu1 }
0x1485   :  { %v876_v44 = vpop.f32.mrb[18].mxu1 }
0x1486   :  { %3409 = vtanh.f32 %v879_v43  ;;  %v3148_v45 = vpop.f32.mrb[19].mxu1  ;;  %v2909_v46 = vmul.f32 -1.442695, %v879_v43  ;;  %v1010_v43 = vadd.f32 %v4055_v17, %v3985_v24 }
0x1488   :  { %3411 = vpow2.f32 %v2909_v46 }
0x1490   :  { %v3410_v9 = vpop.eup %3409 }
0x1491   :  { %894 = vrot.lane.b32.xlu0 %v3410_v9, %s3669_s22 }
0x1492   :  { %v3412_v47 = vpop.eup %3411 }
0x1493   :  { %v883_v15 = vadd.f32 1.0, %v3412_v47 }
0x1495   :  { %3413 = vrcp.f32 %v883_v15 }
0x149f   :  { %v3414_v48 = vpop.eup %3413 }
0x14a0   :  { %v892_v14 = vmul.f32 %v3414_v48, %v890_v12 }
0x1503   :  { %v895_v49 = vpop.permute.xlu0 %894 }
0x1504   :  { %v897_v50 = vmul.f32 %v3414_v48, %v895_v49 }
0x1506   :  { %899 = vrot.lane.b32.xlu0 %v897_v50, %s3669_s22 }
0x1578   :  { %v900_v51 = vpop.permute.xlu0 %899 }
0x1579   :  { %v902_v52 = vadd.f32 %v900_v51, %v892_v14 }
0x157b   :  { %3415 = vtanh.f32 %v902_v52 }
0x1585   :  { %v3416_v53 = vpop.eup %3415 }
0x1586   :  { %905 = vrot.lane.b32.xlu1 %v3416_v53, %s3669_s22 }
0x158a   :  { %910 = vrot.lane.b32.xlu1 %v902_v52, %s3670_s3 }
0x15f8   :  { %v906_v55 = vpop.permute.xlu1 %905 }
0x15f9   :  { %v908_v56 = vmul.f32 %v3414_v48, %v906_v55 }
0x15fb   :  { %915 = vrot.lane.b32.xlu0 %v908_v56, %s3664_s0 }
0x15fc   :  { %v911_v57 = vpop.permute.xlu1 %910 }
0x15fd   :  { %913 = vst.msk [vmem:[#allocation5] sm:$0xff] %vm192_vm0, %v911_v57 }
0x1604   :  { %v923_v58 = vld [vmem:[#allocation5] sm:$0xff] }
0x1605   :  { %1046 = vst.msk [vmem:[#allocation5] sm:$0xff] %vm192_vm0, %v3667_v0  ;;  %924 = vst.msk [vmem:[#allocation14] sm:$0xff] %vm192_vm0, %v923_v58 }
0x160c   :  { %v1117_v59 = vld [vmem:[#allocation5] sm:$0xff] }
0x160d   :  { %1119 = vrot.lane.b32.xlu1 %v1117_v59, %s3669_s22 }
0x166d   :  { %v916_v60 = vpop.permute.xlu0 %915 }
0x166e   :  { %918 = vst.msk [vmem:[#allocation4] sm:$0xff] %vm192_vm0, %v916_v60  ;;  %920 = vst.msk [vmem:[#allocation2 + $0x38] sm:$0xff] %vm192_vm0, %v916_v60 }
0x1675   :  { %v921_v61 = vld [vmem:[#allocation4] sm:$0xff]  ;;  %v932_v63 = vld [vmem:[#allocation2 + $0x38] sm:$0xff] }
0x1676   :  { %1045 = vst.msk [vmem:[#allocation4] sm:$0xff] %vm192_vm0, %v3667_v0  ;;  %922 = vst.msk [vmem:[#allocation12] sm:$0xff] %vm192_vm0, %v921_v61  ;;  %v936_v1 = vpack.c.bf16 %v932_v63, %v931_v62  ;;  %v1015_v63 = vadd.f32 %v3979_v21, %v4055_v17 }
0x1678   :  { %3158 = vmatmul.mubr.msk.bf16.gmra.mrb[24].mxu0 %vm192_vm0, %v936_v1 }
0x1679   :  { %3181 = vmatprep.mubr.msk.bf16.mxu0 %vm3668_vm1, %v3667_v0 }
0x167d   :  { %v1052_v3 = vld [vmem:[#allocation4] sm:$0xff] }
0x167e   :  { %v1053_v4 = vpack.c.bf16 %v1052_v3, %v1052_v3 }
0x167f   :  { %v1120_v22 = vpop.permute.xlu1 %1119 }
0x1680   :  { %3166 = vmatmul.mubr.msk.bf16.vlgmr.msra.gmra.mrb[20].mxu1 %vm192_vm0, %v1053_v4 }
0x1681   :  { %3170 = vmatpush3.bf16.msra.mxu1 %v4008_v54  ;;  %3173 = vmatprep.mubr.msk.bf16.mxu1 %vm3668_vm1, %v3667_v0 }
0x1682   :  { %3171 = vmatprep.subr.bf16.mxu1 %v3667_v0 }
0x1685   :  { %3172 = vmatpush3.bf16.msra.mxu1 %v4014_v16 }
0x1686   :  { %3185 = vmatprep.subr.bf16.mxu1 %v3667_v0 }
0x174b   :  { %v4044_v5 = vpop.f32.mrb[24].mxu0 }
0x174c   :  { %v4046_v6 = vpop.f32.mrb[25].mxu0 }
0x174d   :  { %v4048_v7 = vpop.f32.mrb[26].mxu0 }
0x174e   :  { %v4050_v8 = vpop.f32.mrb[27].mxu0 }
0x1753   :  { %v1103_v19 = vpop.f32.mrb[20].mxu1 }
0x1754   :  { %v1109_v20 = vadd.f32 %v1103_v19, %v1007_v18  ;;  %v3167_v25 = vpop.f32.mrb[21].mxu1 }
0x1755   :  { %v1106_v26 = vpop.f32.mrb[22].mxu1 }
0x1756   :  { %3417 = vtanh.f32 %v1109_v20  ;;  %v3168_v10 = vpop.f32.mrb[23].mxu1  ;;  %v2920_v27 = vmul.f32 -1.442695, %v1109_v20 }
0x1758   :  { %3419 = vpow2.f32 %v2920_v27 }
0x1760   :  { %v3418_v11 = vpop.eup %3417 }
0x1761   :  { %1124 = vrot.lane.b32.xlu0 %v3418_v11, %s3669_s22 }
0x1762   :  { %v3420_v28 = vpop.eup %3419 }
0x1763   :  { %v1113_v29 = vadd.f32 1.0, %v3420_v28 }
0x1765   :  { %3421 = vrcp.f32 %v1113_v29 }
0x176f   :  { %v3422_v30 = vpop.eup %3421 }
0x1770   :  { %v1122_v13 = vmul.f32 %v3422_v30, %v1120_v22 }
0x17d3   :  { %v1125_v31 = vpop.permute.xlu0 %1124 }
0x17d4   :  { %v1127_v32 = vmul.f32 %v3422_v30, %v1125_v31 }
0x17d6   :  { %1129 = vrot.lane.b32.xlu0 %v1127_v32, %s3669_s22 }
0x1848   :  { %v1130_v33 = vpop.permute.xlu0 %1129 }
0x1849   :  { %v1132_v34 = vadd.f32 %v1130_v33, %v1122_v13 }
0x184b   :  { %3423 = vtanh.f32 %v1132_v34 }
0x1855   :  { %v3424_v35 = vpop.eup %3423 }
0x1856   :  { %1135 = vrot.lane.b32.xlu1 %v3424_v35, %s3669_s22 }
0x185a   :  { %1140 = vrot.lane.b32.xlu1 %v1132_v34, %s3670_s3 }
0x18c8   :  { %v1136_v36 = vpop.permute.xlu1 %1135 }
0x18c9   :  { %v1138_v37 = vmul.f32 %v3422_v30, %v1136_v36 }
0x18cb   :  { %1145 = vrot.lane.b32.xlu0 %v1138_v37, %s3664_s0 }
0x18cc   :  { %v1141_v38 = vpop.permute.xlu1 %1140 }
0x18cd   :  { %1143 = vst.msk [vmem:[#allocation5] sm:$0xff] %vm192_vm0, %v1141_v38  ;;  %v1018_v38 = vadd.f32 %v3983_v23, %v4055_v17 }
0x18d4   :  { %v1204_v39 = vld [vmem:[#allocation5] sm:$0xff] }
0x18d5   :  { %1206 = vrot.lane.b32.xlu1 %v1204_v39, %s3669_s22 }
0x193d   :  { %v1146_v40 = vpop.permute.xlu0 %1145 }
0x193e   :  { %1148 = vst.msk [vmem:[#allocation4] sm:$0xff] %vm192_vm0, %v1146_v40  ;;  %1149 = vst.msk [vmem:[#allocation2] sm:$0xff] %vm192_vm0, %v1146_v40 }
0x1945   :  { %v1151_v41 = vld [vmem:[#allocation4] sm:$0xff] }
0x1946   :  { %v1152_v42 = vpack.c.bf16 %v1151_v41, %v1151_v41 }
0x1947   :  { %v1207_v24 = vpop.permute.xlu1 %1206 }
0x1948   :  { %3174 = vmatmul.mubr.msk.bf16.vlgmr.msra.gmra.mrb[24].mxu1 %vm192_vm0, %v1152_v42 }
0x1949   :  { %3186 = vmatpush3.bf16.msra.mxu1 %v4008_v54  ;;  %3189 = vmatprep.mubr.msk.bf16.mxu1 %vm3668_vm1, %v3667_v0 }
0x194a   :  { %3187 = vmatprep.subr.bf16.mxu1 %v3667_v0 }
0x194d   :  { %3188 = vmatpush3.bf16.msra.mxu1 %v4014_v16 }
0x194e   :  { %3201 = vmatprep.subr.bf16.mxu1 %v3667_v0 }
0x1a1b   :  { %v1190_v2 = vpop.f32.mrb[24].mxu1 }
0x1a1c   :  { %v1196_v44 = vadd.f32 %v1190_v2, %v1010_v43  ;;  %v3175_v45 = vpop.f32.mrb[25].mxu1 }
0x1a1d   :  { %v1193_v9 = vpop.f32.mrb[26].mxu1 }
0x1a1e   :  { %3425 = vtanh.f32 %v1196_v44  ;;  %v3176_v46 = vpop.f32.mrb[27].mxu1  ;;  %v2922_v15 = vmul.f32 -1.442695, %v1196_v44 }
0x1a20   :  { %3427 = vpow2.f32 %v2922_v15 }
0x1a28   :  { %v3426_v47 = vpop.eup %3425 }
0x1a29   :  { %1211 = vrot.lane.b32.xlu0 %v3426_v47, %s3669_s22 }
0x1a2a   :  { %v3428_v48 = vpop.eup %3427 }
0x1a2b   :  { %v1200_v49 = vadd.f32 1.0, %v3428_v48 }
0x1a2d   :  { %3429 = vrcp.f32 %v1200_v49 }
0x1a37   :  { %v3430_v50 = vpop.eup %3429 }
0x1a38   :  { %v1209_v51 = vmul.f32 %v3430_v50, %v1207_v24 }
0x1a9b   :  { %v1212_v12 = vpop.permute.xlu0 %1211 }
0x1a9c   :  { %v1214_v14 = vmul.f32 %v3430_v50, %v1212_v12 }
0x1a9e   :  { %1216 = vrot.lane.b32.xlu0 %v1214_v14, %s3669_s22 }
0x1b10   :  { %v1217_v52 = vpop.permute.xlu0 %1216 }
0x1b11   :  { %v1219_v53 = vadd.f32 %v1217_v52, %v1209_v51 }
0x1b13   :  { %3431 = vtanh.f32 %v1219_v53 }
0x1b1d   :  { %v3432_v55 = vpop.eup %3431 }
0x1b1e   :  { %1222 = vrot.lane.b32.xlu1 %v3432_v55, %s3669_s22 }
0x1b22   :  { %1227 = vrot.lane.b32.xlu1 %v1219_v53, %s3670_s3 }
0x1b90   :  { %v1223_v56 = vpop.permute.xlu1 %1222 }
0x1b91   :  { %v1225_v57 = vmul.f32 %v3430_v50, %v1223_v56 }
0x1b93   :  { %1232 = vrot.lane.b32.xlu0 %v1225_v57, %s3664_s0  ;;  %v1023_v57 = vadd.f32 %v4055_v17, %v4046_v6 }
0x1b94   :  { %v1228_v58 = vpop.permute.xlu1 %1227 }
0x1b95   :  { %1230 = vst.msk [vmem:[#allocation5] sm:$0xff] %vm192_vm0, %v1228_v58 }
0x1b9c   :  { %v1291_v59 = vld [vmem:[#allocation5] sm:$0xff] }
0x1b9d   :  { %1293 = vrot.lane.b32.xlu1 %v1291_v59, %s3669_s22 }
0x1c05   :  { %v1233_v60 = vpop.permute.xlu0 %1232 }
0x1c06   :  { %1235 = vst.msk [vmem:[#allocation4] sm:$0xff] %vm192_vm0, %v1233_v60  ;;  %1236 = vst.msk [vmem:[#allocation2 + $0x8] sm:$0xff] %vm192_vm0, %v1233_v60 }
0x1c0d   :  { %v1238_v61 = vld [vmem:[#allocation4] sm:$0xff] }
0x1c0e   :  { %v1239_v62 = vpack.c.bf16 %v1238_v61, %v1238_v61 }
0x1c0f   :  { %v1294_v21 = vpop.permute.xlu1 %1293 }
0x1c10   :  { %3182 = vmatmul.mubr.msk.bf16.vlgmr.msra.gmra.mrb[28].mxu0 %vm192_vm0, %v1239_v62 }
0x1c11   :  { %3194 = vmatpush3.bf16.msra.mxu0 %v4008_v54  ;;  %3197 = vmatprep.mubr.msk.bf16.mxu0 %vm3668_vm1, %v3667_v0 }
0x1c12   :  { %3195 = vmatprep.subr.bf16.mxu0 %v3667_v0 }
0x1c15   :  { %3196 = vmatpush3.bf16.msra.mxu0 %v4014_v16 }
0x1c16   :  { %3209 = vmatprep.subr.bf16.mxu0 %v3667_v0 }
0x1ce3   :  { %v1277_v1 = vpop.f32.mrb[28].mxu0 }
0x1ce4   :  { %v1283_v3 = vadd.f32 %v1277_v1, %v1015_v63  ;;  %v3183_v4 = vpop.f32.mrb[29].mxu0 }
0x1ce5   :  { %v1280_v18 = vpop.f32.mrb[30].mxu0 }
0x1ce6   :  { %3433 = vtanh.f32 %v1283_v3  ;;  %v3184_v19 = vpop.f32.mrb[31].mxu0  ;;  %v2924_v25 = vmul.f32 -1.442695, %v1283_v3 }
0x1ce8   :  { %3435 = vpow2.f32 %v2924_v25 }
0x1cf0   :  { %v3434_v20 = vpop.eup %3433 }
0x1cf1   :  { %1298 = vrot.lane.b32.xlu0 %v3434_v20, %s3669_s22 }
0x1cf2   :  { %v3436_v26 = vpop.eup %3435 }
0x1cf3   :  { %v1287_v10 = vadd.f32 1.0, %v3436_v26 }
0x1cf5   :  { %3437 = vrcp.f32 %v1287_v10 }
0x1cff   :  { %v3438_v11 = vpop.eup %3437 }
0x1d00   :  { %v1296_v29 = vmul.f32 %v3438_v11, %v1294_v21 }
0x1d63   :  { %v1299_v27 = vpop.permute.xlu0 %1298 }
0x1d64   :  { %v1301_v28 = vmul.f32 %v3438_v11, %v1299_v27 }
0x1d66   :  { %1303 = vrot.lane.b32.xlu0 %v1301_v28, %s3669_s22 }
0x1dd8   :  { %v1304_v30 = vpop.permute.xlu0 %1303 }
0x1dd9   :  { %v1306_v31 = vadd.f32 %v1304_v30, %v1296_v29 }
0x1ddb   :  { %3439 = vtanh.f32 %v1306_v31 }
0x1de5   :  { %v3440_v32 = vpop.eup %3439 }
0x1de6   :  { %1309 = vrot.lane.b32.xlu1 %v3440_v32, %s3669_s22 }
0x1dea   :  { %1314 = vrot.lane.b32.xlu1 %v1306_v31, %s3670_s3 }
0x1e58   :  { %v1310_v22 = vpop.permute.xlu1 %1309 }
0x1e59   :  { %v1312_v13 = vmul.f32 %v3438_v11, %v1310_v22  ;;  %v1026_v22 = vadd.f32 %v4055_v17, %v4050_v8 }
0x1e5b   :  { %1319 = vrot.lane.b32.xlu0 %v1312_v13, %s3664_s0 }
0x1e5c   :  { %v1315_v33 = vpop.permute.xlu1 %1314 }
0x1e5d   :  { %1317 = vst.msk [vmem:[#allocation5] sm:$0xff] %vm192_vm0, %v1315_v33 }
0x1e64   :  { %v1378_v34 = vld [vmem:[#allocation5] sm:$0xff] }
0x1e65   :  { %1380 = vrot.lane.b32.xlu1 %v1378_v34, %s3669_s22 }
0x1ecd   :  { %v1320_v35 = vpop.permute.xlu0 %1319 }
0x1ece   :  { %1322 = vst.msk [vmem:[#allocation4] sm:$0xff] %vm192_vm0, %v1320_v35  ;;  %1323 = vst.msk [vmem:[#allocation2 + $0x10] sm:$0xff] %vm192_vm0, %v1320_v35 }
0x1ed5   :  { %v1325_v36 = vld [vmem:[#allocation4] sm:$0xff] }
0x1ed6   :  { %v1326_v37 = vpack.c.bf16 %v1325_v36, %v1325_v36 }
0x1ed7   :  { %v1381_v23 = vpop.permute.xlu1 %1380 }
0x1ed8   :  { %3190 = vmatmul.mubr.msk.bf16.vlgmr.msra.gmra.mrb[28].mxu1 %vm192_vm0, %v1326_v37 }
0x1ed9   :  { %3202 = vmatpush3.bf16.msra.mxu1 %v4008_v54  ;;  %3205 = vmatprep.mubr.msk.bf16.mxu1 %vm3668_vm1, %v3667_v0 }
0x1eda   :  { %3203 = vmatprep.subr.bf16.mxu1 %v3667_v0 }
0x1edd   :  { %3204 = vmatpush3.bf16.msra.mxu1 %v4014_v16 }
0x1ede   :  { %3217 = vmatprep.subr.bf16.mxu1 %v3667_v0 }
0x1fab   :  { %v1364_v39 = vpop.f32.mrb[28].mxu1 }
0x1fac   :  { %v1370_v40 = vadd.f32 %v1364_v39, %v1018_v38  ;;  %v3191_v41 = vpop.f32.mrb[29].mxu1 }
0x1fad   :  { %v1367_v42 = vpop.f32.mrb[30].mxu1 }
0x1fae   :  { %3441 = vtanh.f32 %v1370_v40  ;;  %v3192_v43 = vpop.f32.mrb[31].mxu1  ;;  %v2926_v44 = vmul.f32 -1.442695, %v1370_v40 }
0x1fb0   :  { %3443 = vpow2.f32 %v2926_v44 }
0x1fb8   :  { %v3442_v2 = vpop.eup %3441 }
0x1fb9   :  { %1385 = vrot.lane.b32.xlu0 %v3442_v2, %s3669_s22 }
0x1fba   :  { %v3444_v45 = vpop.eup %3443 }
0x1fbb   :  { %v1374_v9 = vadd.f32 1.0, %v3444_v45  ;;  %v3345_v45 = vld [vmem:[%s4467_s7] sm:$0xff]  }
0x1fbd   :  { %3445 = vrcp.f32 %v1374_v9 }
0x1fc7   :  { %v3446_v46 = vpop.eup %3445 }
0x1fc8   :  { %v1383_v48 = vmul.f32 %v3446_v46, %v1381_v23 }
0x202b   :  { %v1386_v47 = vpop.permute.xlu0 %1385 }
0x202c   :  { %v1388_v15 = vmul.f32 %v3446_v46, %v1386_v47 }
0x202e   :  { %1390 = vrot.lane.b32.xlu0 %v1388_v15, %s3669_s22 }
0x20a0   :  { %v1391_v49 = vpop.permute.xlu0 %1390 }
0x20a1   :  { %v1393_v50 = vadd.f32 %v1391_v49, %v1383_v48  ;;  %v1766_v48 = vld [vmem:[#allocation2 + $0x8] sm:$0xff] }
0x20a3   :  { %3447 = vtanh.f32 %v1393_v50 }
0x20ad   :  { %v3448_v12 = vpop.eup %3447 }
0x20ae   :  { %1396 = vrot.lane.b32.xlu1 %v3448_v12, %s3669_s22  ;;  %v1765_v12 = vld [vmem:[#allocation2] sm:$0xff] }
0x20b2   :  { %1401 = vrot.lane.b32.xlu1 %v1393_v50, %s3670_s3 }
0x2120   :  { %v1397_v14 = vpop.permute.xlu1 %1396 }
0x2121   :  { %v1399_v24 = vmul.f32 %v3446_v46, %v1397_v14  ;;  %v3346_v14 = vld [vmem:[%s4467_s7 + $0x8] sm:$0xff]  }
0x2123   :  { %1406 = vrot.lane.b32.xlu0 %v1399_v24, %s3664_s0  ;;  %v1773_v24 = vpack.c.bf16 %v1766_v48, %v1765_v12 }
0x2124   :  { %v1402_v51 = vpop.permute.xlu1 %1401 }
0x2125   :  { %1404 = vst.msk [vmem:[#allocation5] sm:$0xff] %vm192_vm0, %v1402_v51 }
0x212c   :  { %v1465_v52 = vld [vmem:[#allocation5] sm:$0xff] }
0x212d   :  { %1467 = vrot.lane.b32.xlu1 %v1465_v52, %s3669_s22 }
0x2195   :  { %v1407_v53 = vpop.permute.xlu0 %1406 }
0x2196   :  { %1409 = vst.msk [vmem:[#allocation4] sm:$0xff] %vm192_vm0, %v1407_v53  ;;  %1410 = vst.msk [vmem:[#allocation2 + $0x18] sm:$0xff] %vm192_vm0, %v1407_v53  ;;  %v1767_v53 = vld [vmem:[#allocation2 + $0x10] sm:$0xff] }
0x219d   :  { %v1412_v55 = vld [vmem:[#allocation4] sm:$0xff]  ;;  %v1768_v51 = vld [vmem:[#allocation2 + $0x18] sm:$0xff] }
0x219e   :  { %v1413_v56 = vpack.c.bf16 %v1412_v55, %v1412_v55  ;;  %v1774_v55 = vpack.c.bf16 %v1768_v51, %v1767_v53 }
0x219f   :  { %v1468_v6 = vpop.permute.xlu1 %1467 }
0x21a0   :  { %3198 = vmatmul.mubr.msk.bf16.vlgmr.msra.gmra.mrb[32].mxu0 %vm192_vm0, %v1413_v56 }
0x21a1   :  { %3210 = vmatpush3.bf16.msra.mxu0 %v4008_v54  ;;  %3213 = vmatprep.mubr.msk.bf16.mxu0 %vm3668_vm1, %v3667_v0 }
0x21a2   :  { %3211 = vmatprep.subr.bf16.mxu0 %v3667_v0 }
0x21a5   :  { %3212 = vmatpush3.bf16.msra.mxu0 %v4014_v16 }
0x21a6   :  { %3225 = vmatprep.subr.bf16.mxu0 %v3345_v45 }
0x2273   :  { %v1451_v58 = vpop.f32.mrb[32].mxu0 }
0x2274   :  { %v1457_v59 = vadd.f32 %v1451_v58, %v1023_v57  ;;  %v3199_v60 = vpop.f32.mrb[33].mxu0  ;;  %v1031_v58 = vadd.f32 %v4044_v5, %v4055_v17 }
0x2275   :  { %v1454_v61 = vpop.f32.mrb[34].mxu0 }
0x2276   :  { %3449 = vtanh.f32 %v1457_v59  ;;  %v3200_v62 = vpop.f32.mrb[35].mxu0  ;;  %v2928_v1 = vmul.f32 -1.442695, %v1457_v59 }
0x2278   :  { %3451 = vpow2.f32 %v2928_v1 }
0x2280   :  { %v3450_v63 = vpop.eup %3449 }
0x2281   :  { %1472 = vrot.lane.b32.xlu0 %v3450_v63, %s3669_s22 }
0x2282   :  { %v3452_v3 = vpop.eup %3451 }
0x2283   :  { %v1461_v4 = vadd.f32 1.0, %v3452_v3 }
0x2285   :  { %3453 = vrcp.f32 %v1461_v4 }
0x228f   :  { %v3454_v18 = vpop.eup %3453 }
0x2290   :  { %v1470_v25 = vmul.f32 %v3454_v18, %v1468_v6 }
0x22f3   :  { %v1473_v19 = vpop.permute.xlu0 %1472 }
0x22f4   :  { %v1475_v20 = vmul.f32 %v3454_v18, %v1473_v19 }
0x22f6   :  { %1477 = vrot.lane.b32.xlu0 %v1475_v20, %s3669_s22 }
0x2368   :  { %v1478_v26 = vpop.permute.xlu0 %1477 }
0x2369   :  { %v1480_v10 = vadd.f32 %v1478_v26, %v1470_v25 }
0x236b   :  { %3455 = vtanh.f32 %v1480_v10 }
0x2375   :  { %v3456_v11 = vpop.eup %3455 }
0x2376   :  { %1483 = vrot.lane.b32.xlu1 %v3456_v11, %s3669_s22 }
0x237a   :  { %1488 = vrot.lane.b32.xlu1 %v1480_v10, %s3670_s3 }
0x23e8   :  { %v1484_v27 = vpop.permute.xlu1 %1483 }
0x23e9   :  { %v1486_v28 = vmul.f32 %v3454_v18, %v1484_v27 }
0x23eb   :  { %1493 = vrot.lane.b32.xlu0 %v1486_v28, %s3664_s0 }
0x23ec   :  { %v1489_v21 = vpop.permute.xlu1 %1488 }
0x23ed   :  { %1491 = vst.msk [vmem:[#allocation5] sm:$0xff] %vm192_vm0, %v1489_v21 }
0x23f4   :  { %v1552_v29 = vld [vmem:[#allocation5] sm:$0xff] }
0x23f5   :  { %1554 = vrot.lane.b32.xlu1 %v1552_v29, %s3669_s22 }
0x245d   :  { %v1494_v30 = vpop.permute.xlu0 %1493 }
0x245e   :  { %1496 = vst.msk [vmem:[#allocation4] sm:$0xff] %vm192_vm0, %v1494_v30  ;;  %1497 = vst.msk [vmem:[#allocation2 + $0x20] sm:$0xff] %vm192_vm0, %v1494_v30 }
0x2465   :  { %v1499_v31 = vld [vmem:[#allocation4] sm:$0xff] }
0x2466   :  { %v1500_v32 = vpack.c.bf16 %v1499_v31, %v1499_v31  ;;  %v1769_v56 = vld [vmem:[#allocation2 + $0x20] sm:$0xff] }
0x2467   :  { %v1555_v8 = vpop.permute.xlu1 %1554 }
0x2468   :  { %3206 = vmatmul.mubr.msk.bf16.vlgmr.msra.gmra.mrb[32].mxu1 %vm192_vm0, %v1500_v32 }
0x2469   :  { %3218 = vmatpush3.bf16.msra.mxu1 %v4008_v54  ;;  %3221 = vmatprep.mubr.msk.bf16.mxu1 %vm3668_vm1, %v3667_v0 }
0x246a   :  { %3219 = vmatprep.subr.bf16.mxu1 %v3667_v0 }
0x246d   :  { %3220 = vmatpush3.bf16.msra.mxu1 %v4014_v16 }
0x246e   :  { %3237 = vmatprep.subr.bf16.mxu1 %v3667_v0 }
0x253b   :  { %v1538_v13 = vpop.f32.mrb[32].mxu1 }
0x253c   :  { %v1544_v33 = vadd.f32 %v1538_v13, %v1026_v22  ;;  %v3207_v34 = vpop.f32.mrb[33].mxu1 }
0x253d   :  { %v1541_v35 = vpop.f32.mrb[34].mxu1 }
0x253e   :  { %3457 = vtanh.f32 %v1544_v33  ;;  %v3208_v36 = vpop.f32.mrb[35].mxu1  ;;  %v2930_v54 = vmul.f32 -1.442695, %v1544_v33  ;;  %v1034_v35 = vadd.f32 %v4048_v7, %v4055_v17 }
0x2540   :  { %3459 = vpow2.f32 %v2930_v54 }
0x2548   :  { %v3458_v37 = vpop.eup %3457 }
0x2549   :  { %1559 = vrot.lane.b32.xlu0 %v3458_v37, %s3669_s22 }
0x254a   :  { %v3460_v38 = vpop.eup %3459 }
0x254b   :  { %v1548_v39 = vadd.f32 1.0, %v3460_v38 }
0x254d   :  { %3461 = vrcp.f32 %v1548_v39 }
0x2557   :  { %v3462_v16 = vpop.eup %3461 }
0x2558   :  { %v1557_v42 = vmul.f32 %v3462_v16, %v1555_v8 }
0x25bb   :  { %v1560_v40 = vpop.permute.xlu0 %1559 }
0x25bc   :  { %v1562_v41 = vmul.f32 %v3462_v16, %v1560_v40 }
0x25be   :  { %1564 = vrot.lane.b32.xlu0 %v1562_v41, %s3669_s22 }
0x2630   :  { %v1565_v43 = vpop.permute.xlu0 %1564 }
0x2631   :  { %v1567_v2 = vadd.f32 %v1565_v43, %v1557_v42 }
0x2633   :  { %3463 = vtanh.f32 %v1567_v2 }
0x263d   :  { %v3464_v44 = vpop.eup %3463 }
0x263e   :  { %1570 = vrot.lane.b32.xlu1 %v3464_v44, %s3669_s22 }
0x2642   :  { %1575 = vrot.lane.b32.xlu1 %v1567_v2, %s3670_s3 }
0x26b0   :  { %v1571_v9 = vpop.permute.xlu1 %1570 }
0x26b1   :  { %v1573_v46 = vmul.f32 %v3462_v16, %v1571_v9 }
0x26b3   :  { %1580 = vrot.lane.b32.xlu0 %v1573_v46, %s3664_s0  ;;  %v4199_v46 = vld [vmem:[%s4468_s8] sm:$0xff]  }
0x26b4   :  { %v1576_v47 = vpop.permute.xlu1 %1575 }
0x26b5   :  { %1578 = vst.msk [vmem:[#allocation5] sm:$0xff] %vm192_vm0, %v1576_v47 }
0x26bc   :  { %v1639_v15 = vld [vmem:[#allocation5] sm:$0xff] }
0x26bd   :  { %1641 = vrot.lane.b32.xlu1 %v1639_v15, %s3669_s22 }
0x2725   :  { %v1581_v23 = vpop.permute.xlu0 %1580 }
0x2726   :  { %1583 = vst.msk [vmem:[#allocation4] sm:$0xff] %vm192_vm0, %v1581_v23  ;;  %1584 = vst.msk [vmem:[#allocation2 + $0x28] sm:$0xff] %vm192_vm0, %v1581_v23  ;;  %v4205_v23 = vld [vmem:[%s4468_s8 + $0x8] sm:$0xff]  }
0x272d   :  { %v1586_v49 = vld [vmem:[#allocation4] sm:$0xff]  ;;  %v1770_v52 = vld [vmem:[#allocation2 + $0x28] sm:$0xff] }
0x272e   :  { %v1587_v50 = vpack.c.bf16 %v1586_v49, %v1586_v49  ;;  %v1775_v57 = vpack.c.bf16 %v1770_v52, %v1769_v56 }
0x272f   :  { %v1642_v11 = vpop.permute.xlu1 %1641 }
0x2730   :  { %3214 = vmatmul.mubr.msk.bf16.vlgmr.msra.gmra.mrb[36].mxu0 %vm192_vm0, %v1587_v50 }
0x2731   :  { %3226 = vmatpush3.bf16.msra.mxu0 %v3345_v45  ;;  %3229 = vmatprep.mubr.msk.bf16.mxu0 %vm192_vm0, %v1773_v24 }
0x2732   :  { %3227 = vmatprep.subr.bf16.mxu0 %v3346_v14 }
0x2735   :  { %3228 = vmatpush3.bf16.msra.mxu0 %v3346_v14 }
0x2736   :  { %3253 = vmatprep.subr.bf16.mxu0 %v3667_v0 }
0x2738   :  { %3230 = vmatmul.mubr.msk.bf16.vlgmr.msra.gmra.mrb[40].mxu0 %vm192_vm0, %v1774_v55 }
0x2739   :  { %3233 = vmatprep.mubr.msk.bf16.mxu0 %vm192_vm0, %v1775_v57  ;;  %3254 = vmatpush3.bf16.msra.mxu0 %v4199_v46 }
0x273a   :  { %3255 = vmatprep.subr.bf16.mxu0 %v3667_v0 }
0x273d   :  { %3256 = vmatpush3.bf16.msra.mxu0 %v4205_v23 }
0x273e   :  { %3269 = vmatprep.subr.bf16.mxu0 %v3667_v0 }
0x2803   :  { %v1625_v59 = vpop.f32.mrb[36].mxu0 }
0x2804   :  { %v1631_v60 = vadd.f32 %v1625_v59, %v1031_v58  ;;  %v3215_v61 = vpop.f32.mrb[37].mxu0 }
0x2805   :  { %v1628_v62 = vpop.f32.mrb[38].mxu0 }
0x2806   :  { %3465 = vtanh.f32 %v1631_v60  ;;  %v3216_v63 = vpop.f32.mrb[39].mxu0  ;;  %v2932_v20 = vmul.f32 -1.442695, %v1631_v60  ;;  %v4243_v60 = vld [vmem:[#allocation9] ss:$0 sm:$0xff] }
0x2808   :  { %3467 = vpow2.f32 %v2932_v20 }
0x280b   :  { %v4170_v1 = vpop.f32.mrb[40].mxu0 }
0x280c   :  { %v4172_v3 = vpop.f32.mrb[41].mxu0 }
0x280d   :  { %v4174_v4 = vpop.f32.mrb[42].mxu0  ;;  %v1847_v61 = vadd.f32 %v4243_v60, %v4172_v3 }
0x280e   :  { %v4176_v18 = vpop.f32.mrb[43].mxu0 }
0x2810   :  { %v3466_v19 = vpop.eup %3465 }
0x2811   :  { %1646 = vrot.lane.b32.xlu0 %v3466_v19, %s3669_s22 }
0x2812   :  { %v3468_v5 = vpop.eup %3467 }
0x2813   :  { %v1635_v6 = vadd.f32 1.0, %v3468_v5 }
0x2815   :  { %3469 = vrcp.f32 %v1635_v6 }
0x281f   :  { %v3470_v25 = vpop.eup %3469 }
0x2820   :  { %v1644_v27 = vmul.f32 %v3470_v25, %v1642_v11 }
0x2883   :  { %v1647_v26 = vpop.permute.xlu0 %1646 }
0x2884   :  { %v1649_v10 = vmul.f32 %v3470_v25, %v1647_v26 }
0x2886   :  { %1651 = vrot.lane.b32.xlu0 %v1649_v10, %s3669_s22 }
0x28f8   :  { %v1652_v28 = vpop.permute.xlu0 %1651 }
0x28f9   :  { %v1654_v21 = vadd.f32 %v1652_v28, %v1644_v27 }
0x28fb   :  { %3471 = vtanh.f32 %v1654_v21 }
0x2905   :  { %v3472_v29 = vpop.eup %3471 }
0x2906   :  { %1657 = vrot.lane.b32.xlu1 %v3472_v29, %s3669_s22 }
0x290a   :  { %1662 = vrot.lane.b32.xlu1 %v1654_v21, %s3670_s3 }
0x2978   :  { %v1658_v30 = vpop.permute.xlu1 %1657 }
0x2979   :  { %v1660_v31 = vmul.f32 %v3470_v25, %v1658_v30 }
0x297b   :  { %1667 = vrot.lane.b32.xlu0 %v1660_v31, %s3664_s0 }
0x297c   :  { %v1663_v32 = vpop.permute.xlu1 %1662 }
0x297d   :  { %1665 = vst.msk [vmem:[#allocation5] sm:$0xff] %vm192_vm0, %v1663_v32 }
0x2984   :  { %v1726_v22 = vld [vmem:[#allocation5] sm:$0xff] }
0x2985   :  { %1728 = vrot.lane.b32.xlu1 %v1726_v22, %s3669_s22 }
0x29ed   :  { %v1668_v13 = vpop.permute.xlu0 %1667 }
0x29ee   :  { %1670 = vst.msk [vmem:[#allocation4] sm:$0xff] %vm192_vm0, %v1668_v13  ;;  %1671 = vst.msk [vmem:[#allocation2 + $0x30] sm:$0xff] %vm192_vm0, %v1668_v13 }
0x29f5   :  { %v1673_v33 = vld [vmem:[#allocation4] sm:$0xff]  ;;  %v1771_v24 = vld [vmem:[#allocation2 + $0x30] sm:$0xff] }
0x29f6   :  { %v1674_v34 = vpack.c.bf16 %v1673_v33, %v1673_v33 }
0x29f7   :  { %v1729_v7 = vpop.permute.xlu1 %1728 }
0x29f8   :  { %3222 = vmatmul.mubr.msk.bf16.vlgmr.msra.gmra.mrb[36].mxu1 %vm192_vm0, %v1674_v34 }
0x29f9   :  { %3241 = vmatprep.mubr.msk.bf16.mxu1 %vm3668_vm1, %v3667_v0  ;;  %3238 = vmatpush3.bf16.msra.mxu1 %v4199_v46 }
0x29fa   :  { %3239 = vmatprep.subr.bf16.mxu1 %v3667_v0 }
0x29fd   :  { %3240 = vmatpush3.bf16.msra.mxu1 %v4205_v23 }
0x29fe   :  { %3245 = vmatprep.subr.bf16.mxu1 %v3667_v0 }
0x2acb   :  { %v1712_v36 = vpop.f32.mrb[36].mxu1 }
0x2acc   :  { %v1718_v37 = vadd.f32 %v1712_v36, %v1034_v35  ;;  %v3223_v54 = vpop.f32.mrb[37].mxu1 }
0x2acd   :  { %v1715_v38 = vpop.f32.mrb[38].mxu1 }
0x2ace   :  { %3473 = vtanh.f32 %v1718_v37  ;;  %v3224_v39 = vpop.f32.mrb[39].mxu1  ;;  %v2934_v40 = vmul.f32 -1.442695, %v1718_v37  ;;  %v1850_v37 = vadd.f32 %v4243_v60, %v4176_v18 }
0x2ad0   :  { %3475 = vpow2.f32 %v2934_v40 }
0x2ad8   :  { %v3474_v16 = vpop.eup %3473 }
0x2ad9   :  { %1733 = vrot.lane.b32.xlu0 %v3474_v16, %s3669_s22 }
0x2ada   :  { %v3476_v41 = vpop.eup %3475 }
0x2adb   :  { %v1722_v8 = vadd.f32 1.0, %v3476_v41 }
0x2add   :  { %3477 = vrcp.f32 %v1722_v8 }
0x2ae7   :  { %v3478_v42 = vpop.eup %3477 }
0x2ae8   :  { %v1731_v17 = vmul.f32 %v3478_v42, %v1729_v7 }
0x2b4b   :  { %v1734_v43 = vpop.permute.xlu0 %1733 }
0x2b4c   :  { %v1736_v2 = vmul.f32 %v3478_v42, %v1734_v43 }
0x2b4e   :  { %1738 = vrot.lane.b32.xlu0 %v1736_v2, %s3669_s22 }
0x2bc0   :  { %v1739_v44 = vpop.permute.xlu0 %1738 }
0x2bc1   :  { %v1741_v45 = vadd.f32 %v1739_v44, %v1731_v17 }
0x2bc3   :  { %3479 = vtanh.f32 %v1741_v45 }
0x2bcd   :  { %v3480_v9 = vpop.eup %3479 }
0x2bce   :  { %1744 = vrot.lane.b32.xlu1 %v3480_v9, %s3669_s22 }
0x2bd2   :  { %1749 = vrot.lane.b32.xlu1 %v1741_v45, %s3670_s3 }
0x2c40   :  { %v1745_v47 = vpop.permute.xlu1 %1744 }
0x2c41   :  { %v1747_v15 = vmul.f32 %v3478_v42, %v1745_v47 }
0x2c43   :  { %1754 = vrot.lane.b32.xlu0 %v1747_v15, %s3664_s0 }
0x2c44   :  { %v1750_v48 = vpop.permute.xlu1 %1749 }
0x2c45   :  { %1752 = vst.msk [vmem:[#allocation5] sm:$0xff] %vm192_vm0, %v1750_v48 }
0x2c4c   :  { %v1762_v49 = vld [vmem:[#allocation5] sm:$0xff] }
0x2c4d   :  { %1886 = vst.msk [vmem:[#allocation5] sm:$0xff] %vm192_vm0, %v3667_v0  ;;  %1764 = vst.msk [vmem:[#allocation14 + $0x8] sm:$0xff] %vm192_vm0, %v1762_v49 }
0x2c54   :  { %v1957_v50 = vld [vmem:[#allocation5] sm:$0xff] }
0x2c55   :  { %1959 = vrot.lane.b32.xlu1 %v1957_v50, %s3669_s22 }
0x2cb5   :  { %v1755_v12 = vpop.permute.xlu0 %1754 }
0x2cb6   :  { %1757 = vst.msk [vmem:[#allocation4] sm:$0xff] %vm192_vm0, %v1755_v12  ;;  %1758 = vst.msk [vmem:[#allocation2 + $0x38] sm:$0xff] %vm192_vm0, %v1755_v12 }
0x2cbd   :  { %v1759_v14 = vld [vmem:[#allocation4] sm:$0xff]  ;;  %v1772_v51 = vld [vmem:[#allocation2 + $0x38] sm:$0xff] }
0x2cbe   :  { %1885 = vst.msk [vmem:[#allocation4] sm:$0xff] %vm192_vm0, %v3667_v0  ;;  %1761 = vst.msk [vmem:[#allocation12 + $0x8] sm:$0xff] %vm192_vm0, %v1759_v14  ;;  %v1776_v52 = vpack.c.bf16 %v1772_v51, %v1771_v24  ;;  %v1855_v51 = vadd.f32 %v4170_v1, %v4243_v60 }
0x2cc0   :  { %3234 = vmatmul.mubr.msk.bf16.gmra.mrb[44].mxu0 %vm192_vm0, %v1776_v52 }
0x2cc1   :  { %3257 = vmatprep.mubr.msk.bf16.mxu0 %vm3668_vm1, %v3667_v0 }
0x2cc5   :  { %v1892_v53 = vld [vmem:[#allocation4] sm:$0xff] }
0x2cc6   :  { %v1893_v55 = vpack.c.bf16 %v1892_v53, %v1892_v53 }
0x2cc7   :  { %v1960_v3 = vpop.permute.xlu1 %1959 }
0x2cc8   :  { %3242 = vmatmul.mubr.msk.bf16.vlgmr.msra.gmra.mrb[40].mxu1 %vm192_vm0, %v1893_v55 }
0x2cc9   :  { %3246 = vmatpush3.bf16.msra.mxu1 %v4199_v46  ;;  %3249 = vmatprep.mubr.msk.bf16.mxu1 %vm3668_vm1, %v3667_v0 }
0x2cca   :  { %3247 = vmatprep.subr.bf16.mxu1 %v3667_v0 }
0x2ccd   :  { %3248 = vmatpush3.bf16.msra.mxu1 %v4205_v23 }
0x2cce   :  { %3261 = vmatprep.subr.bf16.mxu1 %v3667_v0 }
0x2d93   :  { %v4235_v56 = vpop.f32.mrb[44].mxu0 }
0x2d94   :  { %v4237_v57 = vpop.f32.mrb[45].mxu0 }
0x2d95   :  { %v4239_v58 = vpop.f32.mrb[46].mxu0 }
0x2d96   :  { %v4241_v59 = vpop.f32.mrb[47].mxu0 }
0x2d9b   :  { %v1943_v62 = vpop.f32.mrb[40].mxu1 }
0x2d9c   :  { %v1949_v63 = vadd.f32 %v1943_v62, %v1847_v61  ;;  %v3243_v19 = vpop.f32.mrb[41].mxu1 }
0x2d9d   :  { %v1946_v20 = vpop.f32.mrb[42].mxu1 }
0x2d9e   :  { %3481 = vtanh.f32 %v1949_v63  ;;  %v3244_v5 = vpop.f32.mrb[43].mxu1  ;;  %v2945_v25 = vmul.f32 -1.442695, %v1949_v63 }
0x2da0   :  { %3483 = vpow2.f32 %v2945_v25 }
0x2da8   :  { %v3482_v6 = vpop.eup %3481 }
0x2da9   :  { %1964 = vrot.lane.b32.xlu0 %v3482_v6, %s3669_s22 }
0x2daa   :  { %v3484_v26 = vpop.eup %3483 }
0x2dab   :  { %v1953_v10 = vadd.f32 1.0, %v3484_v26 }
0x2dad   :  { %3485 = vrcp.f32 %v1953_v10 }
0x2db7   :  { %v3486_v11 = vpop.eup %3485 }
0x2db8   :  { %v1962_v21 = vmul.f32 %v3486_v11, %v1960_v3 }
0x2e1b   :  { %v1965_v27 = vpop.permute.xlu0 %1964 }
0x2e1c   :  { %v1967_v28 = vmul.f32 %v3486_v11, %v1965_v27 }
0x2e1e   :  { %1969 = vrot.lane.b32.xlu0 %v1967_v28, %s3669_s22 }
0x2e90   :  { %v1970_v29 = vpop.permute.xlu0 %1969 }
0x2e91   :  { %v1972_v30 = vadd.f32 %v1970_v29, %v1962_v21 }
0x2e93   :  { %3487 = vtanh.f32 %v1972_v30 }
0x2e9d   :  { %v3488_v31 = vpop.eup %3487 }
0x2e9e   :  { %1975 = vrot.lane.b32.xlu1 %v3488_v31, %s3669_s22 }
0x2ea2   :  { %1980 = vrot.lane.b32.xlu1 %v1972_v30, %s3670_s3 }
0x2f10   :  { %v1976_v32 = vpop.permute.xlu1 %1975 }
0x2f11   :  { %v1978_v22 = vmul.f32 %v3486_v11, %v1976_v32 }
0x2f13   :  { %1985 = vrot.lane.b32.xlu0 %v1978_v22, %s3664_s0 }
0x2f14   :  { %v1981_v13 = vpop.permute.xlu1 %1980 }
0x2f15   :  { %1983 = vst.msk [vmem:[#allocation5] sm:$0xff] %vm192_vm0, %v1981_v13  ;;  %v1858_v13 = vadd.f32 %v4174_v4, %v4243_v60 }
0x2f1c   :  { %v2044_v33 = vld [vmem:[#allocation5] sm:$0xff] }
0x2f1d   :  { %2046 = vrot.lane.b32.xlu1 %v2044_v33, %s3669_s22 }
0x2f85   :  { %v1986_v34 = vpop.permute.xlu0 %1985 }
0x2f86   :  { %1988 = vst.msk [vmem:[#allocation4] sm:$0xff] %vm192_vm0, %v1986_v34  ;;  %1989 = vst.msk [vmem:[#allocation2] sm:$0xff] %vm192_vm0, %v1986_v34 }
0x2f8d   :  { %v1991_v35 = vld [vmem:[#allocation4] sm:$0xff] }
0x2f8e   :  { %v1992_v36 = vpack.c.bf16 %v1991_v35, %v1991_v35 }
0x2f8f   :  { %v2047_v18 = vpop.permute.xlu1 %2046 }
0x2f90   :  { %3250 = vmatmul.mubr.msk.bf16.vlgmr.msra.gmra.mrb[44].mxu1 %vm192_vm0, %v1992_v36 }
0x2f91   :  { %3262 = vmatpush3.bf16.msra.mxu1 %v4199_v46  ;;  %3265 = vmatprep.mubr.msk.bf16.mxu1 %vm3668_vm1, %v3667_v0 }
0x2f92   :  { %3263 = vmatprep.subr.bf16.mxu1 %v3667_v0 }
0x2f95   :  { %3264 = vmatpush3.bf16.msra.mxu1 %v4205_v23 }
0x2f96   :  { %3277 = vmatprep.subr.bf16.mxu1 %v3667_v0 }
0x3063   :  { %v2030_v54 = vpop.f32.mrb[44].mxu1 }
0x3064   :  { %v2036_v38 = vadd.f32 %v2030_v54, %v1850_v37  ;;  %v3251_v39 = vpop.f32.mrb[45].mxu1 }
0x3065   :  { %v2033_v16 = vpop.f32.mrb[46].mxu1 }
0x3066   :  { %3489 = vtanh.f32 %v2036_v38  ;;  %v3252_v40 = vpop.f32.mrb[47].mxu1  ;;  %v2947_v8 = vmul.f32 -1.442695, %v2036_v38 }
0x3068   :  { %3491 = vpow2.f32 %v2947_v8 }
0x3070   :  { %v3490_v41 = vpop.eup %3489 }
0x3071   :  { %2051 = vrot.lane.b32.xlu0 %v3490_v41, %s3669_s22 }
0x3072   :  { %v3492_v42 = vpop.eup %3491 }
0x3073   :  { %v2040_v43 = vadd.f32 1.0, %v3492_v42 }
0x3075   :  { %3493 = vrcp.f32 %v2040_v43 }
0x307f   :  { %v3494_v2 = vpop.eup %3493 }
0x3080   :  { %v2049_v44 = vmul.f32 %v3494_v2, %v2047_v18 }
0x30e3   :  { %v2052_v7 = vpop.permute.xlu0 %2051 }
0x30e4   :  { %v2054_v17 = vmul.f32 %v3494_v2, %v2052_v7 }
0x30e6   :  { %2056 = vrot.lane.b32.xlu0 %v2054_v17, %s3669_s22 }
0x3158   :  { %v2057_v45 = vpop.permute.xlu0 %2056 }
0x3159   :  { %v2059_v9 = vadd.f32 %v2057_v45, %v2049_v44 }
0x315b   :  { %3495 = vtanh.f32 %v2059_v9 }
0x3165   :  { %v3496_v47 = vpop.eup %3495 }
0x3166   :  { %2062 = vrot.lane.b32.xlu1 %v3496_v47, %s3669_s22 }
0x316a   :  { %2067 = vrot.lane.b32.xlu1 %v2059_v9, %s3670_s3 }
0x31d8   :  { %v2063_v15 = vpop.permute.xlu1 %2062 }
0x31d9   :  { %v2065_v48 = vmul.f32 %v3494_v2, %v2063_v15 }
0x31db   :  { %2072 = vrot.lane.b32.xlu0 %v2065_v48, %s3664_s0  ;;  %v1863_v48 = vadd.f32 %v4243_v60, %v4237_v57 }
0x31dc   :  { %v2068_v49 = vpop.permute.xlu1 %2067 }
0x31dd   :  { %2070 = vst.msk [vmem:[#allocation5] sm:$0xff] %vm192_vm0, %v2068_v49 }
0x31e4   :  { %v2131_v50 = vld [vmem:[#allocation5] sm:$0xff] }
0x31e5   :  { %2133 = vrot.lane.b32.xlu1 %v2131_v50, %s3669_s22 }
0x324d   :  { %v2073_v12 = vpop.permute.xlu0 %2072 }
0x324e   :  { %2075 = vst.msk [vmem:[#allocation4] sm:$0xff] %vm192_vm0, %v2073_v12  ;;  %2076 = vst.msk [vmem:[#allocation2 + $0x8] sm:$0xff] %vm192_vm0, %v2073_v12 }
0x3255   :  { %v2078_v14 = vld [vmem:[#allocation4] sm:$0xff] }
0x3256   :  { %v2079_v24 = vpack.c.bf16 %v2078_v14, %v2078_v14 }
0x3257   :  { %v2134_v1 = vpop.permute.xlu1 %2133 }
0x3258   :  { %3258 = vmatmul.mubr.msk.bf16.vlgmr.msra.gmra.mrb[48].mxu0 %vm192_vm0, %v2079_v24 }
0x3259   :  { %3270 = vmatpush3.bf16.msra.mxu0 %v4199_v46  ;;  %3273 = vmatprep.mubr.msk.bf16.mxu0 %vm3668_vm1, %v3667_v0 }
0x325a   :  { %3271 = vmatprep.subr.bf16.mxu0 %v3667_v0 }
0x325d   :  { %3272 = vmatpush3.bf16.msra.mxu0 %v4205_v23 }
0x325e   :  { %3285 = vmatprep.subr.bf16.mxu0 %v3667_v0 }
0x332b   :  { %v2117_v52 = vpop.f32.mrb[48].mxu0 }
0x332c   :  { %v2123_v53 = vadd.f32 %v2117_v52, %v1855_v51  ;;  %v3259_v55 = vpop.f32.mrb[49].mxu0 }
0x332d   :  { %v2120_v61 = vpop.f32.mrb[50].mxu0 }
0x332e   :  { %3497 = vtanh.f32 %v2123_v53  ;;  %v3260_v62 = vpop.f32.mrb[51].mxu0  ;;  %v2949_v19 = vmul.f32 -1.442695, %v2123_v53 }
0x3330   :  { %3499 = vpow2.f32 %v2949_v19 }
0x3338   :  { %v3498_v63 = vpop.eup %3497 }
0x3339   :  { %2138 = vrot.lane.b32.xlu0 %v3498_v63, %s3669_s22 }
0x333a   :  { %v3500_v20 = vpop.eup %3499 }
0x333b   :  { %v2127_v5 = vadd.f32 1.0, %v3500_v20 }
0x333d   :  { %3501 = vrcp.f32 %v2127_v5 }
0x3347   :  { %v3502_v6 = vpop.eup %3501 }
0x3348   :  { %v2136_v10 = vmul.f32 %v3502_v6, %v2134_v1 }
0x33ab   :  { %v2139_v25 = vpop.permute.xlu0 %2138 }
0x33ac   :  { %v2141_v26 = vmul.f32 %v3502_v6, %v2139_v25 }
0x33ae   :  { %2143 = vrot.lane.b32.xlu0 %v2141_v26, %s3669_s22 }
0x3420   :  { %v2144_v11 = vpop.permute.xlu0 %2143 }
0x3421   :  { %v2146_v27 = vadd.f32 %v2144_v11, %v2136_v10 }
0x3423   :  { %3503 = vtanh.f32 %v2146_v27 }
0x342d   :  { %v3504_v28 = vpop.eup %3503 }
0x342e   :  { %2149 = vrot.lane.b32.xlu1 %v3504_v28, %s3669_s22 }
0x3432   :  { %2154 = vrot.lane.b32.xlu1 %v2146_v27, %s3670_s3 }
0x34a0   :  { %v2150_v3 = vpop.permute.xlu1 %2149 }
0x34a1   :  { %v2152_v21 = vmul.f32 %v3502_v6, %v2150_v3  ;;  %v1866_v3 = vadd.f32 %v4243_v60, %v4241_v59 }
0x34a3   :  { %2159 = vrot.lane.b32.xlu0 %v2152_v21, %s3664_s0 }
0x34a4   :  { %v2155_v29 = vpop.permute.xlu1 %2154 }
0x34a5   :  { %2157 = vst.msk [vmem:[#allocation5] sm:$0xff] %vm192_vm0, %v2155_v29 }
0x34ac   :  { %v2218_v30 = vld [vmem:[#allocation5] sm:$0xff] }
0x34ad   :  { %2220 = vrot.lane.b32.xlu1 %v2218_v30, %s3669_s22 }
0x3515   :  { %v2160_v31 = vpop.permute.xlu0 %2159 }
0x3516   :  { %2162 = vst.msk [vmem:[#allocation4] sm:$0xff] %vm192_vm0, %v2160_v31  ;;  %2163 = vst.msk [vmem:[#allocation2 + $0x10] sm:$0xff] %vm192_vm0, %v2160_v31 }
0x351d   :  { %v2165_v32 = vld [vmem:[#allocation4] sm:$0xff] }
0x351e   :  { %v2166_v22 = vpack.c.bf16 %v2165_v32, %v2165_v32 }
0x351f   :  { %v2221_v4 = vpop.permute.xlu1 %2220 }
0x3520   :  { %3266 = vmatmul.mubr.msk.bf16.vlgmr.msra.gmra.mrb[48].mxu1 %vm192_vm0, %v2166_v22 }
0x3521   :  { %3278 = vmatpush3.bf16.msra.mxu1 %v4199_v46  ;;  %3281 = vmatprep.mubr.msk.bf16.mxu1 %vm3668_vm1, %v3667_v0 }
0x3522   :  { %3279 = vmatprep.subr.bf16.mxu1 %v3667_v0 }
0x3525   :  { %3280 = vmatpush3.bf16.msra.mxu1 %v4205_v23 }
0x3526   :  { %3293 = vmatprep.subr.bf16.mxu1 %v3667_v0 }
0x35f3   :  { %v2204_v33 = vpop.f32.mrb[48].mxu1 }
0x35f4   :  { %v2210_v34 = vadd.f32 %v2204_v33, %v1858_v13  ;;  %v3267_v35 = vpop.f32.mrb[49].mxu1 }
0x35f5   :  { %v2207_v36 = vpop.f32.mrb[50].mxu1 }
0x35f6   :  { %3505 = vtanh.f32 %v2210_v34  ;;  %v3268_v37 = vpop.f32.mrb[51].mxu1  ;;  %v2951_v38 = vmul.f32 -1.442695, %v2210_v34 }
0x35f8   :  { %3507 = vpow2.f32 %v2951_v38  ;;  %v3349_v38 = vld [vmem:[%s4470_s10] sm:$0xff]  }
0x3600   :  { %v3506_v54 = vpop.eup %3505 }
0x3601   :  { %2225 = vrot.lane.b32.xlu0 %v3506_v54, %s3669_s22 }
0x3602   :  { %v3508_v39 = vpop.eup %3507 }
0x3603   :  { %v2214_v16 = vadd.f32 1.0, %v3508_v39 }
0x3605   :  { %3509 = vrcp.f32 %v2214_v16 }
0x360f   :  { %v3510_v40 = vpop.eup %3509 }
0x3610   :  { %v2223_v42 = vmul.f32 %v3510_v40, %v2221_v4  ;;  %v2606_v4 = vld [vmem:[#allocation2 + $0x8] sm:$0xff] }
0x3673   :  { %v2226_v41 = vpop.permute.xlu0 %2225 }
0x3674   :  { %v2228_v8 = vmul.f32 %v3510_v40, %v2226_v41 }
0x3676   :  { %2230 = vrot.lane.b32.xlu0 %v2228_v8, %s3669_s22 }
0x36e8   :  { %v2231_v43 = vpop.permute.xlu0 %2230 }
0x36e9   :  { %v2233_v2 = vadd.f32 %v2231_v43, %v2223_v42 }
0x36eb   :  { %3511 = vtanh.f32 %v2233_v2 }
0x36f5   :  { %v3512_v7 = vpop.eup %3511 }
0x36f6   :  { %2236 = vrot.lane.b32.xlu1 %v3512_v7, %s3669_s22  ;;  %v3350_v7 = vld [vmem:[%s4470_s10 + $0x8] sm:$0xff]  }
0x36fa   :  { %2241 = vrot.lane.b32.xlu1 %v2233_v2, %s3670_s3  ;;  %v2605_v2 = vld [vmem:[#allocation2] sm:$0xff] }
0x3768   :  { %v2237_v17 = vpop.permute.xlu1 %2236 }
0x3769   :  { %v2239_v18 = vmul.f32 %v3510_v40, %v2237_v17  ;;  %v2613_v17 = vpack.c.bf16 %v2606_v4, %v2605_v2 }
0x376b   :  { %2246 = vrot.lane.b32.xlu0 %v2239_v18, %s3664_s0 }
0x376c   :  { %v2242_v44 = vpop.permute.xlu1 %2241 }
0x376d   :  { %2244 = vst.msk [vmem:[#allocation5] sm:$0xff] %vm192_vm0, %v2242_v44 }
0x3774   :  { %v2305_v45 = vld [vmem:[#allocation5] sm:$0xff] }
0x3775   :  { %2307 = vrot.lane.b32.xlu1 %v2305_v45, %s3669_s22  ;;  %v2607_v45 = vld [vmem:[#allocation2 + $0x10] sm:$0xff] }
0x37dd   :  { %v2247_v9 = vpop.permute.xlu0 %2246 }
0x37de   :  { %2249 = vst.msk [vmem:[#allocation4] sm:$0xff] %vm192_vm0, %v2247_v9  ;;  %2250 = vst.msk [vmem:[#allocation2 + $0x18] sm:$0xff] %vm192_vm0, %v2247_v9 }
0x37e5   :  { %v2252_v47 = vld [vmem:[#allocation4] sm:$0xff]  ;;  %v2608_v18 = vld [vmem:[#allocation2 + $0x18] sm:$0xff] }
0x37e6   :  { %v2253_v15 = vpack.c.bf16 %v2252_v47, %v2252_v47  ;;  %v2614_v9 = vpack.c.bf16 %v2608_v18, %v2607_v45 }
0x37e7   :  { %v2308_v57 = vpop.permute.xlu1 %2307 }
0x37e8   :  { %3274 = vmatmul.mubr.msk.bf16.vlgmr.msra.gmra.mrb[52].mxu0 %vm192_vm0, %v2253_v15 }
0x37e9   :  { %3286 = vmatpush3.bf16.msra.mxu0 %v4199_v46  ;;  %3289 = vmatprep.mubr.msk.bf16.mxu0 %vm3668_vm1, %v3667_v0 }
0x37ea   :  { %3287 = vmatprep.subr.bf16.mxu0 %v3667_v0 }
0x37ed   :  { %3288 = vmatpush3.bf16.msra.mxu0 %v4205_v23 }
0x37ee   :  { %3301 = vmatprep.subr.bf16.mxu0 %v3349_v38 }
0x38bb   :  { %v2291_v49 = vpop.f32.mrb[52].mxu0 }
0x38bc   :  { %v2297_v50 = vadd.f32 %v2291_v49, %v1863_v48  ;;  %v3275_v12 = vpop.f32.mrb[53].mxu0  ;;  %v1871_v48 = vadd.f32 %v4235_v56, %v4243_v60 }
0x38bd   :  { %v2294_v14 = vpop.f32.mrb[54].mxu0 }
0x38be   :  { %3513 = vtanh.f32 %v2297_v50  ;;  %v3276_v24 = vpop.f32.mrb[55].mxu0  ;;  %v2953_v52 = vmul.f32 -1.442695, %v2297_v50 }
0x38c0   :  { %3515 = vpow2.f32 %v2953_v52 }
0x38c8   :  { %v3514_v51 = vpop.eup %3513 }
0x38c9   :  { %2312 = vrot.lane.b32.xlu0 %v3514_v51, %s3669_s22  ;;  %v4359_v51 = vld [vmem:[%s4471_s11] ss:$0 sm:$0xff] }
0x38ca   :  { %v3516_v53 = vpop.eup %3515 }
0x38cb   :  { %v2301_v55 = vadd.f32 1.0, %v3516_v53 }
0x38cd   :  { %3517 = vrcp.f32 %v2301_v55 }
0x38d7   :  { %v3518_v61 = vpop.eup %3517 }
0x38d8   :  { %v2310_v19 = vmul.f32 %v3518_v61, %v2308_v57 }
0x393b   :  { %v2313_v62 = vpop.permute.xlu0 %2312 }
0x393c   :  { %v2315_v63 = vmul.f32 %v3518_v61, %v2313_v62 }
0x393e   :  { %2317 = vrot.lane.b32.xlu0 %v2315_v63, %s3669_s22 }
0x39b0   :  { %v2318_v20 = vpop.permute.xlu0 %2317 }
0x39b1   :  { %v2320_v5 = vadd.f32 %v2318_v20, %v2310_v19 }
0x39b3   :  { %3519 = vtanh.f32 %v2320_v5 }
0x39bd   :  { %v3520_v6 = vpop.eup %3519 }
0x39be   :  { %2323 = vrot.lane.b32.xlu1 %v3520_v6, %s3669_s22 }
0x39c2   :  { %2328 = vrot.lane.b32.xlu1 %v2320_v5, %s3670_s3 }
0x3a30   :  { %v2324_v25 = vpop.permute.xlu1 %2323 }
0x3a31   :  { %v2326_v26 = vmul.f32 %v3518_v61, %v2324_v25 }
0x3a33   :  { %2333 = vrot.lane.b32.xlu0 %v2326_v26, %s3664_s0 }
0x3a34   :  { %v2329_v1 = vpop.permute.xlu1 %2328 }
0x3a35   :  { %2331 = vst.msk [vmem:[#allocation5] sm:$0xff] %vm192_vm0, %v2329_v1 }
0x3a3c   :  { %v2392_v10 = vld [vmem:[#allocation5] sm:$0xff] }
0x3a3d   :  { %2394 = vrot.lane.b32.xlu1 %v2392_v10, %s3669_s22 }
0x3aa5   :  { %v2334_v11 = vpop.permute.xlu0 %2333 }
0x3aa6   :  { %2336 = vst.msk [vmem:[#allocation4] sm:$0xff] %vm192_vm0, %v2334_v11  ;;  %2337 = vst.msk [vmem:[#allocation2 + $0x20] sm:$0xff] %vm192_vm0, %v2334_v11 }
0x3aad   :  { %v2339_v27 = vld [vmem:[#allocation4] sm:$0xff] }
0x3aae   :  { %v2340_v28 = vpack.c.bf16 %v2339_v27, %v2339_v27  ;;  %v2609_v47 = vld [vmem:[#allocation2 + $0x20] sm:$0xff] }
0x3aaf   :  { %v2395_v59 = vpop.permute.xlu1 %2394 }
0x3ab0   :  { %3282 = vmatmul.mubr.msk.bf16.vlgmr.msra.gmra.mrb[52].mxu1 %vm192_vm0, %v2340_v28 }
0x3ab1   :  { %3294 = vmatpush3.bf16.msra.mxu1 %v4199_v46  ;;  %3297 = vmatprep.mubr.msk.bf16.mxu1 %vm3668_vm1, %v3667_v0 }
0x3ab2   :  { %3295 = vmatprep.subr.bf16.mxu1 %v3667_v0 }
0x3ab5   :  { %3296 = vmatpush3.bf16.msra.mxu1 %v4205_v23 }
0x3b83   :  { %v2378_v21 = vpop.f32.mrb[52].mxu1 }
0x3b84   :  { %v2384_v29 = vadd.f32 %v2378_v21, %v1866_v3  ;;  %v3283_v30 = vpop.f32.mrb[53].mxu1 }
0x3b85   :  { %v2381_v31 = vpop.f32.mrb[54].mxu1 }
0x3b86   :  { %3521 = vtanh.f32 %v2384_v29  ;;  %v3284_v32 = vpop.f32.mrb[55].mxu1  ;;  %v2955_v46 = vmul.f32 -1.442695, %v2384_v29 }
0x3b88   :  { %3523 = vpow2.f32 %v2955_v46  ;;  %v3351_v46 = vld [vmem:[%s4472_s12] sm:$0xff]  }
0x3b89   :  { %3313 = vmatprep.subr.bf16.mxu1 %v3351_v46 }
0x3b90   :  { %v3522_v22 = vpop.eup %3521 }
0x3b91   :  { %2399 = vrot.lane.b32.xlu0 %v3522_v22, %s3669_s22 }
0x3b92   :  { %v3524_v13 = vpop.eup %3523 }
0x3b93   :  { %v2388_v33 = vadd.f32 1.0, %v3524_v13 }
0x3b95   :  { %3525 = vrcp.f32 %v2388_v33 }
0x3b9f   :  { %v3526_v0 = vpop.eup %3525 }
0x3ba0   :  { %v2397_v35 = vmul.f32 %v3526_v0, %v2395_v59 }
0x3c03   :  { %v2400_v34 = vpop.permute.xlu0 %2399 }
0x3c04   :  { %v2402_v23 = vmul.f32 %v3526_v0, %v2400_v34 }
0x3c06   :  { %2404 = vrot.lane.b32.xlu0 %v2402_v23, %s3669_s22 }
0x3c78   :  { %v2405_v36 = vpop.permute.xlu0 %2404 }
0x3c79   :  { %v2407_v37 = vadd.f32 %v2405_v36, %v2397_v35  ;;  %v3352_v36 = vld [vmem:[%s4472_s12 + $0x8] sm:$0xff]  }
0x3c7b   :  { %3527 = vtanh.f32 %v2407_v37 }
0x3c85   :  { %v3528_v54 = vpop.eup %3527 }
0x3c86   :  { %2410 = vrot.lane.b32.xlu1 %v3528_v54, %s3669_s22 }
0x3c8a   :  { %2415 = vrot.lane.b32.xlu1 %v2407_v37, %s3670_s3  ;;  %v1874_v37 = vadd.f32 %v4239_v58, %v4243_v60 }
0x3cf8   :  { %v2411_v39 = vpop.permute.xlu1 %2410 }
0x3cf9   :  { %v2413_v16 = vmul.f32 %v3526_v0, %v2411_v39 }
0x3cfb   :  { %2420 = vrot.lane.b32.xlu0 %v2413_v16, %s3664_s0 }
0x3cfc   :  { %v2416_v40 = vpop.permute.xlu1 %2415 }
0x3cfd   :  { %2418 = vst.msk [vmem:[#allocation5] sm:$0xff] %vm192_vm0, %v2416_v40 }
0x3d04   :  { %v2479_v41 = vld [vmem:[#allocation5] sm:$0xff] }
0x3d05   :  { %2481 = vrot.lane.b32.xlu1 %v2479_v41, %s3669_s22  ;;  %v4388_v41 = vld [vmem:[%s4473_s13] ss:$0 sm:$0xff]  ;;  %s3671_s13 = smov [#allocation12]  }
0x3d6d   :  { %v2421_v8 = vpop.permute.xlu0 %2420 }
0x3d6e   :  { %2423 = vst.msk [vmem:[#allocation4] sm:$0xff] %vm192_vm0, %v2421_v8  ;;  %2424 = vst.msk [vmem:[#allocation2 + $0x28] sm:$0xff] %vm192_vm0, %v2421_v8 }
0x3d75   :  { %v2426_v42 = vld [vmem:[#allocation4] sm:$0xff]  ;;  %v2610_v44 = vld [vmem:[#allocation2 + $0x28] sm:$0xff] }
0x3d76   :  { %v2427_v43 = vpack.c.bf16 %v2426_v42, %v2426_v42  ;;  %v2615_v15 = vpack.c.bf16 %v2610_v44, %v2609_v47 }
0x3d77   :  { %v2482_v29 = vpop.permute.xlu1 %2481 }
0x3d78   :  { %3290 = vmatmul.mubr.msk.bf16.vlgmr.msra.gmra.mrb[56].mxu0 %vm192_vm0, %v2427_v43 }
0x3d79   :  { %3302 = vmatpush3.bf16.msra.mxu0 %v3349_v38  ;;  %3305 = vmatprep.mubr.msk.bf16.mxu0 %vm192_vm0, %v2613_v17 }
0x3d7a   :  { %3303 = vmatprep.subr.bf16.mxu0 %v3350_v7 }
0x3d7d   :  { %3304 = vmatpush3.bf16.msra.mxu0 %v3350_v7 }
0x3d80   :  { %3306 = vmatmul.mubr.msk.bf16.vlgmr.msra.gmra.mrb[60].mxu0 %vm192_vm0, %v2614_v9 }
0x3d81   :  { %3309 = vmatprep.mubr.msk.bf16.mxu0 %vm192_vm0, %v2615_v15 }
0x3e4b   :  { %v2465_v49 = vpop.f32.mrb[56].mxu0 }
0x3e4c   :  { %v2471_v50 = vadd.f32 %v2465_v49, %v1871_v48  ;;  %v3291_v12 = vpop.f32.mrb[57].mxu0 }
0x3e4d   :  { %v2468_v14 = vpop.f32.mrb[58].mxu0 }
0x3e4e   :  { %3529 = vtanh.f32 %v2471_v50  ;;  %v3292_v24 = vpop.f32.mrb[59].mxu0  ;;  %v2957_v10 = vmul.f32 -1.442695, %v2471_v50 }
0x3e50   :  { %3531 = vpow2.f32 %v2957_v10 }
0x3e53   :  { %v3307_v52 = vpop.f32.mrb[60].mxu0 }
0x3e54   :  { %v2695_v53 = vadd.f32 %v3307_v52, %v4359_v51  ;;  %v2686_v55 = vpop.f32.mrb[61].mxu0 }
0x3e55   :  { %v2687_v61 = vadd.f32 %v4359_v51, %v2686_v55  ;;  %v3308_v62 = vpop.f32.mrb[62].mxu0 }
0x3e56   :  { %v2698_v56 = vadd.f32 %v3308_v62, %v4359_v51  ;;  %v2689_v63 = vpop.f32.mrb[63].mxu0  ;;  %v2719_v20 = vmax.f32 %v2695_v53, 0.0 }
0x3e57   :  { %v2690_v57 = vadd.f32 %v4359_v51, %v2689_v63  ;;  %v2717_v6 = vmax.f32 %v2687_v61, 0.0 }
0x3e58   :  { %v3530_v19 = vpop.eup %3529  ;;  %v2720_v5 = vmax.f32 %v2698_v56, 0.0 }
0x3e59   :  { %v2718_v25 = vmax.f32 %v2690_v57, 0.0  ;;  %2486 = vrot.lane.b32.xlu0 %v3530_v19, %s3669_s22 }
0x3e5a   :  { %v2726_v26 = vpack.c.bf16 %v2720_v5, %v2719_v20  ;;  %v3532_v11 = vpop.eup %3531 }
0x3e5b   :  { %v2725_v1 = vpack.c.bf16 %v2718_v25, %v2717_v6  ;;  %v2475_v27 = vadd.f32 1.0, %v3532_v11 }
0x3e5d   :  { %3533 = vrcp.f32 %v2475_v27 }
0x3e67   :  { %v3534_v28 = vpop.eup %3533 }
0x3e68   :  { %v2484_v30 = vmul.f32 %v3534_v28, %v2482_v29 }
0x3ecb   :  { %v2487_v3 = vpop.permute.xlu0 %2486 }
0x3ecc   :  { %v2489_v21 = vmul.f32 %v3534_v28, %v2487_v3 }
0x3ece   :  { %2491 = vrot.lane.b32.xlu0 %v2489_v21, %s3669_s22 }
0x3f40   :  { %v2492_v31 = vpop.permute.xlu0 %2491 }
0x3f41   :  { %v2494_v32 = vadd.f32 %v2492_v31, %v2484_v30 }
0x3f43   :  { %3535 = vtanh.f32 %v2494_v32 }
0x3f4d   :  { %v3536_v22 = vpop.eup %3535 }
0x3f4e   :  { %2497 = vrot.lane.b32.xlu1 %v3536_v22, %s3669_s22 }
0x3f52   :  { %2502 = vrot.lane.b32.xlu1 %v2494_v32, %s3670_s3 }
0x3fc0   :  { %v2498_v13 = vpop.permute.xlu1 %2497 }
0x3fc1   :  { %v2500_v33 = vmul.f32 %v3534_v28, %v2498_v13 }
0x3fc3   :  { %2507 = vrot.lane.b32.xlu0 %v2500_v33, %s3664_s0 }
0x3fc4   :  { %v2503_v0 = vpop.permute.xlu1 %2502 }
0x3fc5   :  { %2505 = vst.msk [vmem:[#allocation5] sm:$0xff] %vm192_vm0, %v2503_v0 }
0x3fcc   :  { %v2566_v34 = vld [vmem:[#allocation5] sm:$0xff] }
0x3fcd   :  { %2568 = vrot.lane.b32.xlu1 %v2566_v34, %s3669_s22 }
0x4035   :  { %v2508_v23 = vpop.permute.xlu0 %2507 }
0x4036   :  { %2510 = vst.msk [vmem:[#allocation4] sm:$0xff] %vm192_vm0, %v2508_v23  ;;  %2511 = vst.msk [vmem:[#allocation2 + $0x30] sm:$0xff] %vm192_vm0, %v2508_v23 }
0x403d   :  { %v2513_v59 = vld [vmem:[#allocation4] sm:$0xff]  ;;  %v2611_v62 = vld [vmem:[#allocation2 + $0x30] sm:$0xff] }
0x403e   :  { %v2514_v35 = vpack.c.bf16 %v2513_v59, %v2513_v59 }
0x403f   :  { %v2569_v48 = vpop.permute.xlu1 %2568 }
0x4040   :  { %3298 = vmatmul.mubr.msk.bf16.vlgmr.msra.gmra.mrb[56].mxu1 %vm192_vm0, %v2514_v35 }
0x4041   :  { %3314 = vmatpush3.bf16.msra.mxu1 %v3351_v46  ;;  %3317 = vmatprep.mubr.msk.bf16.mxu1 %vm192_vm0, %v2725_v1 }
0x4042   :  { %3315 = vmatprep.subr.bf16.mxu1 %v3352_v36 }
0x4045   :  { %3316 = vmatpush3.bf16.msra.mxu1 %v3352_v36 }
0x4048   :  { %3318 = vmatmul.mubr.msk.bf16.vlgmr.msra.gmra.mrb[60].mxu1 %vm192_vm0, %v2726_v26 }
0x4113   :  { %v2552_v54 = vpop.f32.mrb[56].mxu1 }
0x4114   :  { %v2558_v38 = vadd.f32 %v2552_v54, %v1874_v37  ;;  %v3299_v39 = vpop.f32.mrb[57].mxu1 }
0x4115   :  { %v2555_v16 = vpop.f32.mrb[58].mxu1 }
0x4116   :  { %3537 = vtanh.f32 %v2558_v38  ;;  %v3300_v40 = vpop.f32.mrb[59].mxu1  ;;  %v2959_v18 = vmul.f32 -1.442695, %v2558_v38 }
0x4118   :  { %3539 = vpow2.f32 %v2959_v18 }
0x411b   :  { %v3319_v8 = vpop.f32.mrb[60].mxu1 }
0x411c   :  { %v2807_v4 = vadd.f32 %v3319_v8, %v4388_v41  ;;  %v2798_v42 = vpop.f32.mrb[61].mxu1 }
0x411d   :  { %v2799_v43 = vadd.f32 %v4388_v41, %v2798_v42  ;;  %v3320_v2 = vpop.f32.mrb[62].mxu1 }
0x411e   :  { %2831 = vst [vmem:[#allocation11 + $0x10] sm:$0xff] %v2807_v4  ;;  %v2810_v58 = vadd.f32 %v3320_v2, %v4388_v41  ;;  %v2801_v60 = vpop.f32.mrb[63].mxu1 }
0x411f   :  { %2829 = vst [vmem:[#allocation11] sm:$0xff] %v2799_v43  ;;  %v2802_v7 = vadd.f32 %v4388_v41, %v2801_v60 }
0x4120   :  { %v3538_v17 = vpop.eup %3537  ;;  %2832 = vst [vmem:[#allocation11 + $0x18] sm:$0xff] %v2810_v58 }
0x4121   :  { %2830 = vst [vmem:[#allocation11 + $0x8] sm:$0xff] %v2802_v7  ;;  %2573 = vrot.lane.b32.xlu0 %v3538_v17, %s3669_s22 }
0x4122   :  { %v3540_v44 = vpop.eup %3539 }
0x4123   :  { %v2562_v45 = vadd.f32 1.0, %v3540_v44 }
0x4125   :  { %3541 = vrcp.f32 %v2562_v45 }
0x412f   :  { %v3542_v9 = vpop.eup %3541 }
0x4130   :  { %v2571_v49 = vmul.f32 %v3542_v9, %v2569_v48 }
0x4193   :  { %v2574_v47 = vpop.permute.xlu0 %2573 }
0x4194   :  { %v2576_v15 = vmul.f32 %v3542_v9, %v2574_v47 }
0x4196   :  { %2578 = vrot.lane.b32.xlu0 %v2576_v15, %s3669_s22 }
0x4208   :  { %v2579_v50 = vpop.permute.xlu0 %2578 }
0x4209   :  { %v2581_v12 = vadd.f32 %v2579_v50, %v2571_v49 }
0x420b   :  { %3543 = vtanh.f32 %v2581_v12 }
0x4215   :  { %v3544_v14 = vpop.eup %3543 }
0x4216   :  { %2584 = vrot.lane.b32.xlu1 %v3544_v14, %s3669_s22 }
0x421a   :  { %2589 = vrot.lane.b32.xlu1 %v2581_v12, %s3670_s3 }
0x4288   :  { %v2585_v24 = vpop.permute.xlu1 %2584 }
0x4289   :  { %v2587_v52 = vmul.f32 %v3542_v9, %v2585_v24 }
0x428b   :  { %2594 = vrot.lane.b32.xlu0 %v2587_v52, %s3664_s0  ;;  %s2854_s0 = sshll.u32 %s3671_s13, 4  ;;  %s2855_s0 = int_to_ptr.vmem [resolvable:$true] %s2854_s0 }
0x428c   :  { %v2590_v53 = vpop.permute.xlu1 %2589  ;;  %s3589_s22 = scalar_lea.vmem %s2855_s0, 384  ;;  %p3594_p3 = scmp.lt.s32.totalorder %s2855_s0, %s2855_s0 }
0x428d   :  { %2592 = vst.msk [vmem:[#allocation5] sm:$0xff] %vm192_vm0, %v2590_v53  ;;  %p3590_p2 = scmp.ne.s32.totalorder %s2855_s0, %s3589_s22  ;;  %p3595_p4 = scmp.lt.s32.totalorder %s3589_s22, %s3589_s22 }
0x428f   :  { %p3596_p5 = por %p3595_p4, %p3594_p3 }
0x4291   :  { %p3597_p6 = pnand %p3596_p5, %p3590_p2 }
0x4294   :  { %v2602_v55 = vld [vmem:[#allocation5] sm:$0xff] }
0x4295   :  { %2604 = vst.msk [vmem:[#allocation14 + $0x10] sm:$0xff] %vm192_vm0, %v2602_v55 }
0x42fd   :  { %v2595_v61 = vpop.permute.xlu0 %2594 }
0x42fe   :  { %2597 = vst.msk [vmem:[#allocation4] sm:$0xff] %vm192_vm0, %v2595_v61  ;;  %2598 = vst.msk [vmem:[#allocation2 + $0x38] sm:$0xff] %vm192_vm0, %v2595_v61 }
0x4305   :  { %v2612_v56 = vld [vmem:[#allocation2 + $0x38] sm:$0xff]  ;;  %v2599_v63 = vld [vmem:[#allocation4] sm:$0xff] }
0x4306   :  { %v2616_v57 = vpack.c.bf16 %v2612_v56, %v2611_v62  ;;  %2601 = vst.msk [vmem:[#allocation12 + $0x10] sm:$0xff] %vm192_vm0, %v2599_v63 }
0x4308   :  { %3310 = vmatmul.mubr.msk.bf16.gmra.mrb[64].mxu0 %vm192_vm0, %v2616_v57 }
0x43db   :  { %v3311_v19 = vpop.f32.mrb[64].mxu0 }
0x43dc   :  { %v2711_v20 = vadd.f32 %v3311_v19, %v4359_v51  ;;  %v2702_v5 = vpop.f32.mrb[65].mxu0 }
0x43dd   :  { %v2703_v6 = vadd.f32 %v4359_v51, %v2702_v5  ;;  %v3312_v25 = vpop.f32.mrb[66].mxu0 }
0x43de   :  { %v2714_v26 = vadd.f32 %v3312_v25, %v4359_v51  ;;  %v2705_v1 = vpop.f32.mrb[67].mxu0  ;;  %v2723_v11 = vmax.f32 %v2711_v20, 0.0 }
0x43df   :  { %v2706_v10 = vadd.f32 %v4359_v51, %v2705_v1  ;;  %v2721_v28 = vmax.f32 %v2703_v6, 0.0 }
0x43e0   :  { %v2724_v27 = vmax.f32 %v2714_v26, 0.0 }
0x43e1   :  { %v2722_v3 = vmax.f32 %v2706_v10, 0.0 }
0x43e2   :  { %v2728_v21 = vpack.c.bf16 %v2724_v27, %v2723_v11 }
0x43e3   :  { %v2727_v29 = vpack.c.bf16 %v2722_v3, %v2721_v28 }
0x43e5   :  { %3321 = vmatprep.mubr.msk.bf16.mxu1 %vm192_vm0, %v2727_v29 }
0x43e6   :  { %3322 = vmatmul.mubr.msk.bf16.gmra.mrb[64].mxu1 %vm192_vm0, %v2728_v21 }
0x43e7   :  { %3600 = shalt.err (!%p3597_p6)
}
0x43e8   :  { %s3601_s2 = scalar_lea.hbm %s4475_s15, 384 }
0x43e9   :  { %p3602_p7 = scmp.ne.s32.totalorder %s4475_s15, %s3601_s2  ;;  %p3605_p8 = scmp.lt.u32.totalorder %s3601_s2, %s4475_s15 }
0x43eb   :  { %p3607_p9 = pnand %p3605_p8, %p3602_p7 }
0x43ed   :  { %3610 = shalt.err (!%p3607_p9)
}
0x43ee   :  { %s3672_s9 = smov 128   ;;  %s3673_s18 = smov 8  }
0x43ef   :  { %2860 = dma.vmem_to_hbm [thread:$0]  %s2855_s0, 384, %s4475_s15, [#allocation13], %s3672_s9, %s3672_s9, %s3673_s18  }
0x43f0   :  { %s3674_s20 = smov [#allocation14]  }
0x43f1   :  { %s2866_s23 = sshll.u32 %s3674_s20, 4  ;;  %s2867_s23 = int_to_ptr.vmem [resolvable:$true] %s2866_s23 }
0x43f2   :  { %s3611_s8 = scalar_lea.vmem %s2867_s23, 384  ;;  %p3616_p11 = scmp.lt.s32.totalorder %s2867_s23, %s2867_s23 }
0x43f3   :  { %p3612_p10 = scmp.ne.s32.totalorder %s2867_s23, %s3611_s8  ;;  %p3617_p12 = scmp.lt.s32.totalorder %s3611_s8, %s3611_s8 }
0x43f5   :  { %p3618_p13 = por %p3617_p12, %p3616_p11 }
0x43f7   :  { %p3619_p0 = pnand %p3618_p13, %p3612_p10 }
0x43f9   :  { %3622 = shalt.err (!%p3619_p0)
}
0x43fa   :  { %s3623_s21 = scalar_lea.hbm %s4476_s16, 384 }
0x43fb   :  { %p3624_p1 = scmp.ne.s32.totalorder %s4476_s16, %s3623_s21  ;;  %p3627_p2 = scmp.lt.u32.totalorder %s3623_s21, %s4476_s16 }
0x43fd   :  { %p3629_p3 = pnand %p3627_p2, %p3624_p1 }
0x43ff   :  { %3632 = shalt.err (!%p3629_p3)
}
0x4400   :  { %2872 = dma.vmem_to_hbm [thread:$0]  %s2867_s23, 384, %s4476_s16, [#allocation13], %s3672_s9, %s3672_s9, %s3673_s18  }
0x4401   :  { %s3675_s4 = smov [#allocation11]  }
0x4402   :  { %s2842_s29 = sshll.u32 %s3675_s4, 4  ;;  %s2843_s29 = int_to_ptr.vmem [resolvable:$true] %s2842_s29 }
0x4403   :  { %s3633_s16 = scalar_lea.vmem %s2843_s29, 1024  ;;  %p3638_p5 = scmp.lt.s32.totalorder %s2843_s29, %s2843_s29 }
0x4404   :  { %p3634_p4 = scmp.ne.s32.totalorder %s2843_s29, %s3633_s16  ;;  %p3639_p6 = scmp.lt.s32.totalorder %s3633_s16, %s3633_s16 }
0x4406   :  { %p3640_p7 = por %p3639_p6, %p3638_p5 }
0x4408   :  { %p3641_p8 = pnand %p3640_p7, %p3634_p4 }
0x44b9   :  { %v3323_v51 = vpop.f32.mrb[64].mxu1 }
0x44ba   :  { %v2823_v30 = vadd.f32 %v3323_v51, %v4388_v41  ;;  %v2814_v31 = vpop.f32.mrb[65].mxu1 }
0x44bb   :  { %v2815_v32 = vadd.f32 %v4388_v41, %v2814_v31  ;;  %v3324_v22 = vpop.f32.mrb[66].mxu1 }
0x44bc   :  { %2835 = vst [vmem:[#allocation11 + $0x30] sm:$0xff] %v2823_v30  ;;  %v2826_v46 = vadd.f32 %v3324_v22, %v4388_v41  ;;  %v2817_v13 = vpop.f32.mrb[67].mxu1 }
0x44bd   :  { %2833 = vst [vmem:[#allocation11 + $0x20] sm:$0xff] %v2815_v32  ;;  %v2818_v33 = vadd.f32 %v4388_v41, %v2817_v13 }
0x44be   :  { %2836 = vst [vmem:[#allocation11 + $0x38] sm:$0xff] %v2826_v46 }
0x44bf   :  { %2834 = vst [vmem:[#allocation11 + $0x28] sm:$0xff] %v2818_v33 }
0x44c0   :  { %3644 = shalt.err (!%p3641_p8)
}
0x44c1   :  { %s3645_s0 = scalar_lea.hbm %s4474_s14, 1024 }
0x44c2   :  { %p3646_p9 = scmp.ne.s32.totalorder %s4474_s14, %s3645_s0  ;;  %p3649_p10 = scmp.lt.u32.totalorder %s3645_s0, %s4474_s14 }
0x44c4   :  { %p3651_p11 = pnand %p3649_p10, %p3646_p9 }
0x44c6   :  { %3654 = shalt.err (!%p3651_p11)
}
0x44c7   :  { %2848 = dma.vmem_to_hbm [thread:$0]  %s2843_s29, 1024, %s4474_s14, [#allocation8], %s3672_s9, %s3672_s9, %s3673_s18  }
0x44c8   :  { %3659 = dma.done.wait [#allocation8], 1024  }
0x44c9   :  { %3660 = vsyncadd [#allocation8], 4294966272 }
0x44ca   :  { %3661 = dma.done.wait [#allocation13], 768  }
0x44cb   :  { %3662 = vsyncadd [#allocation13], 4294966528 }
0x44cc   :  { %2882 = vsyncpa [#allocation7], 1 }
0x44cd   :  { %2883 = vsyncpa [#allocation10], 1 }
0x44ce   :  { %2884 = vsyncpa [#allocation8], 1 }
0x44cf   :  { %2885 = vsyncpa [#allocation13], 1 }

</bundles_post_ra>
